<compile_context>
chip_gen: v7x
topology: tpu7x:2x2x1
jax: 0.10.0
libtpu: 0.0.40
codegen_flags: <defaults>
</compile_context>

<pallas_src>
import functools

import numpy as np
import jax
import jax.numpy as jnp
from jax.experimental import pallas as pl
from jax.experimental.pallas import tpu as pltpu

BN_EPS = 1e-5


# ----------------------------------------------------------------------------
# Pallas kernel: one image per grid step, all branches + projection fused.
# ----------------------------------------------------------------------------
def _aspp_kernel(x_ref, wb_ref, bb_ref, wp_ref, bp_ref, o_ref, xscr,
                 *, H, W, Cin, pad, taps):
    M = H * W

    # Zero-pad the image into the VMEM scratch.  Rebuilt every grid step
    # (a few KB) so the kernel stays correct when the grid axis is sharded
    # across TensorCores and each core owns its own scratch copy.
    xscr[...] = jnp.zeros_like(xscr)
    xscr[:, pad:pad + H, pad:pad + W] = x_ref[0].astype(xscr.dtype)

    # im2col slab (K, M): one (Cin, M) row-block per statically useful tap,
    # with pixels on the lane axis.
    blocks = []
    for (dy, dx) in taps:
        a = pad + dy
        b = pad + dx
        blocks.append(xscr[:, a:a + H, b:b + W].reshape(Cin, M))
    slab = blocks[0] if len(blocks) == 1 else jnp.concatenate(blocks, axis=0)

    # All five branch convs (1x1, dilated 3x3s, identity-pool 1x1) in one
    # wide-K MXU pass; BatchNorm scales are pre-folded into wb.
    yb = jnp.dot(wb_ref[...], slab, preferred_element_type=jnp.float32)
    act = jnp.maximum(yb + bb_ref[...], 0.0)                      # (Cb, M) f32

    # torch.cat + 1x1 projection + BN as a single matmul over the branch axis.
    z = jnp.dot(wp_ref[...], act.astype(wp_ref.dtype),
                preferred_element_type=jnp.float32)               # (Cout, M) f32

    # TODO(synk): nn.Dropout(0.1) is identity in eval/inference mode.
    o_ref[...] = jnp.maximum(z + bp_ref[...], 0.0).astype(o_ref.dtype)


# ----------------------------------------------------------------------------
# Host-side packing: BN folding, tap schedule, block-structured weights.
# ----------------------------------------------------------------------------
def _bn_fold_np(bn):
    gamma, beta, mean, var = (np.asarray(a, np.float32) for a in bn)
    scale = gamma / np.sqrt(var + BN_EPS)
    bias = beta - mean * scale
    return scale, bias


def _tap_plan(atrous_rates, H, W):
    """Static tap schedule; drops taps that read only zero padding."""
    taps = [(0, 0)]
    index = {(0, 0): 0}
    per_rate = []                       # per rate: list of (tap_idx, ki, kj)
    for r in atrous_rates:
        entries = [(0, 1, 1)]           # centre tap always contributes
        for ki in range(3):
            for kj in range(3):
                if ki == 1 and kj == 1:
                    continue
                sy, sx = (ki - 1) * r, (kj - 1) * r
                if abs(sy) >= H or abs(sx) >= W:
                    continue            # window entirely inside zero padding
                t = (sy, sx)
                if t not in index:
                    index[t] = len(taps)
                    taps.append(t)
                entries.append((index[t], ki, kj))
        per_rate.append(entries)
    pad = max((max(abs(dy), abs(dx)) for dy, dx in taps), default=0)
    return taps, per_rate, pad


def pack_aspp_params(params, atrous_rates, H, W, pool):
    """Fold BN into conv weights and pack for the fused transposed kernel."""
    # torch.cat in the original forward only works when the pooled branch has
    # the same spatial size as the others => pool == H == W, in which case
    # AdaptiveAvgPool2d((pool, pool)) is the identity.
    assert pool == H and pool == W, "ASPP requires pool == H == W (else torch.cat fails)"

    w1 = np.asarray(params['w_1x1'], np.float32)        # (Cout, Cin, 1, 1)
    Cout, Cin = int(w1.shape[0]), int(w1.shape[1])
    R = len(atrous_rates)
    Cb = (2 + R) * Cout

    taps, per_rate, pad = _tap_plan(atrous_rates, H, W)
    K = len(taps) * Cin

    wb = np.zeros((Cb, K), np.float32)                  # (Cb, K) branch weights
    bb = np.zeros((Cb,), np.float32)

    # Branch 0: 1x1 conv (centre tap only).
    s, b = _bn_fold_np(params['bn_1x1'])
    wb[0:Cout, 0:Cin] = w1[:, :, 0, 0] * s[:, None]
    bb[0:Cout] = b

    # Dilated 3x3 branches.
    for j, r in enumerate(atrous_rates):
        s, b = _bn_fold_np(params[f'bn_d{r}'])
        w = np.asarray(params[f'w_d{r}'], np.float32)   # (Cout, Cin, 3, 3)
        c0 = (1 + j) * Cout
        bb[c0:c0 + Cout] = b
        for (ti, ki, kj) in per_rate[j]:
            wb[c0:c0 + Cout, ti * Cin:(ti + 1) * Cin] = w[:, :, ki, kj] * s[:, None]

    # Pool branch: AdaptiveAvgPool2d((H, W)) on an (H, W) input is identity,
    # so it is a second 1x1 conv on the centre tap.
    s, b = _bn_fold_np(params['bn_pool'])
    wpool = np.asarray(params['w_pool'], np.float32)[:, :, 0, 0]
    c0 = (1 + R) * Cout
    wb[c0:c0 + Cout, 0:Cin] = wpool * s[:, None]
    bb[c0:c0 + Cout] = b

    # Projection 1x1 conv over the concatenated branches, BN folded.
    s, b = _bn_fold_np(params['bn_proj'])
    wproj = np.asarray(params['w_proj'], np.float32)[:, :, 0, 0]   # (Cout, Cb)
    wp = wproj * s[:, None]
    bp = b

    packed = dict(
        wb=jnp.asarray(wb, jnp.bfloat16),               # (Cb, K)
        bb=jnp.asarray(bb[:, None], jnp.float32),       # (Cb, 1)
        wp=jnp.asarray(wp, jnp.bfloat16),               # (Cout, Cb)
        bp=jnp.asarray(bp[:, None], jnp.float32),       # (Cout, 1)
    )
    plan = dict(taps=tuple(taps), pad=int(pad), Cin=Cin, Cout=Cout)
    return packed, plan


# ----------------------------------------------------------------------------
# Forward wrapper (jit-friendly; packed weights are closed-over constants).
# ----------------------------------------------------------------------------
def aspp_forward(x_nchw, *, packed, plan):
    N, Cin, H, W = x_nchw.shape
    assert Cin == plan['Cin']
    Cout = plan['Cout']
    pad = plan['pad']
    taps = plan['taps']
    M = H * W
    Cb, K = packed['wb'].shape
    assert Cout % 8 == 0

    kernel = functools.partial(_aspp_kernel, H=H, W=W, Cin=Cin, pad=pad, taps=taps)

    def const_spec(a):
        nd = a.ndim
        return pl.BlockSpec(a.shape, lambda n, _nd=nd: (0,) * _nd)

    flops = 2 * N * M * (Cb * K + Cout * Cb)
    bytes_accessed = (int(x_nchw.size) * x_nchw.dtype.itemsize
                      + sum(int(a.size) * a.dtype.itemsize for a in packed.values())
                      + N * Cout * M * 4)

    out = pl.pallas_call(
        kernel,
        out_shape=jax.ShapeDtypeStruct((N * Cout, M), jnp.float32),
        grid=(N,),
        in_specs=[
            pl.BlockSpec((1, Cin, H, W), lambda n: (n, 0, 0, 0)),   # unpadded image
            const_spec(packed['wb']),
            const_spec(packed['bb']),
            const_spec(packed['wp']),
            const_spec(packed['bp']),
        ],
        out_specs=pl.BlockSpec((Cout, M), lambda n: (n, 0)),
        scratch_shapes=[pltpu.VMEM((Cin, H + 2 * pad, W + 2 * pad), jnp.bfloat16)],
        compiler_params=pltpu.CompilerParams(
            dimension_semantics=("parallel",),
            vmem_limit_bytes=16 * 1024 * 1024),
        cost_estimate=pl.CostEstimate(
            flops=int(flops), transcendentals=0, bytes_accessed=int(bytes_accessed)),
    )(x_nchw, packed['wb'], packed['bb'], packed['wp'], packed['bp'])

    # (N*Cout, H*W) -> (N, Cout, H, W): contiguity-preserving reshape only.
    return out.reshape(N, Cout, H, W)


# ----------------------------------------------------------------------------
# Parameter initialisation (deterministic, synthetic).
# ----------------------------------------------------------------------------
def init_aspp_params(key, in_channels, out_channels, atrous_rates):
    keys = iter(jax.random.split(key, 64))
    p = {}

    def conv(shape):
        return 0.1 * jax.random.normal(next(keys), shape, dtype=jnp.float32)

    def bn(c):
        gamma = 1.0 + 0.1 * jax.random.normal(next(keys), (c,), dtype=jnp.float32)
        beta = 0.02 * jax.random.normal(next(keys), (c,), dtype=jnp.float32)
        mean = 0.01 * jax.random.normal(next(keys), (c,), dtype=jnp.float32)
        var = 1.0 + 0.1 * jnp.abs(jax.random.normal(next(keys), (c,), dtype=jnp.float32))
        return gamma, beta, mean, var

    p['w_1x1'] = conv((out_channels, in_channels, 1, 1))
    p['bn_1x1'] = bn(out_channels)
    for r in atrous_rates:
        p[f'w_d{r}'] = conv((out_channels, in_channels, 3, 3))
        p[f'bn_d{r}'] = bn(out_channels)
    p['w_pool'] = conv((out_channels, in_channels, 1, 1))
    p['bn_pool'] = bn(out_channels)
    n_branches = 2 + len(atrous_rates)
    p['w_proj'] = conv((out_channels, out_channels * n_branches, 1, 1))
    p['bn_proj'] = bn(out_channels)
    return p


# ----------------------------------------------------------------------------
# Pure-JAX f32 reference (lax convolutions) for a correctness check.
# ----------------------------------------------------------------------------
def _aspp_reference(x_nchw, params, atrous_rates, pool):
    x = x_nchw.astype(jnp.float32)
    N, Cin, H, W = x.shape
    assert pool == H == W
    dn = ('NCHW', 'OIHW', 'NCHW')
    prec = jax.lax.Precision.HIGHEST

    def bn(y, p):
        gamma, beta, mean, var = p
        s = gamma / jnp.sqrt(var + BN_EPS)
        b = beta - mean * s
        return y * s[None, :, None, None] + b[None, :, None, None]

    outs = []
    y = jax.lax.conv_general_dilated(x, params['w_1x1'], (1, 1), 'VALID',
                                     dimension_numbers=dn, precision=prec)
    outs.append(jax.nn.relu(bn(y, params['bn_1x1'])))
    for r in atrous_rates:
        y = jax.lax.conv_general_dilated(x, params[f'w_d{r}'], (1, 1),
                                         [(r, r), (r, r)], rhs_dilation=(r, r),
                                         dimension_numbers=dn, precision=prec)
        outs.append(jax.nn.relu(bn(y, params[f'bn_d{r}'])))
    # Adaptive pool to (pool, pool) == (H, W) is the identity.
    y = jax.lax.conv_general_dilated(x, params['w_pool'], (1, 1), 'VALID',
                                     dimension_numbers=dn, precision=prec)
    outs.append(jax.nn.relu(bn(y, params['bn_pool'])))
    cat = jnp.concatenate(outs, axis=1)
    y = jax.lax.conv_general_dilated(cat, params['w_proj'], (1, 1), 'VALID',
                                     dimension_numbers=dn, precision=prec)
    return jax.nn.relu(bn(y, params['bn_proj']))


# ----------------------------------------------------------------------------
# Main
# ----------------------------------------------------------------------------
if __name__ == "__main__":
    # Small shapes consistent with the module; pool == H == W is required by
    # torch.cat in the original forward.
    N, Cin, H, W = 2, 4, 16, 16
    Cout = 32
    rates = (6, 12, 18)
    pool = 16

    key = jax.random.PRNGKey(0)
    k_x, k_p = jax.random.split(key)
    x = jax.random.normal(k_x, (N, Cin, H, W), dtype=jnp.float32)
    params = init_aspp_params(k_p, Cin, Cout, rates)

    packed, plan = pack_aspp_params(params, rates, H, W, pool)
    fwd = jax.jit(functools.partial(aspp_forward, packed=packed, plan=plan))

    y = jax.block_until_ready(fwd(x))
    y_ref = jax.block_until_ready(_aspp_reference(x, params, rates, pool))

    assert y.shape == (N, Cout, H, W), y.shape
    assert bool(jnp.all(jnp.isfinite(y)))
    assert bool(jnp.all(y >= 0.0))            # final ReLU
    max_err = float(jnp.max(jnp.abs(y - y_ref)))
    ref_scale = float(jnp.max(jnp.abs(y_ref))) + 1e-6
    assert max_err / ref_scale < 0.05, (max_err, ref_scale)   # bf16-level agreement
    print("KERNEL_OK")
</pallas_src>

<mosaic_0001>
module attributes {stable_mosaic.version = 11 : i64} {
  func.func @_aspp_kernel(%arg0: i32, %arg1: memref<1x4x16x16xf32, #tpu.memory_space<vmem>>, %arg2: memref<160x68xbf16, #tpu.memory_space<vmem>>, %arg3: memref<160x1xf32, #tpu.memory_space<vmem>>, %arg4: memref<32x160xbf16, #tpu.memory_space<vmem>>, %arg5: memref<32x1xf32, #tpu.memory_space<vmem>>, %arg6: memref<32x256xf32, #tpu.memory_space<vmem>>, %arg7: memref<4x40x40xbf16, #tpu.memory_space<vmem>>) attributes {dimension_semantics = [#tpu.dimension_semantics<parallel>], iteration_bounds = array<i64: 2>, scalar_prefetch = 0 : i64, scratch_operands = 1 : i64, tpu.core_type = #tpu.core_type<tc>, window_params = [{transform_indices = @transform_0, window_bounds = array<i64: 1, 4, 16, 16>}, {pipeline_mode = #tpu.pipeline_mode<synchronous>, transform_indices = @transform_1, window_bounds = array<i64: 160, 68>}, {pipeline_mode = #tpu.pipeline_mode<synchronous>, transform_indices = @transform_2, window_bounds = array<i64: 160, 1>}, {pipeline_mode = #tpu.pipeline_mode<synchronous>, transform_indices = @transform_3, window_bounds = array<i64: 32, 160>}, {pipeline_mode = #tpu.pipeline_mode<synchronous>, transform_indices = @transform_4, window_bounds = array<i64: 32, 1>}, {transform_indices = @transform_5, window_bounds = array<i64: 32, 256>}]} {
    %cst = arith.constant 0.000000e+00 : bf16
    %0 = vector.broadcast %cst : bf16 to vector<4x40x40xbf16>
    %c0 = arith.constant 0 : index
    %c0_0 = arith.constant 0 : index
    %c0_1 = arith.constant 0 : index
    %1 = vector.load %arg7[%c0, %c0_0, %c0_1] : memref<4x40x40xbf16, #tpu.memory_space<vmem>>, vector<4x40x40xbf16>
    tpu.vector_store %arg7[%c0, %c0_0, %c0_1], %0 {strides = array<i32>} : memref<4x40x40xbf16, #tpu.memory_space<vmem>>, vector<4x40x40xbf16>,
    %c0_2 = arith.constant 0 : index
    %c0_3 = arith.constant 0 : index
    %c0_4 = arith.constant 0 : index
    %c0_5 = arith.constant 0 : index
    %2 = vector.load %arg1[%c0_2, %c0_3, %c0_4, %c0_5] : memref<1x4x16x16xf32, #tpu.memory_space<vmem>>, vector<1x4x16x16xf32>
    %3 = vector.shape_cast %2 : vector<1x4x16x16xf32> to vector<4x16x16xf32>
    %4 = arith.truncf %3 : vector<4x16x16xf32> to vector<4x16x16xbf16>
    %c0_6 = arith.constant 0 : index
    %c12 = arith.constant 12 : index
    %c12_7 = arith.constant 12 : index
    %5 = vector.load %arg7[%c0_6, %c12, %c12_7] : memref<4x40x40xbf16, #tpu.memory_space<vmem>>, vector<4x16x16xbf16>
    tpu.vector_store %arg7[%c0_6, %c12, %c12_7], %4 {strides = array<i32>} : memref<4x40x40xbf16, #tpu.memory_space<vmem>>, vector<4x16x16xbf16>,
    %c0_8 = arith.constant 0 : index
    %c12_9 = arith.constant 12 : index
    %c12_10 = arith.constant 12 : index
    %6 = vector.load %arg7[%c0_8, %c12_9, %c12_10] : memref<4x40x40xbf16, #tpu.memory_space<vmem>>, vector<4x16x16xbf16>
    %7 = vector.shape_cast %6 : vector<4x16x16xbf16> to vector<4x256xbf16>
    %c0_11 = arith.constant 0 : index
    %c6 = arith.constant 6 : index
    %c6_12 = arith.constant 6 : index
    %8 = vector.load %arg7[%c0_11, %c6, %c6_12] : memref<4x40x40xbf16, #tpu.memory_space<vmem>>, vector<4x16x16xbf16>
    %9 = vector.shape_cast %8 : vector<4x16x16xbf16> to vector<4x256xbf16>
    %c0_13 = arith.constant 0 : index
    %c6_14 = arith.constant 6 : index
    %c12_15 = arith.constant 12 : index
    %10 = vector.load %arg7[%c0_13, %c6_14, %c12_15] : memref<4x40x40xbf16, #tpu.memory_space<vmem>>, vector<4x16x16xbf16>
    %11 = vector.shape_cast %10 : vector<4x16x16xbf16> to vector<4x256xbf16>
    %c0_16 = arith.constant 0 : index
    %c6_17 = arith.constant 6 : index
    %c18 = arith.constant 18 : index
    %12 = vector.load %arg7[%c0_16, %c6_17, %c18] : memref<4x40x40xbf16, #tpu.memory_space<vmem>>, vector<4x16x16xbf16>
    %13 = vector.shape_cast %12 : vector<4x16x16xbf16> to vector<4x256xbf16>
    %c0_18 = arith.constant 0 : index
    %c12_19 = arith.constant 12 : index
    %c6_20 = arith.constant 6 : index
    %14 = vector.load %arg7[%c0_18, %c12_19, %c6_20] : memref<4x40x40xbf16, #tpu.memory_space<vmem>>, vector<4x16x16xbf16>
    %15 = vector.shape_cast %14 : vector<4x16x16xbf16> to vector<4x256xbf16>
    %c0_21 = arith.constant 0 : index
    %c12_22 = arith.constant 12 : index
    %c18_23 = arith.constant 18 : index
    %16 = vector.load %arg7[%c0_21, %c12_22, %c18_23] : memref<4x40x40xbf16, #tpu.memory_space<vmem>>, vector<4x16x16xbf16>
    %17 = vector.shape_cast %16 : vector<4x16x16xbf16> to vector<4x256xbf16>
    %c0_24 = arith.constant 0 : index
    %c18_25 = arith.constant 18 : index
    %c6_26 = arith.constant 6 : index
    %18 = vector.load %arg7[%c0_24, %c18_25, %c6_26] : memref<4x40x40xbf16, #tpu.memory_space<vmem>>, vector<4x16x16xbf16>
    %19 = vector.shape_cast %18 : vector<4x16x16xbf16> to vector<4x256xbf16>
    %c0_27 = arith.constant 0 : index
    %c18_28 = arith.constant 18 : index
    %c12_29 = arith.constant 12 : index
    %20 = vector.load %arg7[%c0_27, %c18_28, %c12_29] : memref<4x40x40xbf16, #tpu.memory_space<vmem>>, vector<4x16x16xbf16>
    %21 = vector.shape_cast %20 : vector<4x16x16xbf16> to vector<4x256xbf16>
    %c0_30 = arith.constant 0 : index
    %c18_31 = arith.constant 18 : index
    %c18_32 = arith.constant 18 : index
    %22 = vector.load %arg7[%c0_30, %c18_31, %c18_32] : memref<4x40x40xbf16, #tpu.memory_space<vmem>>, vector<4x16x16xbf16>
    %23 = vector.shape_cast %22 : vector<4x16x16xbf16> to vector<4x256xbf16>
    %c0_33 = arith.constant 0 : index
    %c0_34 = arith.constant 0 : index
    %c0_35 = arith.constant 0 : index
    %24 = vector.load %arg7[%c0_33, %c0_34, %c0_35] : memref<4x40x40xbf16, #tpu.memory_space<vmem>>, vector<4x16x16xbf16>
    %25 = vector.shape_cast %24 : vector<4x16x16xbf16> to vector<4x256xbf16>
    %c0_36 = arith.constant 0 : index
    %c0_37 = arith.constant 0 : index
    %c12_38 = arith.constant 12 : index
    %26 = vector.load %arg7[%c0_36, %c0_37, %c12_38] : memref<4x40x40xbf16, #tpu.memory_space<vmem>>, vector<4x16x16xbf16>
    %27 = vector.shape_cast %26 : vector<4x16x16xbf16> to vector<4x256xbf16>
    %c0_39 = arith.constant 0 : index
    %c0_40 = arith.constant 0 : index
    %c24 = arith.constant 24 : index
    %28 = vector.load %arg7[%c0_39, %c0_40, %c24] : memref<4x40x40xbf16, #tpu.memory_space<vmem>>, vector<4x16x16xbf16>
    %29 = vector.shape_cast %28 : vector<4x16x16xbf16> to vector<4x256xbf16>
    %c0_41 = arith.constant 0 : index
    %c12_42 = arith.constant 12 : index
    %c0_43 = arith.constant 0 : index
    %30 = vector.load %arg7[%c0_41, %c12_42, %c0_43] : memref<4x40x40xbf16, #tpu.memory_space<vmem>>, vector<4x16x16xbf16>
    %31 = vector.shape_cast %30 : vector<4x16x16xbf16> to vector<4x256xbf16>
    %c0_44 = arith.constant 0 : index
    %c12_45 = arith.constant 12 : index
    %c24_46 = arith.constant 24 : index
    %32 = vector.load %arg7[%c0_44, %c12_45, %c24_46] : memref<4x40x40xbf16, #tpu.memory_space<vmem>>, vector<4x16x16xbf16>
    %33 = vector.shape_cast %32 : vector<4x16x16xbf16> to vector<4x256xbf16>
    %c0_47 = arith.constant 0 : index
    %c24_48 = arith.constant 24 : index
    %c0_49 = arith.constant 0 : index
    %34 = vector.load %arg7[%c0_47, %c24_48, %c0_49] : memref<4x40x40xbf16, #tpu.memory_space<vmem>>, vector<4x16x16xbf16>
    %35 = vector.shape_cast %34 : vector<4x16x16xbf16> to vector<4x256xbf16>
    %c0_50 = arith.constant 0 : index
    %c24_51 = arith.constant 24 : index
    %c12_52 = arith.constant 12 : index
    %36 = vector.load %arg7[%c0_50, %c24_51, %c12_52] : memref<4x40x40xbf16, #tpu.memory_space<vmem>>, vector<4x16x16xbf16>
    %37 = vector.shape_cast %36 : vector<4x16x16xbf16> to vector<4x256xbf16>
    %c0_53 = arith.constant 0 : index
    %c24_54 = arith.constant 24 : index
    %c24_55 = arith.constant 24 : index
    %38 = vector.load %arg7[%c0_53, %c24_54, %c24_55] : memref<4x40x40xbf16, #tpu.memory_space<vmem>>, vector<4x16x16xbf16>
    %39 = vector.shape_cast %38 : vector<4x16x16xbf16> to vector<4x256xbf16>
    %40 = tpu.concatenate %7, %9, %11, %13, %15, %17, %19, %21, %23, %25, %27, %29, %31, %33, %35, %37 in 0 : vector<4x256xbf16>, vector<4x256xbf16>, vector<4x256xbf16>, vector<4x256xbf16>, vector<4x256xbf16>, vector<4x256xbf16>, vector<4x256xbf16>, vector<4x256xbf16>, vector<4x256xbf16>, vector<4x256xbf16>, vector<4x256xbf16>, vector<4x256xbf16>, vector<4x256xbf16>, vector<4x256xbf16>, vector<4x256xbf16>, vector<4x256xbf16> -> vector<64x256xbf16>
    %41 = tpu.concatenate %40, %39 in 0 : vector<64x256xbf16>, vector<4x256xbf16> -> vector<68x256xbf16>
    %c0_56 = arith.constant 0 : index
    %c0_57 = arith.constant 0 : index
    %42 = vector.load %arg2[%c0_56, %c0_57] : memref<160x68xbf16, #tpu.memory_space<vmem>>, vector<160x68xbf16>
    %cst_58 = arith.constant dense<0.000000e+00> : vector<160x256xf32>
    %43 = tpu.matmul %42, %41, %cst_58 {dimension_numbers = #tpu.dot_dimension_numbers<[1], [0], [0], [1], [0, 0, 1, 1], [], []>} : vector<160x68xbf16>, vector<68x256xbf16>, vector<160x256xf32> -> vector<160x256xf32>
    %c0_59 = arith.constant 0 : index
    %c0_60 = arith.constant 0 : index
    %44 = vector.load %arg3[%c0_59, %c0_60] : memref<160x1xf32, #tpu.memory_space<vmem>>, vector<160x1xf32>
    %45 = vector.broadcast %44 : vector<160x1xf32> to vector<160x256xf32>
    %46 = arith.addf %43, %45 : vector<160x256xf32>
    %cst_61 = arith.constant 0.000000e+00 : f32
    %47 = vector.broadcast %cst_61 : f32 to vector<160x256xf32>
    %48 = arith.maximumf %46, %47 : vector<160x256xf32>
    %c0_62 = arith.constant 0 : index
    %c0_63 = arith.constant 0 : index
    %49 = vector.load %arg4[%c0_62, %c0_63] : memref<32x160xbf16, #tpu.memory_space<vmem>>, vector<32x160xbf16>
    %50 = arith.truncf %48 : vector<160x256xf32> to vector<160x256xbf16>
    %cst_64 = arith.constant dense<0.000000e+00> : vector<32x256xf32>
    %51 = tpu.matmul %49, %50, %cst_64 {dimension_numbers = #tpu.dot_dimension_numbers<[1], [0], [0], [1], [0, 0, 1, 1], [], []>} : vector<32x160xbf16>, vector<160x256xbf16>, vector<32x256xf32> -> vector<32x256xf32>
    %c0_65 = arith.constant 0 : index
    %c0_66 = arith.constant 0 : index
    %52 = vector.load %arg5[%c0_65, %c0_66] : memref<32x1xf32, #tpu.memory_space<vmem>>, vector<32x1xf32>
    %53 = vector.broadcast %52 : vector<32x1xf32> to vector<32x256xf32>
    %54 = arith.addf %51, %53 : vector<32x256xf32>
    %cst_67 = arith.constant 0.000000e+00 : f32
    %55 = vector.broadcast %cst_67 : f32 to vector<32x256xf32>
    %56 = arith.maximumf %54, %55 : vector<32x256xf32>
    %c0_68 = arith.constant 0 : index
    %c0_69 = arith.constant 0 : index
    %57 = vector.load %arg6[%c0_68, %c0_69] : memref<32x256xf32, #tpu.memory_space<vmem>>, vector<32x256xf32>
    tpu.vector_store %arg6[%c0_68, %c0_69], %56 {strides = array<i32>} : memref<32x256xf32, #tpu.memory_space<vmem>>, vector<32x256xf32>,
    return
  }
  func.func @transform_0(%arg0: i32) -> (i32, i32, i32, i32) {
    %c0_i32 = arith.constant 0 : i32
    %c0_i32_0 = arith.constant 0 : i32
    %c0_i32_1 = arith.constant 0 : i32
    %c0_i32_2 = arith.constant 0 : i32
    return %arg0, %c0_i32, %c0_i32_0, %c0_i32_1 : i32, i32, i32, i32
  }
  func.func @transform_1(%arg0: i32) -> (i32, i32) {
    %c0_i32 = arith.constant 0 : i32
    %c0_i32_0 = arith.constant 0 : i32
    %c0_i32_1 = arith.constant 0 : i32
    return %c0_i32, %c0_i32_0 : i32, i32
  }
  func.func @transform_2(%arg0: i32) -> (i32, i32) {
    %c0_i32 = arith.constant 0 : i32
    %c0_i32_0 = arith.constant 0 : i32
    %c0_i32_1 = arith.constant 0 : i32
    return %c0_i32, %c0_i32_0 : i32, i32
  }
  func.func @transform_3(%arg0: i32) -> (i32, i32) {
    %c0_i32 = arith.constant 0 : i32
    %c0_i32_0 = arith.constant 0 : i32
    %c0_i32_1 = arith.constant 0 : i32
    return %c0_i32, %c0_i32_0 : i32, i32
  }
  func.func @transform_4(%arg0: i32) -> (i32, i32) {
    %c0_i32 = arith.constant 0 : i32
    %c0_i32_0 = arith.constant 0 : i32
    %c0_i32_1 = arith.constant 0 : i32
    return %c0_i32, %c0_i32_0 : i32, i32
  }
  func.func @transform_5(%arg0: i32) -> (i32, i32) {
    %c0_i32 = arith.constant 0 : i32
    %c0_i32_0 = arith.constant 0 : i32
    return %arg0, %c0_i32 : i32, i32
  }
}

</mosaic_0001>

<bundles_post_ra>
// kernel: aspp_forward.1
= control target key start
LH: loop header
LB: loop body
LE: loop exit
PB: predicated region body
PF: predicated region fallthrough
CT: control target
= control target key end

     0   :  { %10 = vsyncpa [#allocation4], 0  ;;  %s10375_s0 = inlined_call_operand.hbm [shape: f32[2,4,16,16], index: 0, kind: input, shape index: {}]   ;;  %s10376_s1 = inlined_call_operand.vmem [shape: bf16[160,68], index: 1, kind: input, shape index: {}]   ;;  %s10377_s2 = inlined_call_operand.hbm [shape: f32[160,1], index: 2, kind: input, shape index: {}]   ;;  %s10378_s3 = inlined_call_operand.vmem [shape: bf16[32,160], index: 3, kind: input, shape index: {}]   ;;  %s10379_s4 = inlined_call_operand.hbm [shape: f32[32,1], index: 4, kind: input, shape index: {}]   ;;  %s10380_s5 = inlined_call_operand.vmem [shape: f32[64,256], index: 5, kind: output, shape index: {}]  }
   0x1   :  { %12 = vsyncpa [#allocation4 + $0x1], 0 }
   0x2   :  { %13 = vsyncpa [#allocation6], 0  ;;  %s6708_s18 = smov 0   ;;  %s6710_s19 = smov 0  }
   0x3   :  { %s6712_s20 = smov 0   ;;  %s6714_s21 = smov 0  }
   0x4 LB: > { %s5968_s22 = sadd.s32 4294967295, %s6656_s21   ;;  %p39_p0 = scmp.ne.s32.totalorder %s6648_s19, %s6644_s18  ;;  %s6656_s21 = sphi %s6714_s21, %s11087_s21   ;;  %s6652_s20 = sphi %s6712_s20, %s11086_s20   ;;  %s6648_s19 = sphi %s6710_s19, %s11085_s19   ;;  %s6644_s18 = sphi %s6708_s18, %s11084_s18  }
   0x5   : > { %p6730_p1 = scmp.eq.s32.totalorder %s5968_s22, 0  ;;  %p5970_p2 = scmp.ge.s32.totalorder %s6656_s21, 1 }
   0x6   : > { %p160_p3 = scmp.lt.s32.totalorder %s6656_s21, 3  ;;  %s6658_s26 = smov [#allocation5]  }
   0x7   : > { %s10564_s23 = scalar_select %p6730_p1, 1, 0 }
   0x8   : > { %p6738_p4 = por %p6730_p1, %p39_p0  ;;  %p6742_p5 = pnand %p5970_p2, %p160_p3 }
   0x9   : > { %s175_s27 = sshll.u32 %s6658_s26, 4  ;;  %s6659_s29 = smov [#allocation7]   ;;  %s176_s27 = int_to_ptr.vmem [resolvable:$true] %s175_s27 }
   0xa   : > { %s10565_s24 = scalar_select %p6738_p4, 1, 0 }
   0xb   : > { %s10566_s25 = scalar_select %p6742_p5, 1, 0 }
   0xc   : > { %p6427_p6 = pneg %p6742_p5  ;;  %s191_s30 = sshll.u32 %s6659_s29, 4  ;;  %s6754_s30 = int_to_ptr.vmem [resolvable:$true] %s191_s30 }
   0xd   : > { %s6532_s8 = scalar_lea.hbm %s10377_s2, 2560 }
   0xe   : > { %p6750_p7 = pnand %p6427_p6, %p6730_p1  ;;  %p6533_p8 = scmp.ne.s32.totalorder %s10377_s2, %s6532_s8 }
   0xf   : > { %p6539_p12 = scmp.lt.u32.totalorder %s6532_s8, %s10377_s2 }
  0x10   : > { %p6534_p9 = pneg %p6750_p7 }
  0x12   : > { %p6535_p10 = pnand %p6534_p9, %p6533_p8 }
  0x14   : > { %p6536_p11 = pneg %p6535_p10 }
  0x16   : > { %p6541_p13 = pnand %p6539_p12, %p6536_p11 }
  0x18   : > { %6544 = shalt.err (!%p6541_p13)
}
  0x19   : > { %s6545_s13 = scalar_lea.vmem %s176_s27, 2560  ;;  %p6553_p6 = scmp.lt.s32.totalorder %s176_s27, %s176_s27 }
  0x1a   : > { %p6546_p0 = scmp.ne.s32.totalorder %s176_s27, %s6545_s13  ;;  %p6554_p1 = scmp.lt.s32.totalorder %s6545_s13, %s6545_s13 }
  0x1c   : > { %p6548_p2 = pnand %p6546_p0, %p6534_p9  ;;  %p6555_p4 = por %p6554_p1, %p6553_p6 }
  0x1e   : > { %p6549_p3 = pneg %p6548_p2 }
  0x20   : > { %p6556_p5 = pnand %p6555_p4, %p6549_p3 }
  0x22   : > { %6559 = shalt.err (!%p6556_p5)
}
  0x23   : > { %s6660_s14 = smov 128   ;;  %s6661_s15 = smov 8  }
  0x24   : > { %6430 = dma.hbm_to_vmem [thread:$0]  (!%p6750_p7), %s10377_s2, 2560, %s176_s27, [#allocation6], %s6660_s14, %s6660_s14, %s6661_s15  }
  0x25   : > { %s6560_s29 = scalar_lea.hbm %s10379_s4, 512 }
  0x26   : > { %p6561_p1 = scmp.ne.s32.totalorder %s10379_s4, %s6560_s29  ;;  %p6567_p8 = scmp.lt.u32.totalorder %s6560_s29, %s10379_s4 }
  0x28   : > { %p6563_p4 = pnand %p6561_p1, %p6534_p9 }
  0x2a   : > { %p6564_p5 = pneg %p6563_p4 }
  0x2c   : > { %p6569_p10 = pnand %p6567_p8, %p6564_p5 }
  0x2e   : > { %6572 = shalt.err (!%p6569_p10)
}
  0x2f   : > { %s6573_s27 = scalar_lea.vmem %s6754_s30, 512  ;;  %p6581_p0 = scmp.lt.s32.totalorder %s6754_s30, %s6754_s30 }
  0x30   : > { %p6574_p11 = scmp.ne.s32.totalorder %s6754_s30, %s6573_s27  ;;  %p6582_p2 = scmp.lt.s32.totalorder %s6573_s27, %s6573_s27 }
  0x32   : > { %p6576_p12 = pnand %p6574_p11, %p6534_p9  ;;  %p6583_p3 = por %p6582_p2, %p6581_p0 }
  0x34   : > { %p6577_p13 = pneg %p6576_p12 }
  0x36   : > { %p6584_p6 = pnand %p6583_p3, %p6577_p13 }
  0x38   : > { %6587 = shalt.err (!%p6584_p6)
}
  0x39   : > { %6433 = dma.hbm_to_vmem [thread:$0]  (!%p6750_p7), %s10379_s4, 512, %s6754_s30, [#allocation6], %s6660_s14, %s6660_s14, %s6661_s15  }
  0x3a   : > { %s6810_s12 = sadd.s32 1, %s6656_s21   ;;  %s26_s28 = sadd.s32 1, %s6652_s20 }
  0x3b   : > { %s23_s13 = ssub.s32 %s6656_s21, %s6810_s12  ;;  %p33_p9 = scmp.ne.s32.totalorder %s6652_s20, %s6648_s19 }
  0x3c   : > { %p24_p1 = scmp.eq.s32.totalorder %s23_s13, 0  ;;  %p34_p4 = scmp.eq.s32.totalorder %s6656_s21, 0 }
  0x3d   : > { %p6440_p5 = scmp.lt.s32.totalorder %s6656_s21, 2  ;;  %s205_s16 = sand.u32 1, %s6652_s20  }
  0x3e   : > { %s6821_s17 = scalar_select %p24_p1, %s6652_s20, %s26_s28  }
  0x3f   : > { %p35_p8 = por %p34_p4, %p33_p9  ;;  %s5974_s18 = sshll.u32 %s205_s16, 6 }
  0x40   : > { %s6271_s26 = sshll.u32 %s6656_s21, 10  ;;  %s209_s30 = scalar_lea.vmem [#allocation3], %s5974_s18 }
  0x41   : > { %s6827_s7 = scalar_lea.hbm %s10375_s0, %s6271_s26  ;;  %s216_s8 = sshll.u32 %s209_s30, 4  ;;  %s6833_s8 = int_to_ptr.vmem [resolvable:$true] %s216_s8 }
  0x42   : > { %p6829_p7 = pnand %p6440_p5, %p35_p8  ;;  %s6835_s27 = scalar_lea.sflag [#allocation4], %s205_s16 }
  0x43   : > { %s6588_s10 = scalar_lea.hbm %s6827_s7, 1024  ;;  %s6593_s13 = scalar_lea.hbm %s10375_s0, 2048 }
  0x44   : > { %p6589_p10 = scmp.ne.s32.totalorder %s6827_s7, %s6588_s10  ;;  %p6590_p11 = pneg %p6829_p7 }
  0x45   : > { %p6594_p0 = scmp.lt.u32.totalorder %s6827_s7, %s10375_s0  ;;  %p6595_p2 = scmp.lt.u32.totalorder %s6593_s13, %s6588_s10 }
  0x46   : > { %p6591_p12 = pnand %p6590_p11, %p6589_p10  ;;  %p6597_p6 = scmp.lt.u32.totalorder %s6588_s10, %s6827_s7 }
  0x47   : > { %p6596_p3 = por %p6595_p2, %p6594_p0 }
  0x48   : > { %p6592_p13 = pneg %p6591_p12 }
  0x49   : > { %p6598_p9 = por %p6597_p6, %p6596_p3 }
  0x4b   : > { %p6599_p1 = pnand %p6598_p9, %p6592_p13 }
  0x4d   : > { %6602 = shalt.err (!%p6599_p1)
}
  0x4e   : > { %s6603_s16 = scalar_lea.vmem %s6833_s8, 1024  ;;  %s6662_s29 = smov [#allocation3]  }
  0x4f   : > { %p6604_p4 = scmp.ne.s32.totalorder %s6833_s8, %s6603_s16  ;;  %s6608_s6 = sshll.u32 %s6662_s29, 4  ;;  %s6609_s6 = int_to_ptr.vmem [resolvable:$false] %s6608_s6 }
  0x50   : > { %s6610_s30 = scalar_lea.vmem %s6609_s6, 2048  ;;  %p6611_p10 = scmp.lt.s32.totalorder %s6833_s8, %s6609_s6 }
  0x51   : > { %p6606_p5 = pnand %p6604_p4, %p6590_p11  ;;  %p6612_p12 = scmp.lt.s32.totalorder %s6610_s30, %s6603_s16 }
  0x53   : > { %p6607_p8 = pneg %p6606_p5  ;;  %p6613_p0 = por %p6612_p12, %p6611_p10 }
  0x55   : > { %p6614_p2 = pnand %p6613_p0, %p6607_p8 }
  0x57   : > { %6617 = shalt.err (!%p6614_p2)
}
  0x58   : > { %6437 = dma.hbm_to_vmem [thread:$0]  (!%p6829_p7), %s6827_s7, 1024, %s6833_s8, %s6835_s27, %s6660_s14, %s6660_s14, %s6661_s15  }
  0x59   : > { %p10569_p11 = scmp.ne.s32.totalorder %s10566_s25, 0 }
  0x5b   : > { %228 = sbr.rel (%p10569_p11) target bundleno = 1582 (0x62e), region = 40 }
  0x62   : > { %s230_s10 = sand.u32 1, %s6648_s19   ;;  %p10570_p13 = scmp.ne.s32.totalorder %s10565_s24, 0 }
  0x63   : > { %s5978_s11 = sshll.u32 %s230_s10, 6  ;;  %s231_s28 = scalar_lea.sflag [#allocation4], %s230_s10 }
  0x64   : > { %s6869_s13 = scalar_lea.vmem [#allocation3], %s5978_s11 }
  0x65   : > { %6635 = dma.done.wait (%p10570_p13), %s231_s28, 1024  }
  0x66   : > { %6637 = vsyncadd (%p10570_p13), %s231_s28, 4294966272  ;;  %p10571_p3 = scmp.ne.s32.totalorder %s10564_s23, 0 }
  0x68   : > { %6639 = dma.done.wait (%p10571_p3), [#allocation6], 3072  }
  0x69   : > { %6641 = vsyncadd (%p10571_p3), [#allocation6], 4294964224  ;;  %vm278_vm0 = vcmask 322560   ;;  %v10385_v0 = vmov 0   ;;  %v301_v1 = vld [vmem:[%s6869_s13 + $0x10] sm:$0xff]  ;;  %v299_v2 = vld [vmem:[%s6869_s13] sm:$0xff] }
  0x6a   : > { %285 = vst.msk [vmem:[#allocation2 + $0x18] sm:$0xf] %vm278_vm0, %v10385_v0  ;;  %279 = vst.msk [vmem:[#allocation2] sm:$0xf] %vm278_vm0, %v10385_v0  ;;  %5598 = vmatprep.mubr.bf16.mxu0 %v10385_v0  ;;  %6495 = vset.pattern.permute.xlu1 %v10385_v0  ;;  %v300_v3 = vld [vmem:[%s6869_s13 + $0x8] sm:$0xff]  ;;  %v6275_v4 = vpack.c.bf16 %v301_v1, %v301_v1  ;;  %v6273_v5 = vpack.c.bf16 %v299_v2, %v299_v2  ;;  %v303_v7 = vld [vmem:[%s6869_s13 + $0x20] sm:$0xff] }
  0x6b   : > { %280 = vst.msk [vmem:[#allocation2 + $0x4] sm:$0xf] %vm278_vm0, %v10385_v0  ;;  %281 = vst.msk [vmem:[#allocation2 + $0x8] sm:$0xf] %vm278_vm0, %v10385_v0  ;;  %6494 = vset.pattern.permute.xlu0 %v10385_v0  ;;  %v6274_v6 = vpack.c.bf16 %v300_v3, %v300_v3  ;;  %v302_v8 = vld [vmem:[%s6869_s13 + $0x18] sm:$0xff]  ;;  %v6277_v9 = vpack.c.bf16 %v303_v7, %v303_v7  ;;  %v304_v11 = vld [vmem:[%s6869_s13 + $0x28] sm:$0xff] }
  0x6c   : > { %282 = vst.msk [vmem:[#allocation2 + $0xc] sm:$0xf] %vm278_vm0, %v10385_v0  ;;  %283 = vst.msk [vmem:[#allocation2 + $0x10] sm:$0xf] %vm278_vm0, %v10385_v0  ;;  %v6276_v10 = vpack.c.bf16 %v302_v8, %v302_v8  ;;  %v339_v12 = vrot.slane %v6275_v4, 6  ;;  %v334_v13 = vrot.slane %v6273_v5, 6  ;;  %v6278_v18 = vpack.c.bf16 %v304_v11, %v304_v11 }
  0x6d   : > { %284 = vst.msk [vmem:[#allocation2 + $0x14] sm:$0xf] %vm278_vm0, %v10385_v0  ;;  %286 = vst.msk [vmem:[#allocation2 + $0x1c] sm:$0xf] %vm278_vm0, %v10385_v0  ;;  %v336_v14 = vrot.slane %v6274_v6, 6  ;;  %vm331_vm1 = vcmask 1041408  }
  0x6e   : > { %287 = vst.msk [vmem:[#allocation2 + $0x20] sm:$0xf] %vm278_vm0, %v10385_v0  ;;  %288 = vst.msk [vmem:[#allocation2 + $0x24] sm:$0xf] %vm278_vm0, %v10385_v0  ;;  %vm332_vm2 = vcmask 1045508   ;;  %s6664_s23 = smov 12  }
  0x6f   : > { %289 = vst.msk [vmem:[#allocation2 + $0x28] sm:$0xf] %vm278_vm0, %v10385_v0  ;;  %290 = vst.msk [vmem:[#allocation2 + $0x2c] sm:$0xf] %vm278_vm0, %v10385_v0  ;;  %360 = vrot.lane.b32.xlu1 %v339_v12, %s6664_s23  ;;  %354 = vrot.lane.b32.xlu0 %v334_v13, %s6664_s23  ;;  %v338_v15 = vrot.slane %v336_v14, 4  ;;  %v344_v16 = vrot.slane %v6277_v9, 6 }
  0x70   : > { %291 = vst.msk [vmem:[#allocation2 + $0x30] sm:$0xf] %vm278_vm0, %v10385_v0  ;;  %292 = vst.msk [vmem:[#allocation2 + $0x34] sm:$0xf] %vm278_vm0, %v10385_v0  ;;  %v341_v17 = vrot.slane %v6276_v10, 6  ;;  %v335_v19 = vrot.slane %v334_v13, 4 }
  0x71   : > { %293 = vst.msk [vmem:[#allocation2 + $0x38] sm:$0xf] %vm278_vm0, %v10385_v0  ;;  %294 = vst.msk [vmem:[#allocation2 + $0x3c] sm:$0xf] %vm278_vm0, %v10385_v0  ;;  %v305_v21 = vld [vmem:[%s6869_s13 + $0x30] sm:$0xff]  ;;  %v306_v22 = vld [vmem:[%s6869_s13 + $0x38] sm:$0xff] }
  0x72   : > { %295 = vst.msk [vmem:[#allocation2 + $0x40] sm:$0xf] %vm278_vm0, %v10385_v0  ;;  %296 = vst.msk [vmem:[#allocation2 + $0x44] sm:$0xf] %vm278_vm0, %v10385_v0  ;;  %v343_v23 = vrot.slane %v341_v17, 4  ;;  %v346_v24 = vrot.slane %v6278_v18, 6  ;;  %v6279_v28 = vpack.c.bf16 %v305_v21, %v305_v21  ;;  %v6280_v29 = vpack.c.bf16 %v306_v22, %v306_v22 }
  0x73   : > { %297 = vst.msk [vmem:[#allocation2 + $0x48] sm:$0xf] %vm278_vm0, %v10385_v0  ;;  %298 = vst.msk [vmem:[#allocation2 + $0x4c] sm:$0xf] %vm278_vm0, %v10385_v0  ;;  %358 = vrot.lane.b32.xlu1 %v338_v15, %s6664_s23  ;;  %366 = vrot.lane.b32.xlu0 %v344_v16, %s6664_s23  ;;  %v340_v25 = vrot.slane %v339_v12, 4  ;;  %v345_v26 = vrot.slane %v344_v16, 4  ;;  %v501_v15 = vlaneseq }
  0x74   : > { %vm6931_vm3 = vmor %vm331_vm1, %vm332_vm2  ;;  %v349_v32 = vrot.slane %v6279_v28, 6  ;;  %v348_v33 = vrot.slane %v346_v24, 4  ;;  %v351_v34 = vrot.slane %v6280_v29, 6  ;;  %vm390_vm4 = vcmask 224354   ;;  %v740_v42 = vld [vmem:[#allocation2] sm:$0x8] }
  0x75   : > { %v337_v27 = vsel %vm6931_vm3, %v335_v19, %v336_v14  ;;  %v347_v30 = vsel %vm6931_vm3, %v345_v26, %v346_v24  ;;  %v342_v31 = vsel %vm6931_vm3, %v340_v25, %v341_v17  ;;  %vm394_vm5 = vcmask 222304   ;;  %v743_v49 = vld [vmem:[#allocation2 + $0x14] sm:$0x8]  ;;  %s6665_s24 = smov 110   ;;  %s6666_s25 = smov 122  }
  0x76   : > { %v350_v35 = vrot.slane %v349_v32, 4  ;;  %v353_v36 = vrot.slane %v351_v34, 4  ;;  %vm764_vm6 = vcmask 1040384   ;;  %vm765_vm7 = vcmask 1044484   ;;  %v746_v45 = vld [vmem:[#allocation2 + $0x28] sm:$0x8] }
  0x77   : > { %364 = vrot.lane.b32.xlu1 %v343_v23, %s6664_s23  ;;  %356 = vrot.lane.b32.xlu0 %v337_v27, %s6664_s23  ;;  %vm392_vm8 = vcmask 224352   ;;  %vm6959_vm9 = vmor %vm764_vm6, %vm765_vm7  ;;  %v6010_v44 = vrot.slane %v740_v42, 11  ;;  %v6012_v53 = vrot.slane %v746_v45, 11  ;;  %v6011_v54 = vrot.slane %v743_v49, 11  ;;  %s6668_s14 = smov 116   ;;  %s6669_s15 = smov 104  }
  0x78   : > { %v352_v37 = vsel %vm6931_vm3, %v350_v35, %v351_v34  ;;  %v749_v9 = vld [vmem:[#allocation2 + $0x3c] sm:$0x8]  ;;  %v6667_v17 = vmov 1983009808   ;;  %v7027_v26 = vshrl.u32 %v501_v15, 7  ;;  %vm2199_vm10 = vcmask 1042432  }
  0x79   : > { %v6013_v14 = vrot.slane %v749_v9, 11  ;;  %v499_v18 = vunpack.c.l.s4 %v6667_v17  ;;  %vm2200_vm11 = vcmask 1046532   ;;  %s6671_s7 = smov 16   ;;  %s6672_s8 = smov 32   ;;  %vm703_vm13 = vcmask 130048  }
  0x7a   : > { %vm7169_vm12 = vmor %vm2199_vm10, %vm2200_vm11  ;;  %s6673_s9 = smov 48   ;;  %s6674_s27 = smov 64   ;;  %vm707_vm14 = vcmask 261120   ;;  %vm710_vm15 = vcmask 392192   ;;  %vm713_vm0 = vcmask 523264   ;;  %vm716_vm2 = vcmask 654336  }
  0x7b   : > { %368 = vrot.lane.b32.xlu1 %v347_v30, %s6664_s23  ;;  %362 = vrot.lane.b32.xlu0 %v342_v31, %s6664_s23  ;;  %v500_v30 = vunpack.c.0.s8 %v499_v18  ;;  %s6675_s18 = smov 80   ;;  %s6676_s26 = smov 96   ;;  %vm5292_vm6 = vcmask 1045504   ;;  %vm5531_vm7 = vcmask 556032  }
  0x7c   : > { %s6677_s16 = smov 112  }
  0x7f   : > { %372 = vrot.lane.b32.xlu1 %v349_v32, %s6664_s23  ;;  %370 = vrot.lane.b32.xlu0 %v348_v33, %s6664_s23 }
  0x83   : > { %376 = vrot.lane.b32.xlu1 %v353_v36, %s6664_s23  ;;  %374 = vrot.lane.b32.xlu0 %v352_v37, %s6664_s23 }
  0xe1   : > { %v361_v38 = vpop.permute.xlu1 %360  ;;  %v355_v39 = vpop.permute.xlu0 %354 }
  0xe2   : > { %396 = vst.msk [vmem:[#allocation2 + $0x18] sm:$0xc] %vm390_vm4, %v361_v38  ;;  %391 = vst.msk [vmem:[#allocation2 + $0x4] sm:$0xc] %vm390_vm4, %v355_v39 }
  0xe5   : > { %v359_v40 = vpop.permute.xlu1 %358  ;;  %v367_v41 = vpop.permute.xlu0 %366 }
  0xe6   : > { %395 = vst.msk [vmem:[#allocation2 + $0xc] sm:$0x3] %vm394_vm5, %v359_v40 }
  0xe7   : > { %399 = vst.msk [vmem:[#allocation2 + $0x2c] sm:$0xc] %vm390_vm4, %v367_v41 }
  0xe9   : > { %v365_v46 = vpop.permute.xlu1 %364  ;;  %v357_v47 = vpop.permute.xlu0 %356  ;;  %v6963_v48 = vld [vmem:[#allocation2 + $0x4] sm:$0xf]  ;;  %v6965_v50 = vld [vmem:[#allocation2 + $0x18] sm:$0xf] }
  0xea   : > { %398 = vst.msk [vmem:[#allocation2 + $0x20] sm:$0x3] %vm394_vm5, %v365_v46  ;;  %v769_v51 = vrot.slane %v6963_v48, 7  ;;  %v776_v55 = vrot.slane %v6965_v50, 7  ;;  %v3077_v22 = vshrl.u32 %v6963_v48, 16  ;;  %v3078_v23 = vshrl.u32 %v6965_v50, 16 }
  0xeb   : > { %393 = vst.msk [vmem:[#allocation2 + $0x8] sm:$0xf] %vm392_vm8, %v357_v47  ;;  %v405_v9 = vld [vmem:[#allocation2 + $0x4] sm:$0xc] }
  0xec   : > { %v6972_v52 = vsel %vm6959_vm9, %v6010_v44, %v769_v51  ;;  %v6990_v61 = vsel %vm6959_vm9, %v6011_v54, %v776_v55  ;;  %v771_v2 = vrot.slane %v769_v51, 4  ;;  %v778_v10 = vrot.slane %v776_v55, 4 }
  0xed   : > { %v369_v56 = vpop.permute.xlu1 %368  ;;  %v363_v57 = vpop.permute.xlu0 %362  ;;  %1347 = vrot.lane.b32.xlu1 %v6972_v52, %s6665_s24  ;;  %795 = vrot.lane.b32.xlu0 %v6972_v52, %s6666_s25  ;;  %v3079_v37 = vpack.i.b16 %v3078_v23, %v3077_v22  ;;  %v7049_v44 = vsub.s32 %v500_v30, %v7027_v26  ;;  %v5992_v23 = vrot.slane %v405_v9, 10 }
  0xee   : > { %v6979_v58 = vld [vmem:[#allocation2 + $0x2c] sm:$0xf]  ;;  %400 = vst.msk [vmem:[#allocation2 + $0x30] sm:$0xf] %vm392_vm8, %v369_v56  ;;  %397 = vst.msk [vmem:[#allocation2 + $0x1c] sm:$0xf] %vm392_vm8, %v363_v57 }
  0xef   : > { %v783_v59 = vrot.slane %v6979_v58, 7  ;;  %v3083_v38 = vshrl.u32 %v6979_v58, 16 }
  0xf1   : > { %v6986_v60 = vsel %vm6959_vm9, %v6012_v53, %v783_v59  ;;  %v373_v62 = vpop.permute.xlu1 %372  ;;  %v371_v63 = vpop.permute.xlu0 %370  ;;  %799 = vrot.lane.b32.xlu0 %v6990_v61, %s6666_s25  ;;  %v785_v19 = vrot.slane %v783_v59, 4  ;;  %v410_v51 = vld [vmem:[#allocation2 + $0x20] sm:$0x3]  ;;  %v7053_v53 = vrot.slane %v3079_v37, %v7049_v44 }
  0xf2   : > { %1355 = vrot.lane.b32.xlu1 %v6986_v60, %s6665_s24  ;;  %v742_v1 = vld [vmem:[#allocation2 + $0x8] sm:$0x7]  ;;  %402 = vst.msk [vmem:[#allocation2 + $0x40] sm:$0xc] %vm390_vm4, %v373_v62  ;;  %vm722_vm4 = vcmask 916480  }
  0xf3   : > { %401 = vst.msk [vmem:[#allocation2 + $0x34] sm:$0x3] %vm394_vm5, %v371_v63  ;;  %v772_v3 = vrot.slane %v742_v1, 7  ;;  %v7035_v33 = vld [vmem:[#allocation2 + $0x8] sm:$0xf]  ;;  %10576 = vst [vmem:[#allocation10_spill] sm:$0xff] %v7053_v53 }
  0xf4   : > { %v431_v46 = vrot.slane %v7035_v33, 6  ;;  %v441_v63 = vrot.slane %v410_v51, 6 }
  0xf5   : > { %v7000_v4 = vsel %vm6959_vm9, %v771_v2, %v772_v3  ;;  %v377_v5 = vpop.permute.xlu1 %376  ;;  %v375_v6 = vpop.permute.xlu0 %374  ;;  %803 = vrot.lane.b32.xlu0 %v6986_v60, %s6666_s25  ;;  %v745_v7 = vld [vmem:[#allocation2 + $0x1c] sm:$0x7]  ;;  %v748_v8 = vld [vmem:[#allocation2 + $0x30] sm:$0x7]  ;;  %v408_v3 = vld [vmem:[#allocation2 + $0x18] sm:$0xc] }
  0xf6   : > { %797 = vrot.lane.b32.xlu1 %v7000_v4, %s6666_s25  ;;  %404 = vst.msk [vmem:[#allocation2 + $0x48] sm:$0x3] %vm394_vm5, %v377_v5  ;;  %v779_v11 = vrot.slane %v745_v7, 7  ;;  %v786_v13 = vrot.slane %v748_v8, 7  ;;  %v7033_v28 = vld [vmem:[#allocation2 + $0x1c] sm:$0xf] }
  0xf7   : > { %403 = vst.msk [vmem:[#allocation2 + $0x44] sm:$0xf] %vm392_vm8, %v375_v6  ;;  %v412_v35 = vld [vmem:[#allocation2 + $0x30] sm:$0xf]  ;;  %v438_v41 = vrot.slane %v7033_v28, 6  ;;  %v433_v62 = vrot.slane %v431_v46, 4 }
  0xf8   : > { %v7010_v12 = vsel %vm6959_vm9, %v778_v10, %v779_v11  ;;  %v7021_v24 = vsel %vm6959_vm9, %v785_v19, %v786_v13  ;;  %v445_v47 = vrot.slane %v412_v35, 6  ;;  %v411_v5 = vld [vmem:[#allocation2 + $0x2c] sm:$0xc]  ;;  %vm5287_vm5 = vcmask 1043456  }
  0xf9   : > { %v7014_v16 = vld [vmem:[#allocation2 + $0x40] sm:$0xf]  ;;  %v440_v55 = vrot.slane %v438_v41, 4  ;;  %v5994_v15 = vrot.slane %v411_v5, 10 }
  0xfa   : > { %801 = vrot.lane.b32.xlu1 %v7010_v12, %s6666_s25  ;;  %v790_v21 = vrot.slane %v7014_v16, 7  ;;  %v3084_v39 = vshrl.u32 %v7014_v16, 16  ;;  %v413_v42 = vld [vmem:[#allocation2 + $0x34] sm:$0x3]  ;;  %v414_v59 = vld [vmem:[#allocation2 + $0x40] sm:$0xc] }
  0xfb   : > { %v448_v56 = vrot.slane %v413_v42, 6  ;;  %v447_v1 = vrot.slane %v445_v47, 4  ;;  %v7070_v7 = vsel %vm6931_vm3, %v440_v55, %v441_v63  ;;  %v5995_v10 = vrot.slane %v414_v59, 10  ;;  %v7091_v19 = vld [vmem:[#allocation2 + $0x34] sm:$0xf] }
  0xfc   : > { %v7025_v25 = vsel %vm6959_vm9, %v6013_v14, %v790_v21  ;;  %v792_v31 = vrot.slane %v790_v21, 4  ;;  %v3085_v45 = vpack.i.b16 %v3084_v39, %v3083_v38  ;;  %10579 = vst [vmem:[#allocation13_spill] sm:$0xff] %v7070_v7  ;;  %v5993_v14 = vrot.slane %v408_v3, 10  ;;  %v7093_v21 = vld [vmem:[#allocation2 + $0x20] sm:$0xf] }
  0xfd   : > { %807 = vrot.lane.b32.xlu0 %v7025_v25, %s6666_s25  ;;  %v416_v36 = vld [vmem:[#allocation2 + $0x48] sm:$0x3]  ;;  %v7074_v8 = vsel %vm6931_vm3, %v447_v1, %v448_v56  ;;  %v7109_v30 = vsel %vm6931_vm3, %v5994_v15, %v445_v47  ;;  %v2181_v1 = vld [vmem:[#allocation2 + $0x30] sm:$0xe]  ;;  %v2218_v5 = vrot.slane %v7091_v19, 5 }
  0xfe   : > { %805 = vrot.lane.b32.xlu1 %v7021_v24, %s6666_s25  ;;  %v751_v27 = vld [vmem:[#allocation2 + $0x44] sm:$0x7]  ;;  %v455_v49 = vrot.slane %v416_v36, 6  ;;  %v7056_v54 = vrot.slane %v3085_v45, %v7049_v44  ;;  %10580 = vst [vmem:[#allocation14_spill] sm:$0xff] %v7074_v8  ;;  %v7080_v11 = vld [vmem:[#allocation2 + $0x48] sm:$0xf]  ;;  %v7118_v36 = vsel %vm6931_vm3, %v5992_v23, %v431_v46 }
  0xff   : > { %v415_v29 = vld [vmem:[#allocation2 + $0x44] sm:$0xf]  ;;  %v793_v32 = vrot.slane %v751_v27, 7  ;;  %v3899_v22 = vshrl.u32 %v7074_v8, 16  ;;  %v4427_v27 = vshrl.u32 %v7091_v19, 16  ;;  %v4428_v28 = vshrl.u32 %v7080_v11, 16 }
 0x100   : > { %v452_v34 = vrot.slane %v415_v29, 6  ;;  %10577 = vst [vmem:[#allocation11_spill] sm:$0xff] %v7056_v54  ;;  %v7105_v29 = vsel %vm6931_vm3, %v5993_v14, %v438_v41  ;;  %10584 = vst [vmem:[#allocation18_spill] sm:$0xff] %v7109_v30  ;;  %v3887_v42 = vshrl.u32 %v7109_v30, 16  ;;  %v3881_v46 = vshrl.u32 %v7118_v36, 16 }
 0x101   : > { %v7041_v40 = vsel %vm6959_vm9, %v792_v31, %v793_v32  ;;  %1071 = vrot.lane.b32.xlu0 %v6972_v52, %s6668_s14  ;;  %v407_v52 = vld [vmem:[#allocation2 + $0xc] sm:$0x3]  ;;  %10583 = vst [vmem:[#allocation17_spill] sm:$0xff] %v7105_v29  ;;  %10585 = vst [vmem:[#allocation19_spill] sm:$0xff] %v7118_v36  ;;  %v4429_v39 = vpack.i.b16 %v4428_v28, %v4427_v27  ;;  %v3882_v41 = vshrl.u32 %v7105_v29, 16  ;;  %v2211_v27 = vrot.slane %v7093_v21, 5 }
 0x102   : > { %809 = vrot.lane.b32.xlu1 %v7041_v40, %s6666_s25  ;;  %v454_v43 = vrot.slane %v452_v34, 4  ;;  %v434_v6 = vrot.slane %v407_v52, 6  ;;  %v7089_v18 = vsel %vm6931_vm3, %v5995_v10, %v452_v34  ;;  %v7111_v31 = vld [vmem:[#allocation2 + $0xc] sm:$0xf]  ;;  %v4422_v34 = vshrl.u32 %v7093_v21, 16 }
 0x103   : > { %10582 = vst [vmem:[#allocation16_spill] sm:$0xff] %v7089_v18  ;;  %v3888_v35 = vshrl.u32 %v7089_v18, 16  ;;  %v4421_v38 = vshrl.u32 %v7111_v31, 16  ;;  %v3883_v51 = vpack.i.b16 %v3882_v41, %v3881_v46  ;;  %v2177_v10 = vld [vmem:[#allocation2 + $0x10] sm:$0x1]  ;;  %v2213_v21 = vrot.slane %v2211_v27, 4 }
 0x104   : > { %v7066_v2 = vsel %vm6931_vm3, %v454_v43, %v455_v49  ;;  %v7085_v17 = vsel %vm6931_vm3, %v433_v62, %v434_v6  ;;  %v7135_v49 = vrot.slane %v4429_v39, %v7049_v44  ;;  %v6086_v6 = vrot.slane %v2181_v1, 9  ;;  %v2183_v15 = vld [vmem:[#allocation2 + $0x38] sm:$0x1]  ;;  %v2178_v19 = vld [vmem:[#allocation2 + $0x1c] sm:$0xe] }
 0x105   : > { %1075 = vrot.lane.b32.xlu0 %v6990_v61, %s6668_s14  ;;  %10578 = vst [vmem:[#allocation12_spill] sm:$0xff] %v7066_v2  ;;  %v3900_v13 = vshrl.u32 %v7066_v2, 16  ;;  %10581 = vst [vmem:[#allocation15_spill] sm:$0xff] %v7085_v17  ;;  %v3893_v32 = vshrl.u32 %v7085_v17, 16  ;;  %v4423_v20 = vpack.i.b16 %v4422_v34, %v4421_v38  ;;  %v3889_v47 = vpack.i.b16 %v3888_v35, %v3887_v42  ;;  %v2186_v38 = vld [vmem:[#allocation2 + $0x4c] sm:$0x1] }
 0x106   : > { %1073 = vrot.lane.b32.xlu1 %v7000_v4, %s6668_s14  ;;  %10588 = vst [vmem:[#allocation22_spill] sm:$0xff] %v7135_v49  ;;  %v7150_v52 = vrot.slane %v3883_v51, %v7049_v44  ;;  %v7184_v9 = vsel %vm7169_vm12, %v6086_v6, %v2218_v5  ;;  %v2207_v14 = vrot.slane %v2177_v10, 5  ;;  %v6085_v23 = vrot.slane %v2178_v19, 9 }
 0x107   : > { %v3901_v33 = vpack.i.b16 %v3900_v13, %v3899_v22  ;;  %v7144_v55 = vrot.slane %v4423_v20, %v7049_v44  ;;  %v7147_v56 = vrot.slane %v3889_v47, %v7049_v44  ;;  %v2221_v22 = vrot.slane %v2183_v15, 5  ;;  %v3058_v15 = vld [vmem:[#allocation2] sm:$0xf] }
 0x108   : > { %10591 = vst [vmem:[#allocation25_spill] sm:$0xff] %v7150_v52  ;;  %v2225_v34 = vrot.slane %v7080_v11, 5  ;;  %v2180_v11 = vld [vmem:[#allocation2 + $0x24] sm:$0x1]  ;;  %v2228_v42 = vrot.slane %v2186_v38, 5  ;;  %vm719_vm3 = vcmask 785408  }
 0x109   : > { %1079 = vrot.lane.b32.xlu0 %v6986_v60, %s6668_s14  ;;  %v3894_v60 = vshrl.u32 %v7070_v7, 16  ;;  %v7128_v45 = vrot.slane %v3901_v33, %v7049_v44  ;;  %10589 = vst [vmem:[#allocation23_spill] sm:$0xff] %v7144_v55  ;;  %10590 = vst [vmem:[#allocation24_spill] sm:$0xff] %v7147_v56  ;;  %v6670_v59 = vmov 1934713408  }
 0x10a   : > { %1077 = vrot.lane.b32.xlu1 %v7010_v12, %s6668_s14  ;;  %v2227_v41 = vrot.slane %v2225_v34, 4 }
 0x10b   : > { %v3895_v37 = vpack.i.b16 %v3894_v60, %v3893_v32  ;;  %10586 = vst [vmem:[#allocation20_spill] sm:$0xff] %v7128_v45  ;;  %v2220_v60 = vrot.slane %v2218_v5, 4  ;;  %v7208_v32 = vsel %vm7169_vm12, %v6085_v23, %v2211_v27  ;;  %v3061_v27 = vld [vmem:[#allocation2 + $0x3c] sm:$0xf] }
 0x10c   : > { %v2229_v20 = vsel %vm7169_vm12, %v2227_v41, %v2228_v42 }
 0x10d   : > { %1083 = vrot.lane.b32.xlu0 %v7025_v25, %s6668_s14  ;;  %v7132_v43 = vrot.slane %v3895_v37, %v7049_v44  ;;  %v2222_v28 = vsel %vm7169_vm12, %v2220_v60, %v2221_v22  ;;  %v2214_v37 = vrot.slane %v2180_v11, 5  ;;  %v3059_v22 = vld [vmem:[#allocation2 + $0x14] sm:$0xf] }
 0x10e   : > { %1081 = vrot.lane.b32.xlu1 %v7021_v24, %s6668_s14 }
 0x10f   : > { %10587 = vst [vmem:[#allocation21_spill] sm:$0xff] %v7132_v43  ;;  %v2215_v39 = vsel %vm7169_vm12, %v2213_v21, %v2214_v37 }
 0x111   : > { %1351 = vrot.lane.b32.xlu0 %v6990_v61, %s6665_s24 }
 0x112   : > { %1085 = vrot.lane.b32.xlu1 %v7041_v40, %s6668_s14 }
 0x115   : > { %1359 = vrot.lane.b32.xlu0 %v7025_v25, %s6665_s24  ;;  %v2175_v25 = vld [vmem:[#allocation2 + $0x8] sm:$0xe] }
 0x116   : > { %1349 = vrot.lane.b32.xlu1 %v7000_v4, %s6665_s24  ;;  %v6084_v62 = vrot.slane %v2175_v25, 9 }
 0x119   : > { %457 = vrot.lane.b32.xlu0 %v7118_v36, %s6668_s14 }
 0x11a   : > { %1357 = vrot.lane.b32.xlu1 %v7021_v24, %s6665_s24  ;;  %v2204_v24 = vrot.slane %v7111_v31, 5 }
 0x11c   : > { %v7175_v3 = vsel %vm7169_vm12, %v6084_v62, %v2204_v24  ;;  %v2206_v13 = vrot.slane %v2204_v24, 4 }
 0x11d   : > { %461 = vrot.lane.b32.xlu0 %v7105_v29, %s6668_s14 }
 0x11e   : > { %1899 = vrot.lane.b32.xlu1 %v7118_v36, %s6665_s24 }
 0x121   : > { %465 = vrot.lane.b32.xlu0 %v7109_v30, %s6668_s14 }
 0x122   : > { %1907 = vrot.lane.b32.xlu1 %v7109_v30, %s6665_s24 }
 0x125   : > { %469 = vrot.lane.b32.xlu0 %v7089_v18, %s6668_s14 }
 0x126   : > { %2230 = vrot.lane.b32.xlu1 %v7175_v3, %s6666_s25 }
 0x129   : > { %1353 = vrot.lane.b32.xlu0 %v7010_v12, %s6665_s24  ;;  %v2208_v12 = vsel %vm7169_vm12, %v2206_v13, %v2207_v14 }
 0x12a   : > { %2238 = vrot.lane.b32.xlu1 %v7184_v9, %s6666_s25 }
 0x12d   : > { %1361 = vrot.lane.b32.xlu0 %v7041_v40, %s6665_s24  ;;  %v2184_v40 = vld [vmem:[#allocation2 + $0x44] sm:$0xe] }
 0x12e   : > { %1623 = vrot.lane.b32.xlu1 %v7118_v36, %s6666_s25  ;;  %v6087_v33 = vrot.slane %v2184_v40, 9 }
 0x130   : > { %v7216_v35 = vsel %vm7169_vm12, %v6087_v33, %v2225_v34 }
 0x131   : > { %1903 = vrot.lane.b32.xlu0 %v7105_v29, %s6665_s24 }
 0x132   : > { %1631 = vrot.lane.b32.xlu1 %v7109_v30, %s6666_s25 }
 0x135   : > { %1911 = vrot.lane.b32.xlu0 %v7089_v18, %s6665_s24 }
 0x136   : > { %2232 = vrot.lane.b32.xlu1 %v2208_v12, %s6666_s25 }
 0x139   : > { %2234 = vrot.lane.b32.xlu0 %v7208_v32, %s6666_s25 }
 0x13a   : > { %2240 = vrot.lane.b32.xlu1 %v2222_v28, %s6666_s25 }
 0x13d   : > { %2242 = vrot.lane.b32.xlu0 %v7216_v35, %s6666_s25 }
 0x13e   : > { %2508 = vrot.lane.b32.xlu1 %v2208_v12, %s6668_s14 }
 0x141   : > { %1627 = vrot.lane.b32.xlu0 %v7105_v29, %s6666_s25 }
 0x142   : > { %2516 = vrot.lane.b32.xlu1 %v2222_v28, %s6668_s14 }
 0x145   : > { %1635 = vrot.lane.b32.xlu0 %v7089_v18, %s6666_s25 }
 0x146   : > { %459 = vrot.lane.b32.xlu1 %v7085_v17, %s6668_s14 }
 0x149   : > { %2236 = vrot.lane.b32.xlu0 %v2215_v39, %s6666_s25 }
 0x14a   : > { %463 = vrot.lane.b32.xlu1 %v7070_v7, %s6668_s14 }
 0x14d   : > { %2244 = vrot.lane.b32.xlu0 %v2229_v20, %s6666_s25 }
 0x14e   : > { %467 = vrot.lane.b32.xlu1 %v7074_v8, %s6668_s14 }
 0x151   : > { %2512 = vrot.lane.b32.xlu0 %v2215_v39, %s6668_s14 }
 0x152   : > { %471 = vrot.lane.b32.xlu1 %v7066_v2, %s6668_s14 }
 0x155   : > { %2520 = vrot.lane.b32.xlu0 %v2229_v20, %s6668_s14 }
 0x156   : > { %1901 = vrot.lane.b32.xlu1 %v7085_v17, %s6665_s24 }
 0x159   : > { %1905 = vrot.lane.b32.xlu0 %v7070_v7, %s6665_s24 }
 0x15a   : > { %1909 = vrot.lane.b32.xlu1 %v7074_v8, %s6665_s24 }
 0x15d   : > { %1913 = vrot.lane.b32.xlu0 %v7066_v2, %s6665_s24 }
 0x15e   : > { %1625 = vrot.lane.b32.xlu1 %v7085_v17, %s6666_s25 }
 0x15f   : > { %v7252_v46 = vpop.permute.xlu1 %1347  ;;  %v7254_v47 = vpop.permute.xlu0 %795 }
 0x161   : > { %1629 = vrot.lane.b32.xlu0 %v7070_v7, %s6666_s25 }
 0x162   : > { %1633 = vrot.lane.b32.xlu1 %v7074_v8, %s6666_s25 }
 0x163   : > { %v7262_v25 = vpop.permute.xlu0 %799 }
 0x164   : > { %v7260_v51 = vpop.permute.xlu1 %1355  ;;  %v815_v41 = vshrl.u32 %v7262_v25, 16  ;;  %v813_v0 = vpack.i.b16 %v7262_v25, %v7254_v47 }
 0x165   : > { %1637 = vrot.lane.b32.xlu0 %v7066_v2, %s6666_s25  ;;  %s5981_s25 = sshll.u32 %s5968_s22, 2 }
 0x166   : > { %2506 = vrot.lane.b32.xlu1 %v7175_v3, %s6668_s14  ;;  %p271_p7 = scmp.lt.s32.totalorder %s5981_s25, 7 }
 0x167   : > { %v804_v24 = vpop.permute.xlu0 %803 }
 0x168   : > { %v7268_v62 = vpop.permute.xlu1 %797  ;;  %s11089_s25 = smov (!%p271_p7, %s5981_s25), 7 }
 0x169   : > { %2510 = vrot.lane.b32.xlu0 %v7208_v32, %s6668_s14 }
 0x16a   : > { %2514 = vrot.lane.b32.xlu1 %v7184_v9, %s6668_s14 }
 0x16c   : > { %v7274_v63 = vpop.permute.xlu1 %801 }
 0x16d   : > { %2518 = vrot.lane.b32.xlu0 %v7216_v35, %s6668_s14 }
 0x16e   : > { %3328 = vrot.lane.b32.xlu1 %v6963_v48, %s6668_s14 }
 0x16f   : > { %v808_v5 = vpop.permute.xlu0 %807 }
 0x170   : > { %v7280_v1 = vpop.permute.xlu1 %805 }
 0x171   : > { %3332 = vrot.lane.b32.xlu0 %v6965_v50, %s6668_s14 }
 0x172   : > { %3336 = vrot.lane.b32.xlu1 %v6979_v58, %s6668_s14 }
 0x173   : > { %v7288_v10 = vpop.permute.xlu0 %1071 }
 0x174   : > { %v7286_v6 = vpop.permute.xlu1 %809 }
 0x175   : > { %3340 = vrot.lane.b32.xlu0 %v7014_v16, %s6668_s14 }
 0x176   : > { %2784 = vrot.lane.b32.xlu1 %v2208_v12, %s6665_s24  ;;  %v3060_v12 = vld [vmem:[#allocation2 + $0x28] sm:$0xf] }
 0x177   : > { %v7295_v14 = vpop.permute.xlu0 %1075 }
 0x178   : > { %v7293_v13 = vpop.permute.xlu1 %1073 }
 0x179   : > { %2788 = vrot.lane.b32.xlu0 %v2215_v39, %s6665_s24 }
 0x17a   : > { %2792 = vrot.lane.b32.xlu1 %v2222_v28, %s6665_s24 }
 0x17b   : > { %v7301_v60 = vpop.permute.xlu0 %1079 }
 0x17c   : > { %v7299_v19 = vpop.permute.xlu1 %1077 }
 0x17d   : > { %2796 = vrot.lane.b32.xlu0 %v2229_v20, %s6665_s24 }
 0x17e   : > { %3326 = vrot.lane.b32.xlu1 %v3058_v15, %s6668_s14 }
 0x17f   : > { %v7307_v40 = vpop.permute.xlu0 %1083 }
 0x180   : > { %v7305_v23 = vpop.permute.xlu1 %1081 }
 0x181   : > { %3330 = vrot.lane.b32.xlu0 %v3059_v22, %s6668_s14 }
 0x182   : > { %3334 = vrot.lane.b32.xlu1 %v3060_v12, %s6668_s14 }
 0x183   : > { %v7313_v33 = vpop.permute.xlu0 %1351 }
 0x184   : > { %v7311_v28 = vpop.permute.xlu1 %1085 }
 0x185   : > { %3338 = vrot.lane.b32.xlu0 %v3061_v27, %s6668_s14 }
 0x186   : > { %3604 = vrot.lane.b32.xlu1 %v6963_v48, %s6669_s15  ;;  %v821_v48 = vshrl.u32 %v808_v5, 16 }
 0x187   : > { %v7320_v11 = vpop.permute.xlu0 %1359 }
 0x188   : > { %v7318_v34 = vpop.permute.xlu1 %1349 }
 0x189   : > { %3608 = vrot.lane.b32.xlu0 %v6965_v50, %s6669_s15  ;;  %v820_v50 = vshrl.u32 %v804_v24, 16 }
 0x18a   : > { %3612 = vrot.lane.b32.xlu1 %v6979_v58, %s6669_s15  ;;  %v814_v58 = vshrl.u32 %v7254_v47, 16 }
 0x18b   : > { %v7328_v37 = vpop.permute.xlu0 %457  ;;  %v822_v42 = vpack.i.b16 %v821_v48, %v820_v50  ;;  %v842_v48 = vrot.slane %v813_v0, %v7049_v44 }
 0x18c   : > { %v7326_v21 = vpop.permute.xlu1 %1357  ;;  %v816_v4 = vpack.i.b16 %v815_v41, %v814_v58 }
 0x18d   : > { %3616 = vrot.lane.b32.xlu0 %v7014_v16, %s6669_s15 }
 0x18e   : > { %2782 = vrot.lane.b32.xlu1 %v7175_v3, %s6665_s24  ;;  %v819_v3 = vpack.i.b16 %v808_v5, %v804_v24  ;;  %v876_v47 = vrot.slane %v816_v4, %v7049_v44 }
 0x18f   : > { %v7336_v39 = vpop.permute.xlu0 %461 }
 0x190   : > { %v7334_v38 = vpop.permute.xlu1 %1899  ;;  %v850_v61 = vrot.slane %v819_v3, %v7049_v44 }
 0x191   : > { %2786 = vrot.lane.b32.xlu0 %v7208_v32, %s6665_s24  ;;  %v884_v32 = vrot.slane %v822_v42, %v7049_v44 }
 0x192   : > { %2790 = vrot.lane.b32.xlu1 %v7184_v9, %s6665_s24  ;;  %v516_v9 = vunpack.c.l.s4 %v6670_v59  ;;  %v852_v4 = vcombine.high %v842_v48, %v850_v61 }
 0x193   : > { %v7346_v16 = vpop.permute.xlu0 %465 }
 0x194   : > { %v7344_v20 = vpop.permute.xlu1 %1907  ;;  %v517_v25 = vunpack.c.0.s8 %v516_v9  ;;  %v1090_v9 = vshrl.u32 %v7288_v10, 16 }
 0x195   : > { %2794 = vrot.lane.b32.xlu0 %v7216_v35, %s6665_s24  ;;  %v851_v35 = vcombine.low %v842_v48, %v850_v61  ;;  %v1096_v61 = vshrl.u32 %v7301_v60, 16 }
 0x196   : > { %3602 = vrot.lane.b32.xlu1 %v3058_v15, %s6669_s15  ;;  %v885_v15 = vcombine.low %v876_v47, %v884_v32  ;;  %v7371_v0 = vsub.s32 %v517_v25, %v7027_v26  ;;  %v1091_v26 = vshrl.u32 %v7295_v14, 16 }
 0x197   : > { %v7357_v5 = vpop.permute.xlu0 %469 }
 0x198   : > { %v7355_v24 = vpop.permute.xlu1 %2230  ;;  %v893_v3 = vrot.slane %v885_v15, %v7371_v0  ;;  %v7382_v42 = vrot.slane %v851_v35, %v7371_v0  ;;  %v866_v48 = vrot.slane %v852_v4, %v7371_v0 }
 0x199   : > { %10594 = vst [vmem:[#allocation26_spill] sm:$0xff] %v7355_v24  ;;  %3606 = vrot.lane.b32.xlu0 %v3059_v22, %s6669_s15  ;;  %v1097_v22 = vshrl.u32 %v7307_v40, 16 }
 0x19a   : > { %3610 = vrot.lane.b32.xlu1 %v3060_v12, %s6669_s15  ;;  %v1095_v12 = vpack.i.b16 %v7307_v40, %v7301_v60  ;;  %10597 = vst [vmem:[#allocation29_spill] sm:$0xff] %v7382_v42  ;;  %v886_v40 = vcombine.high %v876_v47, %v884_v32  ;;  %v6289_v60 = vcombine.high %v7382_v42, %v7382_v42 }
 0x19b   : > { %v7365_v58 = vpop.permute.xlu0 %1353  ;;  %v1098_v25 = vpack.i.b16 %v1097_v22, %v1096_v61  ;;  %v6017_v47 = vcombine.low %v866_v48, %v866_v48 }
 0x19c   : > { %v7363_v59 = vpop.permute.xlu1 %2238  ;;  %v1126_v35 = vrot.slane %v1095_v12, %v7049_v44  ;;  %v900_v4 = vrot.slane %v886_v40, %v7371_v0  ;;  %v475_v40 = vpack.i.b16 %v7336_v39, %v7328_v37 }
 0x19d   : > { %10595 = vst [vmem:[#allocation27_spill] sm:$0xff] %v7363_v59  ;;  %3614 = vrot.lane.b32.xlu0 %v3061_v27, %s6669_s15  ;;  %v1089_v27 = vpack.i.b16 %v7295_v14, %v7288_v10  ;;  %v6014_v14 = vcombine.low %v893_v3, %v893_v3  ;;  %v1918_v10 = vshrl.u32 %v7334_v38, 16  ;;  %v7408_v22 = vrot.slane %v1098_v25, %v7049_v44 }
 0x19e   : > { %4140 = vrot.lane.b32.xlu1 %v7085_v17, %s6669_s15  ;;  %v1092_v17 = vpack.i.b16 %v1091_v26, %v1090_v9  ;;  %v6290_v9 = vcombine.high %v893_v3, %v893_v3  ;;  %v6291_v3 = vcombine.high %v866_v48, %v866_v48  ;;  %v827_v48 = vshrl.u32 %v7274_v63, 16 }
 0x19f   : > { %v7378_v50 = vpop.permute.xlu0 %1361  ;;  %v1118_v52 = vrot.slane %v1089_v27, %v7049_v44  ;;  %v481_v27 = vpack.i.b16 %v7357_v5, %v7346_v16  ;;  %v2255_v53 = vshrl.u32 %v7363_v59, 16 }
 0x1a0   : > { %v7376_v41 = vpop.permute.xlu1 %1623  ;;  %v7419_v56 = vrot.slane %v1092_v17, %v7049_v44 }
 0x1a1   : > { %10596 = vst [vmem:[#allocation28_spill] sm:$0xff] %v7376_v41  ;;  %4144 = vrot.lane.b32.xlu0 %v7070_v7, %s6669_s15  ;;  %v1127_v12 = vcombine.low %v1118_v52, %v1126_v35  ;;  %v1128_v43 = vcombine.high %v1118_v52, %v1126_v35  ;;  %v831_v35 = vpack.i.b16 %v7286_v6, %v7280_v1 }
 0x1a2   : > { %4148 = vrot.lane.b32.xlu1 %v7074_v8, %s6669_s15  ;;  %v6018_v8 = vcombine.low %v900_v4, %v900_v4 }
 0x1a3   : > { %v7397_v57 = vpop.permute.xlu0 %1903  ;;  %v7433_v55 = vrot.slane %v1127_v12, %v7371_v0  ;;  %v833_v12 = vshrl.u32 %v7286_v6, 16  ;;  %v832_v6 = vshrl.u32 %v7280_v1, 16  ;;  %v1162_v1 = vcombine.high %v7419_v56, %v7408_v22 }
 0x1a4   : > { %v7395_v15 = vpop.permute.xlu1 %1631  ;;  %v1919_v32 = vshrl.u32 %v7397_v57, 16 }
 0x1a5   : > { %10598 = vst [vmem:[#allocation30_spill] sm:$0xff] %v7395_v15  ;;  %974 = vrot.lane.b32.xlu0 %v6014_v14, %s6671_s7  ;;  %v1924_v14 = vshrl.u32 %v7344_v20, 16  ;;  %10600 = vst [vmem:[#allocation32_spill] sm:$0xff] %v7433_v55  ;;  %v6297_v42 = vcombine.high %v7433_v55, %v7433_v55 }
 0x1a6   : > { %979 = vrot.lane.b32.xlu1 %v6289_v60, %s6672_s8  ;;  %v1920_v60 = vpack.i.b16 %v1919_v32, %v1918_v10  ;;  %v1161_v32 = vcombine.low %v7419_v56, %v7408_v22  ;;  %v512_v10 = vrot.slane %v481_v27, %v7049_v44 }
 0x1a7   : > { %v7414_v61 = vpop.permute.xlu0 %1911 }
 0x1a8   : > { %v7412_v26 = vpop.permute.xlu1 %2232  ;;  %v1925_v7 = vshrl.u32 %v7414_v61, 16 }
 0x1a9   : > { %984 = vrot.lane.b32.xlu0 %v6290_v9, %s6673_s9  ;;  %v825_v9 = vpack.i.b16 %v7274_v63, %v7268_v62  ;;  %v826_v63 = vshrl.u32 %v7268_v62, 16 }
 0x1aa   : > { %989 = vrot.lane.b32.xlu1 %v6017_v47, %s6674_s27  ;;  %v1926_v25 = vpack.i.b16 %v1925_v7, %v1924_v14  ;;  %v7438_v7 = vrot.slane %v1920_v60, %v7049_v44  ;;  %v504_v47 = vrot.slane %v475_v40, %v7049_v44  ;;  %v2249_v14 = vshrl.u32 %v7355_v24, 16 }
 0x1ab   : > { %v7430_v45 = vpop.permute.xlu0 %2234  ;;  %v6292_v60 = vcombine.high %v900_v4, %v900_v4 }
 0x1ac   : > { %v7428_v17 = vpop.permute.xlu1 %2240  ;;  %10599 = vst [vmem:[#allocation31_spill] sm:$0xff] %v7430_v45  ;;  %v7441_v52 = vrot.slane %v1926_v25, %v7049_v44  ;;  %v2250_v27 = vshrl.u32 %v7430_v45, 16  ;;  %v513_v25 = vcombine.low %v504_v47, %v512_v10  ;;  %v918_v45 = vrot.slane %v831_v35, %v7049_v44 }
 0x1ad   : > { %994 = vrot.lane.b32.xlu0 %v6018_v8, %s6675_s18  ;;  %v1169_v8 = vrot.slane %v1161_v32, %v7371_v0  ;;  %v910_v32 = vrot.slane %v825_v9, %v7049_v44  ;;  %v514_v24 = vcombine.high %v504_v47, %v512_v10  ;;  %v1642_v10 = vshrl.u32 %v7376_v41, 16 }
 0x1ae   : > { %999 = vrot.lane.b32.xlu1 %v6291_v3, %s6676_s26  ;;  %v7462_v3 = vrot.slane %v1128_v43, %v7371_v0  ;;  %v2251_v54 = vpack.i.b16 %v2250_v27, %v2249_v14  ;;  %v834_v43 = vpack.i.b16 %v833_v12, %v832_v6 }
 0x1af   : > { %v7456_v40 = vpop.permute.xlu0 %2242  ;;  %v6028_v62 = vcombine.low %v1169_v8, %v1169_v8 }
 0x1b0   : > { %v7454_v49 = vpop.permute.xlu1 %2508  ;;  %10602 = vst [vmem:[#allocation34_spill] sm:$0xff] %v7456_v40  ;;  %10603 = vst [vmem:[#allocation35_spill] sm:$0xff] %v7462_v3  ;;  %v2256_v4 = vshrl.u32 %v7456_v40, 16  ;;  %v6031_v35 = vcombine.low %v7462_v3, %v7462_v3  ;;  %v7484_v9 = vrot.slane %v2251_v54, %v7049_v44  ;;  %v7493_v22 = vrot.slane %v834_v43, %v7049_v44 }
 0x1b1   : > { %10601 = vst [vmem:[#allocation33_spill] sm:$0xff] %v7454_v49  ;;  %1004 = vrot.lane.b32.xlu0 %v6292_v60, %s6677_s16  ;;  %v7481_v60 = vrot.slane %v513_v25, %v7371_v0  ;;  %v7499_v54 = vrot.slane %v1162_v1, %v7371_v0  ;;  %v6298_v25 = vcombine.high %v1169_v8, %v1169_v8 }
 0x1b2   : > { %1255 = vrot.lane.b32.xlu1 %v6297_v42, %s6672_s8  ;;  %v2257_v55 = vpack.i.b16 %v2256_v4, %v2255_v53  ;;  %v828_v42 = vpack.i.b16 %v827_v48, %v826_v63  ;;  %v919_v53 = vcombine.low %v910_v32, %v918_v45  ;;  %v528_v4 = vrot.slane %v514_v24, %v7371_v0 }
 0x1b3   : > { %v7476_v14 = vpop.permute.xlu0 %1627  ;;  %10606 = vst [vmem:[#allocation38_spill] sm:$0xff] %v7481_v60  ;;  %10607 = vst [vmem:[#allocation39_spill] sm:$0xff] %v7499_v54  ;;  %v6281_v6 = vcombine.high %v7481_v60, %v7481_v60  ;;  %v477_v48 = vshrl.u32 %v7336_v39, 16  ;;  %v920_v8 = vcombine.high %v910_v32, %v918_v45  ;;  %v6032_v39 = vcombine.low %v7499_v54, %v7499_v54 }
 0x1b4   : > { %v7474_v27 = vpop.permute.xlu1 %2516  ;;  %10605 = vst [vmem:[#allocation37_spill] sm:$0xff] %v7476_v14  ;;  %v7487_v12 = vrot.slane %v2257_v55, %v7049_v44  ;;  %v1643_v56 = vshrl.u32 %v7476_v14, 16  ;;  %v483_v55 = vshrl.u32 %v7357_v5, 16  ;;  %v944_v43 = vrot.slane %v828_v42, %v7049_v44 }
 0x1b5   : > { %10604 = vst [vmem:[#allocation36_spill] sm:$0xff] %v7474_v27  ;;  %1250 = vrot.lane.b32.xlu0 %v6028_v62, %s6671_s7  ;;  %v1648_v62 = vshrl.u32 %v7395_v15, 16  ;;  %v482_v5 = vshrl.u32 %v7346_v16, 16  ;;  %v7518_v24 = vrot.slane %v919_v53, %v7371_v0  ;;  %v476_v42 = vshrl.u32 %v7328_v37, 16 }
 0x1b6   : > { %1265 = vrot.lane.b32.xlu1 %v6031_v35, %s6674_s27  ;;  %v1644_v35 = vpack.i.b16 %v1643_v56, %v1642_v10  ;;  %v953_v60 = vcombine.low %v944_v43, %v7493_v22  ;;  %v5999_v16 = vcombine.low %v528_v4, %v528_v4  ;;  %v2261_v37 = vshrl.u32 %v7412_v26, 16 }
 0x1b7   : > { %v7504_v63 = vpop.permute.xlu0 %1635  ;;  %10609 = vst [vmem:[#allocation41_spill] sm:$0xff] %v7518_v24  ;;  %v484_v56 = vpack.i.b16 %v483_v55, %v482_v5  ;;  %v478_v32 = vpack.i.b16 %v477_v48, %v476_v42  ;;  %v6283_v48 = vcombine.high %v528_v4, %v528_v4  ;;  %v2267_v42 = vshrl.u32 %v7428_v17, 16 }
 0x1b8   : > { %v7502_v47 = vpop.permute.xlu1 %459  ;;  %10608 = vst [vmem:[#allocation40_spill] sm:$0xff] %v7504_v63  ;;  %v1649_v1 = vshrl.u32 %v7504_v63, 16  ;;  %v961_v5 = vrot.slane %v953_v60, %v7371_v0 }
 0x1b9   : > { %1260 = vrot.lane.b32.xlu0 %v6298_v25, %s6673_s9  ;;  %v7528_v25 = vrot.slane %v1644_v35, %v7049_v44  ;;  %v538_v55 = vrot.slane %v478_v32, %v7049_v44  ;;  %v488_v4 = vshrl.u32 %v7502_v47, 16 }
 0x1ba   : > { %641 = vrot.lane.b32.xlu1 %v6281_v6, %s6672_s8  ;;  %v1650_v14 = vpack.i.b16 %v1649_v1, %v1648_v62  ;;  %v934_v6 = vrot.slane %v920_v8, %v7371_v0  ;;  %v546_v62 = vrot.slane %v484_v56, %v7049_v44  ;;  %v954_v56 = vcombine.high %v944_v43, %v7493_v22 }
 0x1bb   : > { %v7523_v41 = vpop.permute.xlu0 %2236  ;;  %10610 = vst [vmem:[#allocation42_spill] sm:$0xff] %v7528_v25 }
 0x1bc   : > { %v7521_v10 = vpop.permute.xlu1 %463  ;;  %v7531_v45 = vrot.slane %v1650_v14, %v7049_v44  ;;  %v2262_v53 = vshrl.u32 %v7523_v41, 16  ;;  %v6293_v14 = vcombine.high %v7518_v24, %v7518_v24  ;;  %v547_v24 = vcombine.low %v538_v55, %v546_v62 }
 0x1bd   : > { %1270 = vrot.lane.b32.xlu0 %v6032_v39, %s6675_s18  ;;  %v489_v8 = vshrl.u32 %v7521_v10, 16 }
 0x1be   : > { %10611 = vst [vmem:[#allocation43_spill] sm:$0xff] %v7531_v45  ;;  %651 = vrot.lane.b32.xlu1 %v5999_v16, %s6674_s27  ;;  %v2263_v39 = vpack.i.b16 %v2262_v53, %v2261_v37  ;;  %v6024_v53 = vcombine.low %v934_v6, %v934_v6  ;;  %v6021_v37 = vcombine.low %v961_v5, %v961_v5 }
 0x1bf   : > { %v7541_v1 = vpop.permute.xlu0 %2244 }
 0x1c0   : > { %v468_v35 = vpop.permute.xlu1 %467  ;;  %v2268_v16 = vshrl.u32 %v7541_v1, 16  ;;  %v7557_v15 = vrot.slane %v2263_v39, %v7049_v44  ;;  %v2537_v39 = vshrl.u32 %v7454_v49, 16 }
 0x1c1   : > { %1014 = vrot.lane.b32.xlu0 %v6293_v14, %s6672_s8  ;;  %v490_v14 = vpack.i.b16 %v489_v8, %v488_v4  ;;  %v494_v25 = vshrl.u32 %v468_v35, 16  ;;  %v6294_v4 = vcombine.high %v961_v5, %v961_v5 }
 0x1c2   : > { %661 = vrot.lane.b32.xlu1 %v6283_v48, %s6676_s26  ;;  %v2269_v54 = vpack.i.b16 %v2268_v16, %v2267_v42  ;;  %v6295_v42 = vcombine.high %v934_v6, %v934_v6  ;;  %v968_v16 = vrot.slane %v954_v56, %v7371_v0 }
 0x1c3   : > { %v7554_v63 = vpop.permute.xlu0 %2512 }
 0x1c4   : > { %v472_v60 = vpop.permute.xlu1 %471  ;;  %10612 = vst [vmem:[#allocation44_spill] sm:$0xff] %v7554_v63  ;;  %v7560_v32 = vrot.slane %v2269_v54, %v7049_v44  ;;  %v2538_v22 = vshrl.u32 %v7554_v63, 16  ;;  %v555_v63 = vrot.slane %v547_v24, %v7371_v0  ;;  %v6025_v56 = vcombine.low %v968_v16, %v968_v16 }
 0x1c5   : > { %v495_v48 = vshrl.u32 %v472_v60, 16  ;;  %1024 = vrot.lane.b32.xlu0 %v6024_v53, %s6674_s27  ;;  %v2543_v53 = vshrl.u32 %v7474_v27, 16 }
 0x1c6   : > { %1009 = vrot.lane.b32.xlu1 %v6021_v37, %s6671_s7  ;;  %v606_v37 = vrot.slane %v490_v14, %v7049_v44  ;;  %v2539_v43 = vpack.i.b16 %v2538_v22, %v2537_v39  ;;  %v5996_v27 = vcombine.low %v555_v63, %v555_v63  ;;  %v6282_v39 = vcombine.high %v555_v63, %v555_v63 }
 0x1c7   : > { %v496_v45 = vpack.i.b16 %v495_v48, %v494_v25  ;;  %v7571_v8 = vpop.permute.xlu0 %2520  ;;  %v548_v25 = vcombine.high %v538_v55, %v546_v62  ;;  %v493_v48 = vpack.i.b16 %v472_v60, %v468_v35  ;;  %v6296_v35 = vcombine.high %v968_v16, %v968_v16 }
 0x1c8   : > { %v7569_v54 = vpop.permute.xlu1 %1901  ;;  %10613 = vst [vmem:[#allocation45_spill] sm:$0xff] %v7571_v8  ;;  %v2544_v6 = vshrl.u32 %v7571_v8, 16  ;;  %v7587_v14 = vrot.slane %v2539_v43, %v7049_v44 }
 0x1c9   : > { %v614_v3 = vrot.slane %v496_v45, %v7049_v44  ;;  %1034 = vrot.lane.b32.xlu0 %v6295_v42, %s6676_s26  ;;  %v487_v45 = vpack.i.b16 %v7521_v10, %v7502_v47  ;;  %v1930_v62 = vshrl.u32 %v7569_v54, 16  ;;  %v562_v60 = vrot.slane %v548_v25, %v7371_v0 }
 0x1ca   : > { %1019 = vrot.lane.b32.xlu1 %v6294_v4, %s6673_s9  ;;  %v2545_v5 = vpack.i.b16 %v2544_v6, %v2543_v53  ;;  %10614 = vst [vmem:[#allocation46_spill] sm:$0xff] %v7587_v14  ;;  %v580_v42 = vrot.slane %v493_v48, %v7049_v44  ;;  %v1372_v14 = vshrl.u32 %v7260_v51, 16 }
 0x1cb   : > { %v615_v49 = vcombine.low %v606_v37, %v614_v3  ;;  %v7582_v24 = vpop.permute.xlu0 %1905  ;;  %v572_v16 = vrot.slane %v487_v45, %v7049_v44  ;;  %v616_v48 = vcombine.high %v606_v37, %v614_v3  ;;  %v6000_v63 = vcombine.low %v562_v60, %v562_v60 }
 0x1cc   : > { %v7580_v40 = vpop.permute.xlu1 %1909  ;;  %v7590_v22 = vrot.slane %v2545_v5, %v7049_v44  ;;  %v1931_v55 = vshrl.u32 %v7582_v24, 16 }
 0x1cd   : > { %636 = vrot.lane.b32.xlu0 %v5996_v27, %s6671_s7  ;;  %v623_v4 = vrot.slane %v615_v49, %v7371_v0  ;;  %v1936_v27 = vshrl.u32 %v7580_v40, 16 }
 0x1ce   : > { %1029 = vrot.lane.b32.xlu1 %v6025_v56, %s6675_s18  ;;  %v1932_v53 = vpack.i.b16 %v1931_v55, %v1930_v62  ;;  %v581_v56 = vcombine.low %v572_v16, %v580_v42  ;;  %v6284_v62 = vcombine.high %v562_v60, %v562_v60 }
 0x1cf   : > { %v7602_v43 = vpop.permute.xlu0 %1913  ;;  %v6003_v49 = vcombine.low %v623_v4, %v623_v4 }
 0x1d0   : > { %v7600_v10 = vpop.permute.xlu1 %1625  ;;  %v1937_v6 = vshrl.u32 %v7602_v43, 16  ;;  %v7615_v8 = vrot.slane %v1932_v53, %v7049_v44  ;;  %v6286_v53 = vcombine.high %v623_v4, %v623_v4 }
 0x1d1   : > { %10615 = vst [vmem:[#allocation47_spill] sm:$0xff] %v7600_v10  ;;  %646 = vrot.lane.b32.xlu0 %v6282_v39, %s6673_s9  ;;  %v1654_v3 = vshrl.u32 %v7600_v10, 16 }
 0x1d2   : > { %1039 = vrot.lane.b32.xlu1 %v6296_v35, %s6677_s16  ;;  %v1938_v25 = vpack.i.b16 %v1937_v6, %v1936_v27  ;;  %v582_v35 = vcombine.high %v572_v16, %v580_v42  ;;  %v7631_v6 = vrot.slane %v581_v56, %v7371_v0 }
 0x1d3   : > { %v7612_v47 = vpop.permute.xlu0 %1629 }
 0x1d4   : > { %v7610_v5 = vpop.permute.xlu1 %1633  ;;  %10617 = vst [vmem:[#allocation49_spill] sm:$0xff] %v7612_v47  ;;  %v7618_v55 = vrot.slane %v1938_v25, %v7049_v44  ;;  %v1655_v45 = vshrl.u32 %v7612_v47, 16  ;;  %10620 = vst [vmem:[#allocation52_spill] sm:$0xff] %v7631_v6  ;;  %v630_v25 = vrot.slane %v616_v48, %v7371_v0  ;;  %v6285_v4 = vcombine.high %v7631_v6, %v7631_v6 }
 0x1d5   : > { %10616 = vst [vmem:[#allocation48_spill] sm:$0xff] %v7610_v5  ;;  %656 = vrot.lane.b32.xlu0 %v6000_v63, %s6675_s18  ;;  %v1660_v63 = vshrl.u32 %v7610_v5, 16  ;;  %v596_v48 = vrot.slane %v582_v35, %v7371_v0 }
 0x1d6   : > { %671 = vrot.lane.b32.xlu1 %v6003_v49, %s6671_s7  ;;  %v1656_v49 = vpack.i.b16 %v1655_v45, %v1654_v3  ;;  %v6007_v56 = vcombine.low %v630_v25, %v630_v25 }
 0x1d7   : > { %v7628_v27 = vpop.permute.xlu0 %1637 }
 0x1d8   : > { %v7626_v39 = vpop.permute.xlu1 %2506  ;;  %10619 = vst [vmem:[#allocation51_spill] sm:$0xff] %v7628_v27  ;;  %v1661_v59 = vshrl.u32 %v7628_v27, 16  ;;  %v7646_v37 = vrot.slane %v1656_v49, %v7049_v44  ;;  %v6288_v49 = vcombine.high %v630_v25, %v630_v25 }
 0x1d9   : > { %10618 = vst [vmem:[#allocation50_spill] sm:$0xff] %v7626_v39  ;;  %666 = vrot.lane.b32.xlu0 %v6284_v62, %s6677_s16  ;;  %v6287_v62 = vcombine.high %v596_v48, %v596_v48 }
 0x1da   : > { %681 = vrot.lane.b32.xlu1 %v6286_v53, %s6673_s9  ;;  %v1662_v60 = vpack.i.b16 %v1661_v59, %v1660_v63  ;;  %v2525_v59 = vshrl.u32 %v7626_v39, 16  ;;  %v6006_v63 = vcombine.low %v596_v48, %v596_v48 }
 0x1db   : > { %v7640_v16 = vpop.permute.xlu0 %2510 }
 0x1dc   : > { %v7638_v42 = vpop.permute.xlu1 %2514  ;;  %10622 = vst [vmem:[#allocation54_spill] sm:$0xff] %v7640_v16  ;;  %v7649_v45 = vrot.slane %v1662_v60, %v7049_v44  ;;  %v2526_v3 = vshrl.u32 %v7640_v16, 16 }
 0x1dd   : > { %10621 = vst [vmem:[#allocation53_spill] sm:$0xff] %v7638_v42  ;;  %676 = vrot.lane.b32.xlu0 %v6285_v4, %s6672_s8  ;;  %v2531_v60 = vshrl.u32 %v7638_v42, 16 }
 0x1de   : > { %691 = vrot.lane.b32.xlu1 %v6007_v56, %s6675_s18  ;;  %v2527_v6 = vpack.i.b16 %v2526_v3, %v2525_v59 }
 0x1df   : > { %v7659_v35 = vpop.permute.xlu0 %2518 }
 0x1e0   : > { %v7657_v53 = vpop.permute.xlu1 %3328  ;;  %10624 = vst [vmem:[#allocation56_spill] sm:$0xff] %v7659_v35  ;;  %v2532_v16 = vshrl.u32 %v7659_v35, 16  ;;  %v7670_v47 = vrot.slane %v2527_v6, %v7049_v44 }
 0x1e1   : > { %10623 = vst [vmem:[#allocation55_spill] sm:$0xff] %v7657_v53  ;;  %686 = vrot.lane.b32.xlu0 %v6006_v63, %s6674_s27 }
 0x1e2   : > { %701 = vrot.lane.b32.xlu1 %v6288_v49, %s6677_s16  ;;  %v2533_v4 = vpack.i.b16 %v2532_v16, %v2531_v60  ;;  %10627 = vst [vmem:[#allocation59_spill] sm:$0xff] %v7670_v47  ;;  %v3357_v16 = vshrl.u32 %v7657_v53, 16  ;;  %v1384_v47 = vshrl.u32 %v7326_v21, 16 }
 0x1e3   : > { %v7667_v39 = vpop.permute.xlu0 %3332 }
 0x1e4   : > { %v7665_v56 = vpop.permute.xlu1 %3336  ;;  %10626 = vst [vmem:[#allocation58_spill] sm:$0xff] %v7667_v39  ;;  %v7673_v25 = vrot.slane %v2533_v4, %v7049_v44  ;;  %v3358_v3 = vshrl.u32 %v7667_v39, 16  ;;  %v7692_v4 = vld [vmem:[#allocation2 + $0x10] sm:$0xf] }
 0x1e5   : > { %10625 = vst [vmem:[#allocation57_spill] sm:$0xff] %v7665_v56  ;;  %696 = vrot.lane.b32.xlu0 %v6287_v62, %s6676_s26  ;;  %v3363_v6 = vshrl.u32 %v7665_v56, 16 }
 0x1e6   : > { %10628 = vst [vmem:[#allocation60_spill] sm:$0xff] %v7673_v25  ;;  %4138 = vrot.lane.b32.xlu1 %v7118_v36, %s6669_s15  ;;  %v3359_v49 = vpack.i.b16 %v3358_v3, %v3357_v16 }
 0x1e7   : > { %v7684_v48 = vpop.permute.xlu0 %3340 }
 0x1e8   : > { %v7682_v63 = vpop.permute.xlu1 %2784  ;;  %10630 = vst [vmem:[#allocation62_spill] sm:$0xff] %v7684_v48  ;;  %v3364_v60 = vshrl.u32 %v7684_v48, 16  ;;  %v7699_v39 = vrot.slane %v3359_v49, %v7049_v44 }
 0x1e9   : > { %10629 = vst [vmem:[#allocation61_spill] sm:$0xff] %v7682_v63  ;;  %4152 = vrot.lane.b32.xlu0 %v7066_v2, %s6669_s15 }
 0x1ea   : > { %4146 = vrot.lane.b32.xlu1 %v7109_v30, %s6669_s15  ;;  %v3365_v62 = vpack.i.b16 %v3364_v60, %v3363_v6  ;;  %10633 = vst [vmem:[#allocation65_spill] sm:$0xff] %v7699_v39  ;;  %v2813_v6 = vshrl.u32 %v7682_v63, 16  ;;  %v7712_v30 = vld [vmem:[#allocation2 + $0x38] sm:$0xf]  ;;  %v7724_v63 = vld [vmem:[#allocation2 + $0x24] sm:$0xf] }
 0x1eb   : > { %v7696_v59 = vpop.permute.xlu0 %2788  ;;  %v1108_v39 = vshrl.u32 %v7305_v23, 16 }
 0x1ec   : > { %v7694_v36 = vpop.permute.xlu1 %2792  ;;  %10632 = vst [vmem:[#allocation64_spill] sm:$0xff] %v7696_v59  ;;  %v7702_v3 = vrot.slane %v3365_v62, %v7049_v44  ;;  %v2814_v16 = vshrl.u32 %v7696_v59, 16 }
 0x1ed   : > { %10631 = vst [vmem:[#allocation63_spill] sm:$0xff] %v7694_v36  ;;  %4142 = vrot.lane.b32.xlu0 %v7105_v29, %s6669_s15  ;;  %v2819_v62 = vshrl.u32 %v7694_v36, 16 }
 0x1ee   : > { %10634 = vst [vmem:[#allocation66_spill] sm:$0xff] %v7702_v3  ;;  %4684 = vrot.lane.b32.xlu1 %v7692_v4, %s6668_s14  ;;  %v2815_v59 = vpack.i.b16 %v2814_v16, %v2813_v6  ;;  %v6512_v3 = vld [vmem:[#allocation2 + $0x34] sm:$0xf] }
 0x1ef   : > { %v7716_v2 = vpop.permute.xlu0 %2796 }
 0x1f0   : > { %v7714_v49 = vpop.permute.xlu1 %3326  ;;  %10636 = vst [vmem:[#allocation68_spill] sm:$0xff] %v7716_v2  ;;  %v2820_v53 = vshrl.u32 %v7716_v2, 16  ;;  %v7731_v56 = vrot.slane %v2815_v59, %v7049_v44  ;;  %v7745_v59 = vld [vmem:[#allocation2 + $0x4c] sm:$0xf] }
 0x1f1   : > { %10635 = vst [vmem:[#allocation67_spill] sm:$0xff] %v7714_v49  ;;  %4150 = vrot.lane.b32.xlu0 %v7089_v18, %s6669_s15  ;;  %v3345_v16 = vshrl.u32 %v7714_v49, 16  ;;  %v1109_v18 = vshrl.u32 %v7311_v28, 16 }
 0x1f2   : > { %4692 = vrot.lane.b32.xlu1 %v7712_v30, %s6668_s14  ;;  %v2821_v29 = vpack.i.b16 %v2820_v53, %v2819_v62  ;;  %10639 = vst [vmem:[#allocation71_spill] sm:$0xff] %v7731_v56 }
 0x1f3   : > { %v7728_v48 = vpop.permute.xlu0 %3330  ;;  %v1110_v56 = vpack.i.b16 %v1109_v18, %v1108_v39  ;;  %v6513_v18 = vld [vmem:[#allocation2 + $0xc] sm:$0xf]  ;;  %v6514_v39 = vld [vmem:[#allocation2 + $0x20] sm:$0xf] }
 0x1f4   : > { %v7726_v60 = vpop.permute.xlu1 %3334  ;;  %10638 = vst [vmem:[#allocation70_spill] sm:$0xff] %v7728_v48  ;;  %v7735_v6 = vrot.slane %v2821_v29, %v7049_v44  ;;  %v3346_v2 = vshrl.u32 %v7728_v48, 16 }
 0x1f5   : > { %10637 = vst [vmem:[#allocation69_spill] sm:$0xff] %v7726_v60  ;;  %4688 = vrot.lane.b32.xlu0 %v7724_v63, %s6668_s14  ;;  %v3351_v62 = vshrl.u32 %v7726_v60, 16  ;;  %v1102_v60 = vshrl.u32 %v7293_v13, 16 }
 0x1f6   : > { %10640 = vst [vmem:[#allocation72_spill] sm:$0xff] %v7735_v6  ;;  %4682 = vrot.lane.b32.xlu1 %v7111_v31, %s6668_s14  ;;  %v3347_v48 = vpack.i.b16 %v3346_v2, %v3345_v16  ;;  %v1103_v31 = vshrl.u32 %v7299_v19, 16  ;;  %v1385_v6 = vshrl.u32 %v7378_v50, 16 }
 0x1f7   : > { %v7750_v29 = vpop.permute.xlu0 %3338 }
 0x1f8   : > { %v7748_v49 = vpop.permute.xlu1 %3604  ;;  %10642 = vst [vmem:[#allocation74_spill] sm:$0xff] %v7750_v29  ;;  %v3352_v36 = vshrl.u32 %v7750_v29, 16  ;;  %v7765_v16 = vrot.slane %v3347_v48, %v7049_v44  ;;  %v1104_v42 = vpack.i.b16 %v1103_v31, %v1102_v60  ;;  %v1378_v60 = vshrl.u32 %v7318_v34, 16 }
 0x1f9   : > { %10641 = vst [vmem:[#allocation73_spill] sm:$0xff] %v7748_v49  ;;  %4696 = vrot.lane.b32.xlu0 %v7745_v59, %s6668_s14  ;;  %v3633_v25 = vshrl.u32 %v7748_v49, 16  ;;  %v1373_v31 = vshrl.u32 %v7320_v11, 16  ;;  %v1386_v10 = vpack.i.b16 %v1385_v6, %v1384_v47  ;;  %v6515_v47 = vld [vmem:[#allocation2 + $0x48] sm:$0xf]  ;;  %v1107_v6 = vpack.i.b16 %v7311_v28, %v7305_v23 }
 0x1fa   : > { %4690 = vrot.lane.b32.xlu1 %v6512_v3, %s6668_s14  ;;  %v3353_v53 = vpack.i.b16 %v3352_v36, %v3351_v62  ;;  %10645 = vst [vmem:[#allocation77_spill] sm:$0xff] %v7765_v16  ;;  %v1379_v36 = vshrl.u32 %v7365_v58, 16  ;;  %v7791_v48 = vrot.slane %v1104_v42, %v7049_v44 }
 0x1fb   : > { %v7762_v2 = vpop.permute.xlu0 %3608  ;;  %v7802_v42 = vrot.slane %v1386_v10, %v7049_v44  ;;  %v1194_v10 = vrot.slane %v1107_v6, %v7049_v44 }
 0x1fc   : > { %v7760_v35 = vpop.permute.xlu1 %3612  ;;  %10644 = vst [vmem:[#allocation76_spill] sm:$0xff] %v7762_v2  ;;  %v7768_v29 = vrot.slane %v3353_v53, %v7049_v44  ;;  %v3634_v62 = vshrl.u32 %v7762_v2, 16  ;;  %v7779_v53 = vrot.slane %v1110_v56, %v7049_v44  ;;  %v1367_v56 = vshrl.u32 %v7313_v33, 16 }
 0x1fd   : > { %10643 = vst [vmem:[#allocation75_spill] sm:$0xff] %v7760_v35  ;;  %4686 = vrot.lane.b32.xlu0 %v6514_v39, %s6668_s14  ;;  %v1380_v16 = vpack.i.b16 %v1379_v36, %v1378_v60 }
 0x1fe   : > { %10646 = vst [vmem:[#allocation78_spill] sm:$0xff] %v7768_v29  ;;  %4958 = vrot.lane.b32.xlu1 %v6513_v18, %s6669_s15  ;;  %v3639_v18 = vshrl.u32 %v7760_v35, 16  ;;  %v3635_v5 = vpack.i.b16 %v3634_v62, %v3633_v25  ;;  %v1366_v25 = vshrl.u32 %v7252_v46, 16  ;;  %v1229_v62 = vcombine.low %v7791_v48, %v7779_v53 }
 0x1ff   : > { %v7785_v27 = vpop.permute.xlu0 %3616 }
 0x200   : > { %v7783_v2 = vpop.permute.xlu1 %2782  ;;  %10648 = vst [vmem:[#allocation80_spill] sm:$0xff] %v7785_v27  ;;  %v3640_v49 = vshrl.u32 %v7785_v27, 16  ;;  %v1374_v27 = vpack.i.b16 %v1373_v31, %v1372_v14  ;;  %v7811_v60 = vrot.slane %v3635_v5, %v7049_v44  ;;  %v1368_v28 = vpack.i.b16 %v1367_v56, %v1366_v25 }
 0x201   : > { %10647 = vst [vmem:[#allocation79_spill] sm:$0xff] %v7783_v2  ;;  %4694 = vrot.lane.b32.xlu0 %v6515_v47, %s6668_s14  ;;  %s6272_s14 = sshll.u32 %s11089_s25, 4 }
 0x202   : > { %4962 = vrot.lane.b32.xlu1 %v6514_v39, %s6669_s15  ;;  %v3641_v35 = vpack.i.b16 %v3640_v49, %v3639_v18  ;;  %v1101_v39 = vpack.i.b16 %v7299_v19, %v7293_v13  ;;  %10651 = vst [vmem:[#allocation83_spill] sm:$0xff] %v7811_v60  ;;  %v7817_v49 = vrot.slane %v1380_v16, %v7049_v44  ;;  %v2801_v13 = vshrl.u32 %v7783_v2, 16 }
 0x203   : > { %v7806_v36 = vpop.permute.xlu0 %2786  ;;  %v7828_v5 = vrot.slane %v1374_v27, %v7049_v44  ;;  %v7843_v27 = vrot.slane %v1368_v28, %v7049_v44 }
 0x204   : > { %v7804_v29 = vpop.permute.xlu1 %2790  ;;  %10650 = vst [vmem:[#allocation82_spill] sm:$0xff] %v7806_v36  ;;  %v7814_v23 = vrot.slane %v3641_v35, %v7049_v44  ;;  %v2802_v14 = vshrl.u32 %v7806_v36, 16  ;;  %v1505_v35 = vcombine.low %v7817_v49, %v7802_v42 }
 0x205   : > { %10649 = vst [vmem:[#allocation81_spill] sm:$0xff] %v7804_v29  ;;  %4960 = vrot.lane.b32.xlu0 %v7692_v4, %s6669_s15  ;;  %v1186_v4 = vrot.slane %v1101_v39, %v7049_v44  ;;  %v2807_v18 = vshrl.u32 %v7804_v29, 16  ;;  %v1383_v39 = vpack.i.b16 %v7378_v50, %v7326_v21  ;;  %v1377_v21 = vpack.i.b16 %v7365_v58, %v7318_v34 }
 0x206   : > { %10652 = vst [vmem:[#allocation84_spill] sm:$0xff] %v7814_v23  ;;  %4966 = vrot.lane.b32.xlu1 %v6512_v3, %s6669_s15  ;;  %v7837_v3 = vrot.slane %v1229_v62, %v7371_v0  ;;  %v2803_v56 = vpack.i.b16 %v2802_v14, %v2801_v13  ;;  %v1437_v62 = vcombine.low %v7843_v27, %v7828_v5 }
 0x207   : > { %v7834_v31 = vpop.permute.xlu0 %2794  ;;  %v1195_v25 = vcombine.low %v1186_v4, %v1194_v10 }
 0x208   : > { %v7832_v16 = vpop.permute.xlu1 %3602  ;;  %10654 = vst [vmem:[#allocation86_spill] sm:$0xff] %v7834_v31  ;;  %v2808_v6 = vshrl.u32 %v7834_v31, 16  ;;  %v6035_v28 = vcombine.low %v7837_v3, %v7837_v3  ;;  %v7860_v13 = vrot.slane %v2803_v56, %v7049_v44 }
 0x209   : > { %10653 = vst [vmem:[#allocation85_spill] sm:$0xff] %v7832_v16  ;;  %4964 = vrot.lane.b32.xlu0 %v7724_v63, %s6669_s15  ;;  %v3621_v63 = vshrl.u32 %v7832_v16, 16  ;;  %v1470_v16 = vrot.slane %v1383_v39, %v7049_v44 }
 0x20a   : > { %4970 = vrot.lane.b32.xlu1 %v6515_v47, %s6669_s15  ;;  %v2809_v19 = vpack.i.b16 %v2808_v6, %v2807_v18  ;;  %v1513_v47 = vrot.slane %v1505_v35, %v7371_v0  ;;  %10657 = vst [vmem:[#allocation89_spill] sm:$0xff] %v7860_v13  ;;  %v1196_v6 = vcombine.high %v1186_v4, %v1194_v10 }
 0x20b   : > { %v7854_v14 = vpop.permute.xlu0 %3606  ;;  %v1371_v35 = vpack.i.b16 %v7320_v11, %v7260_v51  ;;  %v1365_v51 = vpack.i.b16 %v7313_v33, %v7252_v46  ;;  %v1462_v4 = vrot.slane %v1377_v21, %v7049_v44 }
 0x20c   : > { %v7852_v36 = vpop.permute.xlu1 %3610  ;;  %10656 = vst [vmem:[#allocation88_spill] sm:$0xff] %v7854_v14  ;;  %v7864_v18 = vrot.slane %v2809_v19, %v7049_v44  ;;  %v3622_v50 = vshrl.u32 %v7854_v14, 16  ;;  %v6049_v58 = vcombine.low %v1513_v47, %v1513_v47 }
 0x20d   : > { %10655 = vst [vmem:[#allocation87_spill] sm:$0xff] %v7852_v36  ;;  %4968 = vrot.lane.b32.xlu0 %v7712_v30, %s6669_s15  ;;  %v3627_v19 = vshrl.u32 %v7852_v36, 16  ;;  %v7886_v30 = vrot.slane %v1195_v25, %v7371_v0  ;;  %v7896_v39 = vrot.slane %v1371_v35, %v7049_v44  ;;  %v1471_v56 = vcombine.low %v1462_v4, %v1470_v16  ;;  %v10711_v36 = vld [vmem:[#allocation44_spill] sm:$0xff] }
 0x20e   : > { %10658 = vst [vmem:[#allocation90_spill] sm:$0xff] %v7864_v18  ;;  %1285 = vrot.lane.b32.xlu1 %v6035_v28, %s6671_s7  ;;  %v7883_v28 = vrot.slane %v1437_v62, %v7371_v0  ;;  %v3623_v11 = vpack.i.b16 %v3622_v50, %v3621_v63  ;;  %v7907_v63 = vrot.slane %v1196_v6, %v7371_v0 }
 0x20f   : > { %v7880_v34 = vpop.permute.xlu0 %3614  ;;  %10661 = vst [vmem:[#allocation93_spill] sm:$0xff] %v7886_v30  ;;  %v6301_v33 = vcombine.high %v7886_v30, %v7886_v30  ;;  %v1230_v35 = vcombine.high %v7791_v48, %v7779_v53  ;;  %v7937_v48 = vrot.slane %v1471_v56, %v7371_v0  ;;  %v1929_v53 = vpack.i.b16 %v7582_v24, %v7569_v54 }
 0x210   : > { %v7878_v2 = vpop.permute.xlu1 %4140  ;;  %10660 = vst [vmem:[#allocation92_spill] sm:$0xff] %v7880_v34  ;;  %v3628_v10 = vshrl.u32 %v7880_v34, 16  ;;  %v6042_v46 = vcombine.low %v7883_v28, %v7883_v28  ;;  %v7913_v21 = vrot.slane %v3623_v11, %v7049_v44  ;;  %v6310_v24 = vcombine.high %v1513_v47, %v1513_v47  ;;  %v10710_v34 = vld [vmem:[#allocation33_spill] sm:$0xff] }
 0x211   : > { %10659 = vst [vmem:[#allocation91_spill] sm:$0xff] %v7878_v2  ;;  %4972 = vrot.lane.b32.xlu0 %v7745_v59, %s6669_s15  ;;  %v7910_v59 = vrot.slane %v1365_v51, %v7049_v44  ;;  %10668 = vst [vmem:[#allocation100_spill] sm:$0xff] %v7937_v48 }
 0x212   : > { %1561 = vrot.lane.b32.xlu1 %v6049_v58, %s6671_s7  ;;  %v3629_v62 = vpack.i.b16 %v3628_v10, %v3627_v19  ;;  %10664 = vst [vmem:[#allocation96_spill] sm:$0xff] %v7913_v21  ;;  %v1935_v58 = vpack.i.b16 %v7602_v43, %v7580_v40  ;;  %v6038_v10 = vcombine.low %v7907_v63, %v7907_v63 }
 0x213   : > { %v7900_v14 = vpop.permute.xlu0 %4144  ;;  %v1403_v6 = vcombine.low %v7910_v59, %v7896_v39  ;;  %v1472_v40 = vcombine.high %v1462_v4, %v1470_v16  ;;  %v7944_v43 = vrot.slane %v1230_v35, %v7371_v0  ;;  %v6309_v16 = vcombine.high %v7937_v48, %v7937_v48 }
 0x214   : > { %v7898_v25 = vpop.permute.xlu1 %4148  ;;  %10663 = vst [vmem:[#allocation95_spill] sm:$0xff] %v7900_v14  ;;  %v7916_v50 = vrot.slane %v3629_v62, %v7049_v44  ;;  %v6302_v62 = vcombine.high %v7837_v3, %v7837_v3  ;;  %v2057_v3 = vcombine.low %v7615_v8, %v7618_v55  ;;  %v7961_v4 = vrot.slane %v1929_v53, %v7049_v44 }
 0x215   : > { %10662 = vst [vmem:[#allocation94_spill] sm:$0xff] %v7898_v25  ;;  %1290 = vrot.lane.b32.xlu0 %v6301_v33, %s6672_s8  ;;  %v7950_v33 = vrot.slane %v1935_v58, %v7049_v44  ;;  %v6039_v35 = vcombine.low %v7944_v43, %v7944_v43 }
 0x216   : > { %10665 = vst [vmem:[#allocation97_spill] sm:$0xff] %v7916_v50  ;;  %1526 = vrot.lane.b32.xlu1 %v6042_v46, %s6671_s7  ;;  %v7947_v46 = vrot.slane %v1403_v6, %v7371_v0  ;;  %v7979_v53 = vrot.slane %v2057_v3, %v7371_v0 }
 0x217   : > { %v7930_v11 = vpop.permute.xlu0 %974  ;;  %v2023_v6 = vcombine.low %v7961_v4, %v7950_v33 }
 0x218   : > { %v7928_v51 = vpop.permute.xlu1 %979  ;;  %10667 = vst [vmem:[#allocation99_spill] sm:$0xff] %v7930_v11  ;;  %10669 = vst [vmem:[#allocation101_spill] sm:$0xff] %v7947_v46  ;;  %v6305_v47 = vcombine.high %v7947_v46, %v7947_v46  ;;  %v6077_v3 = vcombine.low %v7979_v53, %v7979_v53 }
 0x219   : > { %10666 = vst [vmem:[#allocation98_spill] sm:$0xff] %v7928_v51  ;;  %1295 = vrot.lane.b32.xlu0 %v6302_v62, %s6673_s9  ;;  %v7976_v62 = vrot.slane %v1472_v40, %v7371_v0 }
 0x21a   : > { %1300 = vrot.lane.b32.xlu1 %v6038_v10, %s6674_s27 }
 0x21b   : > { %v7956_v54 = vpop.permute.xlu0 %984  ;;  %v6052_v40 = vcombine.low %v7976_v62, %v7976_v62 }
 0x21c   : > { %v7954_v56 = vpop.permute.xlu1 %989  ;;  %10671 = vst [vmem:[#allocation103_spill] sm:$0xff] %v7956_v54 }
 0x21d   : > { %10670 = vst [vmem:[#allocation102_spill] sm:$0xff] %v7954_v56  ;;  %1566 = vrot.lane.b32.xlu0 %v6309_v16, %s6672_s8  ;;  %v1989_v16 = vcombine.low %v7438_v7, %v7441_v52 }
 0x21e   : > { %1571 = vrot.lane.b32.xlu1 %v6310_v24, %s6673_s9  ;;  %v1923_v24 = vpack.i.b16 %v7414_v61, %v7344_v20  ;;  %v1506_v20 = vcombine.high %v7817_v49, %v7802_v42  ;;  %v6306_v61 = vcombine.high %v7883_v28, %v7883_v28  ;;  %v1404_v49 = vcombine.high %v7910_v59, %v7896_v39 }
 0x21f   : > { %v7971_v10 = vpop.permute.xlu0 %994  ;;  %v2320_v39 = vcombine.low %v7484_v9, %v7487_v12 }
 0x220   : > { %v7969_v58 = vpop.permute.xlu1 %999  ;;  %10673 = vst [vmem:[#allocation105_spill] sm:$0xff] %v7971_v10  ;;  %v8028_v28 = vrot.slane %v1506_v20, %v7371_v0  ;;  %v8050_v20 = vrot.slane %v1404_v49, %v7371_v0  ;;  %v2260_v49 = vpack.i.b16 %v7523_v41, %v7412_v26 }
 0x221   : > { %10672 = vst [vmem:[#allocation104_spill] sm:$0xff] %v7969_v58  ;;  %1531 = vrot.lane.b32.xlu0 %v6305_v47, %s6672_s8  ;;  %v1917_v47 = vpack.i.b16 %v7397_v57, %v7334_v38  ;;  %v8018_v38 = vrot.slane %v1989_v16, %v7371_v0 }
 0x222   : > { %1305 = vrot.lane.b32.xlu1 %v6039_v35, %s6675_s18  ;;  %v7996_v35 = vrot.slane %v2023_v6, %v7371_v0  ;;  %v2388_v6 = vcombine.low %v7557_v15, %v7560_v32  ;;  %v6053_v59 = vcombine.low %v8028_v28, %v8028_v28 }
 0x223   : > { %v7989_v58 = vpop.permute.xlu0 %1004  ;;  %v8021_v42 = vrot.slane %v1917_v47, %v7049_v44  ;;  %v6070_v47 = vcombine.low %v8018_v38, %v8018_v38 }
 0x224   : > { %v7987_v19 = vpop.permute.xlu1 %1255  ;;  %10675 = vst [vmem:[#allocation107_spill] sm:$0xff] %v7989_v58  ;;  %10676 = vst [vmem:[#allocation108_spill] sm:$0xff] %v7996_v35  ;;  %v8007_v58 = vrot.slane %v1923_v24, %v7049_v44  ;;  %v6325_v57 = vcombine.high %v7996_v35, %v7996_v35 }
 0x225   : > { %10674 = vst [vmem:[#allocation106_spill] sm:$0xff] %v7987_v19  ;;  %2113 = vrot.lane.b32.xlu0 %v6077_v3, %s6671_s7  ;;  %v6303_v3 = vcombine.high %v7907_v63, %v7907_v63  ;;  %v2266_v63 = vpack.i.b16 %v7541_v1, %v7428_v17  ;;  %v6045_v17 = vcombine.low %v8050_v20, %v8050_v20 }
 0x226   : > { %1576 = vrot.lane.b32.xlu1 %v6052_v40, %s6674_s27  ;;  %v1955_v24 = vcombine.low %v8021_v42, %v8007_v58  ;;  %v8072_v1 = vrot.slane %v2320_v39, %v7371_v0 }
 0x227   : > { %v8013_v10 = vpop.permute.xlu0 %1250 }
 0x228   : > { %v8011_v46 = vpop.permute.xlu1 %1265  ;;  %10678 = vst [vmem:[#allocation110_spill] sm:$0xff] %v8013_v10  ;;  %v8063_v35 = vrot.slane %v1955_v24, %v7371_v0  ;;  %v6088_v39 = vcombine.low %v8072_v1, %v8072_v1 }
 0x229   : > { %10677 = vst [vmem:[#allocation109_spill] sm:$0xff] %v8011_v46  ;;  %1536 = vrot.lane.b32.xlu0 %v6306_v61, %s6673_s9  ;;  %v8041_v61 = vrot.slane %v2388_v6, %v7371_v0  ;;  %v1781_v6 = vcombine.low %v7646_v37, %v7649_v45 }
 0x22a   : > { %2118 = vrot.lane.b32.xlu1 %v6325_v57, %s6672_s8  ;;  %10683 = vst [vmem:[#allocation115_spill] sm:$0xff] %v8063_v35  ;;  %v6321_v41 = vcombine.high %v8063_v35, %v8063_v35 }
 0x22b   : > { %v8034_v16 = vpop.permute.xlu0 %1260  ;;  %v8086_v26 = vrot.slane %v1781_v6, %v7371_v0 }
 0x22c   : > { %v8032_v40 = vpop.permute.xlu1 %641  ;;  %10680 = vst [vmem:[#allocation112_spill] sm:$0xff] %v8034_v16  ;;  %v10692_v16 = vld [vmem:[#allocation49_spill] sm:$0xff] }
 0x22d   : > { %10679 = vst [vmem:[#allocation111_spill] sm:$0xff] %v8032_v40  ;;  %2078 = vrot.lane.b32.xlu0 %v6070_v47, %s6671_s7  ;;  %v6095_v47 = vcombine.low %v8041_v61, %v8041_v61 }
 0x22e   : > { %1310 = vrot.lane.b32.xlu1 %v6303_v3, %s6676_s26 }
 0x22f   : > { %v8058_v3 = vpop.permute.xlu0 %1270 }
 0x230   : > { %v8056_v57 = vpop.permute.xlu1 %651  ;;  %10682 = vst [vmem:[#allocation114_spill] sm:$0xff] %v8058_v3  ;;  %v10684_v3 = vld [vmem:[#allocation46_spill] sm:$0xff] }
 0x231   : > { %10681 = vst [vmem:[#allocation113_spill] sm:$0xff] %v8056_v57  ;;  %2444 = vrot.lane.b32.xlu0 %v6095_v47, %s6671_s7  ;;  %v8075_v57 = vrot.slane %v2266_v63, %v7049_v44  ;;  %v2664_v24 = vcombine.low %v10684_v3, %v7590_v22  ;;  %v10687_v47 = vld [vmem:[#allocation48_spill] sm:$0xff] }
 0x232   : > { %1581 = vrot.lane.b32.xlu1 %v6053_v59, %s6675_s18  ;;  %v8089_v59 = vrot.slane %v2260_v49, %v7049_v44  ;;  %v6063_v49 = vcombine.low %v8086_v26, %v8086_v26 }
 0x233   : > { %v8081_v56 = vpop.permute.xlu0 %1014 }
 0x234   : > { %v8079_v46 = vpop.permute.xlu1 %661  ;;  %10686 = vst [vmem:[#allocation116_spill] sm:$0xff] %v8081_v56  ;;  %v2354_v63 = vcombine.low %v8089_v59, %v8075_v57 }
 0x235   : > { %10685 = vst [vmem:[#allocation46_spill] sm:$0xff] %v8079_v46  ;;  %1541 = vrot.lane.b32.xlu0 %v6045_v17, %s6674_s27  ;;  %v10688_v46 = vld [vmem:[#allocation51_spill] sm:$0xff] }
 0x236   : > { %2083 = vrot.lane.b32.xlu1 %v6321_v41, %s6672_s8  ;;  %v1659_v40 = vpack.i.b16 %v10688_v46, %v10687_v47  ;;  %v8106_v41 = vrot.slane %v2664_v24, %v7371_v0  ;;  %v10691_v17 = vld [vmem:[#allocation47_spill] sm:$0xff]  ;;  %v6326_v24 = vcombine.high %v7979_v53, %v7979_v53  ;;  %v8124_v10 = vrot.slane %v2354_v63, %v7371_v0  ;;  %v10699_v63 = vld [vmem:[#allocation34_spill] sm:$0xff] }
 0x237   : > { %v8101_v6 = vpop.permute.xlu0 %1024  ;;  %v1653_v19 = vpack.i.b16 %v10692_v16, %v10691_v17  ;;  %v6304_v53 = vcombine.high %v7944_v43, %v7944_v43  ;;  %v10701_v43 = vld [vmem:[#allocation43_spill] sm:$0xff] }
 0x238   : > { %v8099_v35 = vpop.permute.xlu1 %1009  ;;  %10690 = vst [vmem:[#allocation51_spill] sm:$0xff] %v8101_v6  ;;  %v8113_v54 = vrot.slane %v1659_v40, %v7049_v44  ;;  %v6109_v51 = vcombine.low %v8106_v41, %v8106_v41  ;;  %10695 = vst [vmem:[#allocation117_spill] sm:$0xff] %v8124_v10  ;;  %v1438_v40 = vcombine.high %v7843_v27, %v7828_v5 }
 0x239   : > { %10689 = vst [vmem:[#allocation48_spill] sm:$0xff] %v8099_v35  ;;  %1837 = vrot.lane.b32.xlu0 %v6063_v49, %s6671_s7  ;;  %v8127_v16 = vrot.slane %v1653_v19, %v7049_v44  ;;  %v6333_v19 = vcombine.high %v8124_v10, %v8124_v10  ;;  %v6311_v27 = vcombine.high %v7976_v62, %v7976_v62  ;;  %v10703_v10 = vld [vmem:[#allocation36_spill] sm:$0xff] }
 0x23a   : > { %2409 = vrot.lane.b32.xlu1 %v6088_v39, %s6671_s7 }
 0x23b   : > { %v8117_v47 = vpop.permute.xlu0 %1034  ;;  %v1747_v39 = vcombine.low %v8127_v16, %v8113_v54 }
 0x23c   : > { %v8115_v46 = vpop.permute.xlu1 %1019  ;;  %10694 = vst [vmem:[#allocation49_spill] sm:$0xff] %v8117_v47  ;;  %v10702_v47 = vld [vmem:[#allocation42_spill] sm:$0xff] }
 0x23d   : > { %10693 = vst [vmem:[#allocation47_spill] sm:$0xff] %v8115_v46  ;;  %2123 = vrot.lane.b32.xlu0 %v6326_v24, %s6673_s9  ;;  %v10700_v24 = vld [vmem:[#allocation35_spill] sm:$0xff]  ;;  %v1713_v48 = vcombine.low %v10702_v47, %v10701_v43  ;;  %v8165_v62 = vrot.slane %v1747_v39, %v7371_v0  ;;  %v2536_v46 = vpack.i.b16 %v10711_v36, %v10710_v34 }
 0x23e   : > { %2720 = vrot.lane.b32.xlu1 %v6109_v51, %s6671_s7  ;;  %v10698_v51 = vld [vmem:[#allocation27_spill] sm:$0xff]  ;;  %v6299_v11 = vcombine.high %v10700_v24, %v10700_v24 }
 0x23f   : > { %v8137_v17 = vpop.permute.xlu0 %636  ;;  %v2254_v5 = vpack.i.b16 %v10699_v63, %v10698_v51  ;;  %10707 = vst [vmem:[#allocation35_spill] sm:$0xff] %v8165_v62  ;;  %v10708_v63 = vld [vmem:[#allocation26_spill] sm:$0xff]  ;;  %v10709_v24 = vld [vmem:[#allocation31_spill] sm:$0xff]  ;;  %v6317_v36 = vcombine.high %v8165_v62, %v8165_v62 }
 0x240   : > { %v8135_v49 = vpop.permute.xlu1 %1029  ;;  %10697 = vst [vmem:[#allocation119_spill] sm:$0xff] %v8137_v17  ;;  %v8152_v17 = vrot.slane %v1438_v40, %v7371_v0  ;;  %v2248_v40 = vpack.i.b16 %v10709_v24, %v10708_v63  ;;  %v10714_v63 = vld [vmem:[#allocation30_spill] sm:$0xff]  ;;  %v10715_v24 = vld [vmem:[#allocation40_spill] sm:$0xff] }
 0x241   : > { %10696 = vst [vmem:[#allocation118_spill] sm:$0xff] %v8135_v49  ;;  %2449 = vrot.lane.b32.xlu0 %v6333_v19, %s6672_s8  ;;  %v10704_v49 = vld [vmem:[#allocation45_spill] sm:$0xff]  ;;  %v2024_v19 = vcombine.high %v7961_v4, %v7950_v33 }
 0x242   : > { %1315 = vrot.lane.b32.xlu1 %v6304_v53, %s6677_s16  ;;  %v2542_v53 = vpack.i.b16 %v10704_v49, %v10703_v10  ;;  %v8174_v10 = vrot.slane %v2254_v5, %v7049_v44  ;;  %v6046_v33 = vcombine.low %v8152_v17, %v8152_v17  ;;  %v8194_v5 = vrot.slane %v2248_v40, %v7049_v44 }
 0x243   : > { %v8162_v51 = vpop.permute.xlu0 %646  ;;  %v8188_v34 = vrot.slane %v2024_v19, %v7371_v0  ;;  %v1647_v19 = vpack.i.b16 %v10715_v24, %v10714_v63  ;;  %v6322_v63 = vcombine.high %v8018_v38, %v8018_v38 }
 0x244   : > { %v8160_v6 = vpop.permute.xlu1 %1039  ;;  %10706 = vst [vmem:[#allocation34_spill] sm:$0xff] %v8162_v51  ;;  %v8179_v4 = vrot.slane %v2542_v53, %v7049_v44  ;;  %v2286_v53 = vcombine.low %v8194_v5, %v8174_v10  ;;  %v2287_v50 = vcombine.high %v8194_v5, %v8174_v10 }
 0x245   : > { %10705 = vst [vmem:[#allocation27_spill] sm:$0xff] %v8160_v6  ;;  %1275 = vrot.lane.b32.xlu0 %v6299_v11, %s6676_s26  ;;  %v8191_v11 = vrot.slane %v1713_v48, %v7371_v0  ;;  %v10721_v6 = vld [vmem:[#allocation60_spill] sm:$0xff] }
 0x246   : > { %1586 = vrot.lane.b32.xlu1 %v6311_v27, %s6676_s26  ;;  %v8197_v27 = vrot.slane %v2536_v46, %v7049_v44  ;;  %v6080_v46 = vcombine.low %v8188_v34, %v8188_v34  ;;  %v8222_v24 = vrot.slane %v2286_v53, %v7371_v0 }
 0x247   : > { %v8183_v49 = vpop.permute.xlu0 %656 }
 0x248   : > { %v8181_v39 = vpop.permute.xlu1 %671  ;;  %10713 = vst [vmem:[#allocation42_spill] sm:$0xff] %v8183_v49  ;;  %v2630_v48 = vcombine.low %v8197_v27, %v8179_v4  ;;  %v10719_v49 = vld [vmem:[#allocation37_spill] sm:$0xff]  ;;  %10720 = vst [vmem:[#allocation26_spill] sm:$0xff] %v8222_v24 }
 0x249   : > { %10712 = vst [vmem:[#allocation43_spill] sm:$0xff] %v8181_v39  ;;  %1546 = vrot.lane.b32.xlu0 %v6046_v33, %s6675_s18  ;;  %v10718_v33 = vld [vmem:[#allocation28_spill] sm:$0xff] }
 0x24a   : > { %1842 = vrot.lane.b32.xlu1 %v6317_v36, %s6672_s8  ;;  %v6056_v36 = vcombine.low %v8191_v11, %v8191_v11  ;;  %v1641_v51 = vpack.i.b16 %v10719_v49, %v10718_v33  ;;  %v6334_v49 = vcombine.high %v8041_v61, %v8041_v61  ;;  %v6307_v33 = vcombine.high %v8050_v20, %v8050_v20  ;;  %v10734_v20 = vld [vmem:[#allocation54_spill] sm:$0xff] }
 0x24b   : > { %v8209_v40 = vpop.permute.xlu0 %666 }
 0x24c   : > { %v8207_v62 = vpop.permute.xlu1 %681  ;;  %10717 = vst [vmem:[#allocation45_spill] sm:$0xff] %v8209_v40  ;;  %v8225_v40 = vrot.slane %v1647_v19, %v7049_v44  ;;  %v8239_v38 = vrot.slane %v1641_v51, %v7049_v44 }
 0x24d   : > { %10716 = vst [vmem:[#allocation36_spill] sm:$0xff] %v8207_v62  ;;  %1802 = vrot.lane.b32.xlu0 %v6056_v36, %s6671_s7  ;;  %v10722_v62 = vld [vmem:[#allocation59_spill] sm:$0xff] }
 0x24e   : > { %2128 = vrot.lane.b32.xlu1 %v6080_v46, %s6674_s27  ;;  %v2596_v30 = vcombine.low %v10722_v62, %v10721_v6  ;;  %v8236_v46 = vrot.slane %v2630_v48, %v7371_v0  ;;  %v1679_v53 = vcombine.low %v8239_v38, %v8225_v40  ;;  %v6329_v48 = vcombine.high %v8222_v24, %v8222_v24  ;;  %v10733_v24 = vld [vmem:[#allocation50_spill] sm:$0xff] }
 0x24f   : > { %v8231_v39 = vpop.permute.xlu0 %676 }
 0x250   : > { %v8229_v56 = vpop.permute.xlu1 %691  ;;  %10724 = vst [vmem:[#allocation33_spill] sm:$0xff] %v8231_v39  ;;  %10725 = vst [vmem:[#allocation44_spill] sm:$0xff] %v8236_v46  ;;  %v6341_v61 = vcombine.high %v8236_v46, %v8236_v46  ;;  %v8254_v51 = vrot.slane %v2596_v30, %v7371_v0  ;;  %v2524_v39 = vpack.i.b16 %v10734_v20, %v10733_v24 }
 0x251   : > { %10723 = vst [vmem:[#allocation31_spill] sm:$0xff] %v8229_v56  ;;  %2088 = vrot.lane.b32.xlu0 %v6322_v63, %s6673_s9  ;;  %v1956_v63 = vcombine.high %v8021_v42, %v8007_v58  ;;  %v4169_v58 = vshrl.u32 %v7878_v2, 16 }
 0x252   : > { %2454 = vrot.lane.b32.xlu1 %v6334_v49, %s6673_s9  ;;  %v10728_v49 = vld [vmem:[#allocation53_spill] sm:$0xff]  ;;  %v6102_v30 = vcombine.low %v8254_v51, %v8254_v51 }
 0x253   : > { %v8247_v36 = vpop.permute.xlu0 %686  ;;  %v8291_v24 = vrot.slane %v1956_v63, %v7371_v0 }
 0x254   : > { %v8245_v19 = vpop.permute.xlu1 %701  ;;  %10727 = vst [vmem:[#allocation40_spill] sm:$0xff] %v8247_v36 }
 0x255   : > { %10726 = vst [vmem:[#allocation30_spill] sm:$0xff] %v8245_v19  ;;  %2414 = vrot.lane.b32.xlu0 %v6329_v48, %s6672_s8  ;;  %v10729_v19 = vld [vmem:[#allocation56_spill] sm:$0xff]  ;;  %v4170_v48 = vshrl.u32 %v7900_v14, 16  ;;  %v10737_v14 = vld [vmem:[#allocation39_spill] sm:$0xff] }
 0x256   : > { %2725 = vrot.lane.b32.xlu1 %v6341_v61, %s6672_s8  ;;  %v2530_v56 = vpack.i.b16 %v10729_v19, %v10728_v49  ;;  %v8271_v61 = vrot.slane %v1679_v53, %v7371_v0 }
 0x257   : > { %v8266_v36 = vpop.permute.xlu0 %696 }
 0x258   : > { %v8264_v46 = vpop.permute.xlu1 %4138  ;;  %10731 = vst [vmem:[#allocation37_spill] sm:$0xff] %v8266_v36  ;;  %10732 = vst [vmem:[#allocation60_spill] sm:$0xff] %v8271_v61  ;;  %v8280_v42 = vrot.slane %v2530_v56, %v7049_v44  ;;  %v6313_v53 = vcombine.high %v8271_v61, %v8271_v61  ;;  %v6300_v36 = vcombine.high %v10737_v14, %v10737_v14 }
 0x259   : > { %10730 = vst [vmem:[#allocation28_spill] sm:$0xff] %v8264_v46  ;;  %2685 = vrot.lane.b32.xlu0 %v6102_v30, %s6671_s7  ;;  %v4171_v30 = vpack.i.b16 %v4170_v48, %v4169_v58  ;;  %v8296_v56 = vrot.slane %v2524_v39, %v7049_v44  ;;  %v6073_v48 = vcombine.low %v8291_v24, %v8291_v24 }
 0x25a   : > { %1551 = vrot.lane.b32.xlu1 %v6307_v33, %s6676_s26  ;;  %v4175_v33 = vshrl.u32 %v7898_v25, 16  ;;  %v6312_v58 = vcombine.high %v8028_v28, %v8028_v28  ;;  %v6330_v28 = vcombine.high %v8072_v1, %v8072_v1  ;;  %v10747_v1 = vcombine.high %v7615_v8, %v7618_v55 }
 0x25b   : > { %v8284_v49 = vpop.permute.xlu0 %4152  ;;  %v2562_v61 = vcombine.low %v8296_v56, %v8280_v42  ;;  %v8311_v39 = vrot.slane %v4171_v30, %v7049_v44  ;;  %v10743_v30 = vld [vmem:[#allocation10_spill] sm:$0xff] }
 0x25c   : > { %v8282_v19 = vpop.permute.xlu1 %4146  ;;  %10736 = vst [vmem:[#allocation53_spill] sm:$0xff] %v8284_v49  ;;  %v4176_v20 = vshrl.u32 %v8284_v49, 16  ;;  %v10742_v49 = vld [vmem:[#allocation11_spill] sm:$0xff] }
 0x25d   : > { %10735 = vst [vmem:[#allocation59_spill] sm:$0xff] %v8282_v19  ;;  %1280 = vrot.lane.b32.xlu0 %v6300_v36, %s6677_s16  ;;  %10740 = vst [vmem:[#allocation54_spill] sm:$0xff] %v8311_v39  ;;  %v3204_v25 = vcombine.low %v10743_v30, %v10742_v49 }
 0x25e   : > { %1807 = vrot.lane.b32.xlu1 %v6313_v53, %s6672_s8  ;;  %v4177_v2 = vpack.i.b16 %v4176_v20, %v4175_v33  ;;  %v4157_v33 = vshrl.u32 %v8264_v46, 16  ;;  %v8341_v20 = vrot.slane %v10747_v1, %v7371_v0  ;;  %v4163_v46 = vshrl.u32 %v8282_v19, 16  ;;  %v8370_v1 = vld [vmem:[#allocation2 + $0x28] sm:$0xf] }
 0x25f   : > { %v8304_v63 = vpop.permute.xlu0 %4142  ;;  %v8356_v55 = vrot.slane %v3204_v25, %v7371_v0 }
 0x260   : > { %v8302_v14 = vpop.permute.xlu1 %4684  ;;  %10739 = vst [vmem:[#allocation50_spill] sm:$0xff] %v8304_v63  ;;  %v8314_v53 = vrot.slane %v4177_v2, %v7049_v44  ;;  %v4158_v36 = vshrl.u32 %v8304_v63, 16  ;;  %v2355_v2 = vcombine.high %v8089_v59, %v8075_v57  ;;  %v6081_v8 = vcombine.low %v8341_v20, %v8341_v20 }
 0x261   : > { %10738 = vst [vmem:[#allocation56_spill] sm:$0xff] %v8302_v14  ;;  %1591 = vrot.lane.b32.xlu0 %v6312_v58, %s6677_s16  ;;  %v8335_v58 = vrot.slane %v2562_v61, %v7371_v0  ;;  %v6137_v31 = vcombine.low %v8356_v55, %v8356_v55 }
 0x262   : > { %10741 = vst [vmem:[#allocation39_spill] sm:$0xff] %v8314_v53  ;;  %2093 = vrot.lane.b32.xlu1 %v6073_v48, %s6674_s27  ;;  %v6318_v48 = vcombine.high %v8086_v26, %v8086_v26  ;;  %v4159_v39 = vpack.i.b16 %v4158_v36, %v4157_v33  ;;  %v8359_v36 = vrot.slane %v2355_v2, %v7371_v0  ;;  %v8361_v33 = vld [vmem:[#allocation2] sm:$0xf]  ;;  %v8376_v2 = vld [vmem:[#allocation2 + $0x3c] sm:$0xf] }
 0x263   : > { %v8330_v63 = vpop.permute.xlu0 %4150  ;;  %10746 = vst [vmem:[#allocation122_spill] sm:$0xff] %v8335_v58  ;;  %v6337_v53 = vcombine.high %v8335_v58, %v8335_v58  ;;  %v8373_v58 = vld [vmem:[#allocation2 + $0x14] sm:$0xf] }
 0x264   : > { %v8328_v35 = vpop.permute.xlu1 %4692  ;;  %10745 = vst [vmem:[#allocation121_spill] sm:$0xff] %v8330_v63  ;;  %v4164_v57 = vshrl.u32 %v8330_v63, 16  ;;  %v3066_v25 = vshrl.u32 %v8373_v58, 16  ;;  %v3072_v63 = vshrl.u32 %v8376_v2, 16  ;;  %v6098_v29 = vcombine.low %v8359_v36, %v8359_v36 }
 0x265   : > { %10744 = vst [vmem:[#allocation120_spill] sm:$0xff] %v8328_v35  ;;  %1847 = vrot.lane.b32.xlu0 %v6318_v48, %s6673_s9 }
 0x266   : > { %2419 = vrot.lane.b32.xlu1 %v6330_v28, %s6673_s9  ;;  %v4165_v59 = vpack.i.b16 %v4164_v57, %v4163_v46  ;;  %v3065_v46 = vshrl.u32 %v8361_v33, 16  ;;  %v8365_v28 = vrot.slane %v4159_v39, %v7049_v44  ;;  %v3071_v57 = vshrl.u32 %v8370_v1, 16 }
 0x267   : > { %v8349_v61 = vpop.permute.xlu0 %4688  ;;  %v4713_v39 = vshrl.u32 %v8302_v14, 16 }
 0x268   : > { %v8347_v26 = vpop.permute.xlu1 %4682  ;;  %10749 = vst [vmem:[#allocation124_spill] sm:$0xff] %v8349_v61  ;;  %10750 = vst [vmem:[#allocation125_spill] sm:$0xff] %v8365_v28  ;;  %v8368_v48 = vrot.slane %v4165_v59, %v7049_v44  ;;  %v4714_v19 = vshrl.u32 %v8349_v61, 16  ;;  %v4719_v61 = vshrl.u32 %v8328_v35, 16  ;;  %v3067_v21 = vpack.i.b16 %v3066_v25, %v3065_v46  ;;  %v10794_v35 = vld [vmem:[#allocation74_spill] sm:$0xff] }
 0x269   : > { %10748 = vst [vmem:[#allocation123_spill] sm:$0xff] %v8347_v26  ;;  %2133 = vrot.lane.b32.xlu0 %v6081_v8, %s6675_s18  ;;  %v3073_v14 = vpack.i.b16 %v3072_v63, %v3071_v57  ;;  %v10754_v28 = vcombine.high %v7438_v7, %v7441_v52  ;;  %v8442_v46 = vrot.slane %v2287_v50, %v7371_v0 }
 0x26a   : > { %10751 = vst [vmem:[#allocation126_spill] sm:$0xff] %v8368_v48  ;;  %2690 = vrot.lane.b32.xlu1 %v6337_v53, %s6672_s8  ;;  %v4715_v53 = vpack.i.b16 %v4714_v19, %v4713_v39  ;;  %v1748_v19 = vcombine.high %v8127_v16, %v8113_v54  ;;  %v8422_v10 = vrot.slane %v3067_v21, %v7049_v44 }
 0x26b   : > { %v8387_v30 = vpop.permute.xlu0 %4696  ;;  %v8401_v48 = vrot.slane %v10754_v28, %v7371_v0  ;;  %v8425_v54 = vrot.slane %v3073_v14, %v7049_v44  ;;  %v6308_v14 = vcombine.high %v8152_v17, %v8152_v17  ;;  %v6520_v17 = vld [vmem:[#allocation2 + $0x2c] sm:$0xf] }
 0x26c   : > { %v8385_v49 = vpop.permute.xlu1 %4690  ;;  %10753 = vst [vmem:[#allocation128_spill] sm:$0xff] %v8387_v30  ;;  %v4720_v8 = vshrl.u32 %v8387_v30, 16  ;;  %v8416_v7 = vrot.slane %v4715_v53, %v7049_v44  ;;  %v8445_v28 = vrot.slane %v1748_v19, %v7371_v0 }
 0x26d   : > { %10752 = vst [vmem:[#allocation127_spill] sm:$0xff] %v8385_v49  ;;  %2459 = vrot.lane.b32.xlu0 %v6098_v29, %s6674_s27  ;;  %v6314_v29 = vcombine.high %v8191_v11, %v8191_v11  ;;  %v6074_v21 = vcombine.low %v8401_v48, %v8401_v48  ;;  %v4707_v57 = vshrl.u32 %v8385_v49, 16  ;;  %v3136_v53 = vcombine.low %v8422_v10, %v8425_v54 }
 0x26e   : > { %3260 = vrot.lane.b32.xlu1 %v6137_v31, %s6671_s7  ;;  %v4721_v59 = vpack.i.b16 %v4720_v8, %v4719_v61  ;;  %v6342_v31 = vcombine.high %v8106_v41, %v8106_v41  ;;  %10757 = vst [vmem:[#allocation131_spill] sm:$0xff] %v8416_v7  ;;  %v4701_v41 = vshrl.u32 %v8347_v26, 16  ;;  %v10784_v26 = vld [vmem:[#allocation58_spill] sm:$0xff]  ;;  %v3760_v49 = vcombine.low %v7811_v60, %v7814_v23 }
 0x26f   : > { %v8409_v63 = vpop.permute.xlu0 %4686 }
 0x270   : > { %v8407_v39 = vpop.permute.xlu1 %4958  ;;  %10756 = vst [vmem:[#allocation130_spill] sm:$0xff] %v8409_v63  ;;  %v8419_v52 = vrot.slane %v4721_v59, %v7049_v44  ;;  %v4702_v16 = vshrl.u32 %v8409_v63, 16  ;;  %v10783_v63 = vld [vmem:[#allocation55_spill] sm:$0xff] }
 0x271   : > { %10755 = vst [vmem:[#allocation129_spill] sm:$0xff] %v8407_v39  ;;  %2730 = vrot.lane.b32.xlu0 %v6342_v31, %s6673_s9 }
 0x272   : > { %10758 = vst [vmem:[#allocation132_spill] sm:$0xff] %v8419_v52  ;;  %1812 = vrot.lane.b32.xlu1 %v6314_v29, %s6673_s9  ;;  %v4703_v25 = vpack.i.b16 %v4702_v16, %v4701_v41  ;;  %v6521_v29 = vld [vmem:[#allocation2 + $0x40] sm:$0xf]  ;;  %v6091_v16 = vcombine.low %v8442_v46, %v8442_v46  ;;  %v6066_v41 = vcombine.low %v8445_v28, %v8445_v28  ;;  %v10797_v52 = vld [vmem:[#allocation61_spill] sm:$0xff] }
 0x273   : > { %v8435_v61 = vpop.permute.xlu0 %4694  ;;  %v3082_v50 = vpack.i.b16 %v6521_v29, %v6520_v17  ;;  %v8470_v17 = vrot.slane %v3136_v53, %v7371_v0  ;;  %v2631_v29 = vcombine.high %v8197_v27, %v8179_v4  ;;  %v6338_v53 = vcombine.high %v8254_v51, %v8254_v51 }
 0x274   : > { %v8433_v5 = vpop.permute.xlu1 %4962  ;;  %10760 = vst [vmem:[#allocation134_spill] sm:$0xff] %v8435_v61  ;;  %v4708_v59 = vshrl.u32 %v8435_v61, 16  ;;  %v10769_v4 = vcombine.high %v7557_v15, %v7560_v32 }
 0x275   : > { %10759 = vst [vmem:[#allocation133_spill] sm:$0xff] %v8433_v5  ;;  %1556 = vrot.lane.b32.xlu0 %v6308_v14, %s6677_s16  ;;  %v8477_v39 = vrot.slane %v3082_v50, %v7049_v44 }
 0x276   : > { %2098 = vrot.lane.b32.xlu1 %v6074_v21, %s6675_s18  ;;  %v4709_v8 = vpack.i.b16 %v4708_v59, %v4707_v57  ;;  %v8462_v21 = vrot.slane %v4703_v25, %v7049_v44  ;;  %v6522_v57 = vld [vmem:[#allocation2 + $0x4] sm:$0xf]  ;;  %v6523_v59 = vld [vmem:[#allocation2 + $0x18] sm:$0xf]  ;;  %v8493_v27 = vrot.slane %v10769_v4, %v7371_v0 }
 0x277   : > { %v8455_v19 = vpop.permute.xlu0 %4960  ;;  %v3076_v11 = vpack.i.b16 %v6523_v59, %v6522_v57  ;;  %v6130_v59 = vcombine.low %v8470_v17, %v8470_v17 }
 0x278   : > { %v8453_v31 = vpop.permute.xlu1 %4966  ;;  %10762 = vst [vmem:[#allocation136_spill] sm:$0xff] %v8455_v19  ;;  %10763 = vst [vmem:[#allocation137_spill] sm:$0xff] %v8462_v21  ;;  %v8465_v14 = vrot.slane %v4709_v8, %v7049_v44  ;;  %v10765_v8 = vld [vmem:[#allocation66_spill] sm:$0xff]  ;;  %v6099_v15 = vcombine.low %v8493_v27, %v8493_v27 }
 0x279   : > { %10761 = vst [vmem:[#allocation135_spill] sm:$0xff] %v8453_v31  ;;  %1852 = vrot.lane.b32.xlu0 %v6066_v41, %s6674_s27  ;;  %v10766_v31 = vld [vmem:[#allocation65_spill] sm:$0xff]  ;;  %v6327_v41 = vcombine.high %v8188_v34, %v8188_v34  ;;  %v8496_v50 = vrot.slane %v3076_v11, %v7049_v44  ;;  %v8514_v11 = vrot.slane %v2631_v29, %v7371_v0 }
 0x27a   : > { %10764 = vst [vmem:[#allocation138_spill] sm:$0xff] %v8465_v14  ;;  %2424 = vrot.lane.b32.xlu1 %v6091_v16, %s6674_s27  ;;  %v3484_v5 = vcombine.low %v10766_v31, %v10765_v8 }
 0x27b   : > { %v8483_v16 = vpop.permute.xlu0 %4964  ;;  %v3170_v51 = vcombine.low %v8496_v50, %v8477_v39  ;;  %v6112_v29 = vcombine.low %v8514_v11, %v8514_v11 }
 0x27c   : > { %v8481_v57 = vpop.permute.xlu1 %4970  ;;  %10768 = vst [vmem:[#allocation65_spill] sm:$0xff] %v8483_v16  ;;  %v8511_v32 = vrot.slane %v3484_v5, %v7371_v0  ;;  %v10782_v16 = vld [vmem:[#allocation77_spill] sm:$0xff] }
 0x27d   : > { %10767 = vst [vmem:[#allocation66_spill] sm:$0xff] %v8481_v57  ;;  %2138 = vrot.lane.b32.xlu0 %v6327_v41, %s6676_s26  ;;  %v1680_v41 = vcombine.high %v8239_v38, %v8225_v40  ;;  %v3070_v40 = vpack.i.b16 %v8376_v2, %v8370_v1 }
 0x27e   : > { %2695 = vrot.lane.b32.xlu1 %v6338_v53, %s6673_s9  ;;  %v8519_v53 = vrot.slane %v3170_v51, %v7371_v0  ;;  %v6151_v5 = vcombine.low %v8511_v32, %v8511_v32  ;;  %v3064_v51 = vpack.i.b16 %v8373_v58, %v8361_v33 }
 0x27f   : > { %v8506_v25 = vpop.permute.xlu0 %4968  ;;  %v8558_v33 = vrot.slane %v3070_v40, %v7049_v44 }
 0x280   : > { %v8504_v34 = vpop.permute.xlu1 %1285  ;;  %10770 = vst [vmem:[#allocation139_spill] sm:$0xff] %v8506_v25  ;;  %10771 = vst [vmem:[#allocation140_spill] sm:$0xff] %v8519_v53  ;;  %v8555_v58 = vrot.slane %v3064_v51, %v7049_v44 }
 0x281   : > { %2464 = vrot.lane.b32.xlu0 %v6099_v15, %s6675_s18 }
 0x282   : > { %3225 = vrot.lane.b32.xlu1 %v6130_v59, %s6671_s7  ;;  %v10773_v59 = vcombine.high %v7646_v37, %v7649_v45  ;;  %v6357_v37 = vcombine.high %v8519_v53, %v8519_v53  ;;  %v8552_v45 = vrot.slane %v1680_v41, %v7371_v0  ;;  %v10779_v53 = vld [vmem:[#allocation72_spill] sm:$0xff] }
 0x283   : > { %v8525_v19 = vpop.permute.xlu0 %4972 }
 0x284   : > { %v8523_v4 = vpop.permute.xlu1 %1561  ;;  %10772 = vst [vmem:[#allocation141_spill] sm:$0xff] %v8525_v19  ;;  %v8535_v15 = vrot.slane %v10773_v59, %v7371_v0  ;;  %v6059_v41 = vcombine.low %v8552_v45, %v8552_v45  ;;  %v10774_v59 = vcombine.high %v7484_v9, %v7487_v12 }
 0x285   : > { %2735 = vrot.lane.b32.xlu0 %v6112_v29, %s6674_s27  ;;  %v3102_v29 = vcombine.low %v8555_v58, %v8558_v33 }
 0x286   : > { %3540 = vrot.lane.b32.xlu1 %v6151_v5, %s6671_s7  ;;  %v6067_v25 = vcombine.low %v8535_v15, %v8535_v15  ;;  %v6328_v5 = vcombine.high %v8341_v20, %v8341_v20  ;;  %v8580_v51 = vrot.slane %v10774_v59, %v7371_v0 }
 0x287   : > { %v8545_v57 = vpop.permute.xlu0 %1290  ;;  %v8599_v9 = vrot.slane %v3102_v29, %v7371_v0 }
 0x288   : > { %v8543_v38 = vpop.permute.xlu1 %1526  ;;  %v6092_v12 = vcombine.low %v8580_v51, %v8580_v51 }
 0x289   : > { %3265 = vrot.lane.b32.xlu0 %v6357_v37, %s6672_s8  ;;  %v6335_v37 = vcombine.high %v8359_v36, %v8359_v36  ;;  %10776 = vst [vmem:[#allocation142_spill] sm:$0xff] %v8599_v9 }
 0x28a   : > { %1857 = vrot.lane.b32.xlu1 %v6067_v25, %s6675_s18  ;;  %v2563_v25 = vcombine.high %v8296_v56, %v8280_v42  ;;  %v10775_v42 = vcombine.high %v10684_v3, %v7590_v22  ;;  %v10780_v22 = vld [vmem:[#allocation71_spill] sm:$0xff] }
 0x28b   : > { %v8564_v2 = vpop.permute.xlu0 %1295  ;;  %v2940_v3 = vcombine.low %v10780_v22, %v10779_v53 }
 0x28c   : > { %v8562_v1 = vpop.permute.xlu1 %1300  ;;  %v8594_v56 = vrot.slane %v10775_v42, %v7371_v0  ;;  %v8604_v36 = vrot.slane %v2563_v25, %v7371_v0  ;;  %v10781_v42 = vld [vmem:[#allocation78_spill] sm:$0xff]  ;;  %v3356_v25 = vpack.i.b16 %v10784_v26, %v10783_v63 }
 0x28d   : > { %1817 = vrot.lane.b32.xlu0 %v6059_v41, %s6674_s27  ;;  %v10778_v41 = vld [vmem:[#allocation62_spill] sm:$0xff]  ;;  %v8639_v63 = vrot.slane %v2940_v3, %v7371_v0 }
 0x28e   : > { %2143 = vrot.lane.b32.xlu1 %v6328_v5, %s6677_s16  ;;  %v6323_v5 = vcombine.high %v8291_v24, %v8291_v24  ;;  %v10777_v24 = vld [vmem:[#allocation57_spill] sm:$0xff]  ;;  %v6113_v29 = vcombine.low %v8594_v56, %v8594_v56 }
 0x28f   : > { %v8584_v40 = vpop.permute.xlu0 %1566  ;;  %v3362_v59 = vpack.i.b16 %v10778_v41, %v10777_v24  ;;  %v6353_v24 = vcombine.high %v8599_v9, %v8599_v9  ;;  %v6105_v41 = vcombine.low %v8604_v36, %v8604_v36  ;;  %v6123_v3 = vcombine.low %v8639_v63, %v8639_v63 }
 0x290   : > { %v8582_v20 = vpop.permute.xlu1 %1571 }
 0x291   : > { %2103 = vrot.lane.b32.xlu0 %v6323_v5, %s6676_s26  ;;  %v8627_v61 = vrot.slane %v3362_v59, %v7049_v44 }
 0x292   : > { %2469 = vrot.lane.b32.xlu1 %v6335_v37, %s6676_s26  ;;  %v3416_v37 = vcombine.low %v10782_v16, %v10781_v42  ;;  %v10798_v42 = vld [vmem:[#allocation64_spill] sm:$0xff] }
 0x293   : > { %v8614_v5 = vpop.permute.xlu0 %1531  ;;  %v2812_v16 = vpack.i.b16 %v10798_v42, %v10797_v52 }
 0x294   : > { %v8612_v19 = vpop.permute.xlu1 %1305  ;;  %v8636_v26 = vrot.slane %v3416_v37, %v7371_v0 }
 0x295   : > { %2429 = vrot.lane.b32.xlu0 %v6092_v12, %s6675_s18  ;;  %v8642_v12 = vrot.slane %v3356_v25, %v7049_v44  ;;  %v8657_v25 = vrot.slane %v3760_v49, %v7371_v0  ;;  %v10789_v49 = vcombine.high %v10702_v47, %v10701_v43  ;;  %v10791_v43 = vld [vmem:[#allocation63_spill] sm:$0xff] }
 0x296   : > { %2740 = vrot.lane.b32.xlu1 %v6113_v29, %s6675_s18  ;;  %v6144_v37 = vcombine.low %v8636_v26, %v8636_v26 }
 0x297   : > { %v8633_v14 = vpop.permute.xlu0 %2113  ;;  %v3450_v59 = vcombine.low %v8642_v12, %v8627_v61 }
 0x298   : > { %v8631_v21 = vpop.permute.xlu1 %1576  ;;  %10785 = vst [vmem:[#allocation57_spill] sm:$0xff] %v8633_v14  ;;  %v6358_v14 = vcombine.high %v8356_v55, %v8356_v55  ;;  %v6319_v55 = vcombine.high %v8445_v28, %v8445_v28  ;;  %v2872_v28 = vcombine.low %v7860_v13, %v7864_v18  ;;  %v10813_v18 = vld [vmem:[#allocation76_spill] sm:$0xff] }
 0x299   : > { %2700 = vrot.lane.b32.xlu0 %v6105_v41, %s6674_s27  ;;  %v8670_v30 = vrot.slane %v3450_v59, %v7371_v0 }
 0x29a   : > { %3230 = vrot.lane.b32.xlu1 %v6353_v24, %s6672_s8  ;;  %v8731_v42 = vrot.slane %v2872_v28, %v7371_v0 }
 0x29b   : > { %v8650_v9 = vpop.permute.xlu0 %1536  ;;  %10788 = vst [vmem:[#allocation55_spill] sm:$0xff] %v8670_v30  ;;  %v6365_v59 = vcombine.high %v8670_v30, %v8670_v30 }
 0x29c   : > { %v8648_v29 = vpop.permute.xlu1 %2118 }
 0x29d   : > { %10786 = vst [vmem:[#allocation62_spill] sm:$0xff] %v8648_v29  ;;  %2996 = vrot.lane.b32.xlu0 %v6123_v3, %s6671_s7  ;;  %v6165_v29 = vcombine.low %v8657_v25, %v8657_v25 }
 0x29e   : > { %3505 = vrot.lane.b32.xlu1 %v6144_v37, %s6671_s7  ;;  %v8678_v37 = vrot.slane %v10789_v49, %v7371_v0 }
 0x29f   : > { %v8663_v41 = vpop.permute.xlu0 %2078 }
 0x2a0   : > { %v8661_v24 = vpop.permute.xlu1 %1310  ;;  %10787 = vst [vmem:[#allocation71_spill] sm:$0xff] %v8663_v41  ;;  %v6060_v47 = vcombine.low %v8678_v37, %v8678_v37 }
 0x2a1   : > { %3270 = vrot.lane.b32.xlu0 %v6358_v14, %s6673_s9  ;;  %v6331_v14 = vcombine.high %v8442_v46, %v8442_v46  ;;  %v10796_v46 = vcombine.high %v10722_v62, %v10721_v6 }
 0x2a2   : > { %3816 = vrot.lane.b32.xlu1 %v6165_v29, %s6671_s7  ;;  %v10792_v29 = vld [vmem:[#allocation68_spill] sm:$0xff] }
 0x2a3   : > { %v8682_v41 = vpop.permute.xlu0 %2444  ;;  %v2818_v49 = vpack.i.b16 %v10792_v29, %v10791_v43  ;;  %v10799_v43 = vld [vmem:[#allocation67_spill] sm:$0xff]  ;;  %v10800_v29 = vld [vmem:[#allocation70_spill] sm:$0xff] }
 0x2a4   : > { %v8680_v3 = vpop.permute.xlu1 %1581  ;;  %10790 = vst [vmem:[#allocation58_spill] sm:$0xff] %v8682_v41  ;;  %v10793_v41 = vld [vmem:[#allocation69_spill] sm:$0xff]  ;;  %v3344_v23 = vpack.i.b16 %v10800_v29, %v10799_v43  ;;  %v6354_v43 = vcombine.high %v8470_v17, %v8470_v17  ;;  %v6343_v29 = vcombine.high %v8514_v11, %v8514_v11 }
 0x2a5   : > { %3545 = vrot.lane.b32.xlu0 %v6365_v59, %s6672_s8  ;;  %v3350_v7 = vpack.i.b16 %v10794_v35, %v10793_v41  ;;  %v8708_v59 = vrot.slane %v10796_v46, %v7371_v0  ;;  %v6324_v35 = vcombine.high %v8401_v48, %v8401_v48  ;;  %v8719_v41 = vrot.slane %v2818_v49, %v7049_v44  ;;  %v10812_v11 = vld [vmem:[#allocation73_spill] sm:$0xff] }
 0x2a6   : > { %1862 = vrot.lane.b32.xlu1 %v6319_v55, %s6676_s26  ;;  %v8737_v48 = vrot.slane %v3344_v23, %v7049_v44  ;;  %v6336_v23 = vcombine.high %v8493_v27, %v8493_v27  ;;  %v3632_v13 = vpack.i.b16 %v10813_v18, %v10812_v11 }
 0x2a7   : > { %v8702_v55 = vpop.permute.xlu0 %1541  ;;  %v8722_v6 = vrot.slane %v3350_v7, %v7049_v44  ;;  %v6106_v52 = vcombine.low %v8708_v59, %v8708_v59 }
 0x2a8   : > { %v8700_v30 = vpop.permute.xlu1 %2083 }
 0x2a9   : > { %10795 = vst [vmem:[#allocation63_spill] sm:$0xff] %v8700_v30  ;;  %1822 = vrot.lane.b32.xlu0 %v6060_v47, %s6675_s18  ;;  %v3382_v47 = vcombine.low %v8737_v48, %v8722_v6 }
 0x2aa   : > { %2434 = vrot.lane.b32.xlu1 %v6331_v14, %s6676_s26  ;;  %v8734_v14 = vrot.slane %v2812_v16, %v7049_v44  ;;  %v6116_v16 = vcombine.low %v8731_v42, %v8731_v42 }
 0x2ab   : > { %v8726_v46 = vpop.permute.xlu0 %1837 }
 0x2ac   : > { %v8724_v62 = vpop.permute.xlu1 %2409  ;;  %10802 = vst [vmem:[#allocation69_spill] sm:$0xff] %v8726_v46  ;;  %v2906_v7 = vcombine.low %v8734_v14, %v8719_v41  ;;  %v10808_v46 = vld [vmem:[#allocation96_spill] sm:$0xff] }
 0x2ad   : > { %10801 = vst [vmem:[#allocation68_spill] sm:$0xff] %v8724_v62  ;;  %2108 = vrot.lane.b32.xlu0 %v6324_v35, %s6677_s16  ;;  %v3171_v35 = vcombine.high %v8496_v50, %v8477_v39  ;;  %v10806_v62 = vld [vmem:[#allocation80_spill] sm:$0xff] }
 0x2ae   : > { %2705 = vrot.lane.b32.xlu1 %v6106_v52, %s6675_s18  ;;  %v10805_v52 = vld [vmem:[#allocation75_spill] sm:$0xff]  ;;  %v8773_v17 = vrot.slane %v2906_v7, %v7371_v0 }
 0x2af   : > { %v8747_v28 = vpop.permute.xlu0 %2123  ;;  %v3638_v30 = vpack.i.b16 %v10806_v62, %v10805_v52  ;;  %v8780_v39 = vrot.slane %v3171_v35, %v7371_v0 }
 0x2b0   : > { %v8745_v49 = vpop.permute.xlu1 %2720  ;;  %10804 = vst [vmem:[#allocation61_spill] sm:$0xff] %v8747_v28  ;;  %10811 = vst [vmem:[#allocation70_spill] sm:$0xff] %v8773_v17  ;;  %v6349_v18 = vcombine.high %v8773_v17, %v8773_v17 }
 0x2b1   : > { %10803 = vst [vmem:[#allocation74_spill] sm:$0xff] %v8745_v49  ;;  %2474 = vrot.lane.b32.xlu0 %v6336_v23, %s6677_s16  ;;  %v10807_v49 = vld [vmem:[#allocation97_spill] sm:$0xff]  ;;  %v8770_v23 = vrot.slane %v3382_v47, %v7371_v0  ;;  %v8783_v50 = vrot.slane %v3638_v30, %v7049_v44 }
 0x2b2   : > { %2961 = vrot.lane.b32.xlu1 %v6116_v16, %s6671_s7  ;;  %v3692_v28 = vcombine.low %v10808_v46, %v10807_v49  ;;  %v10820_v46 = vld [vmem:[#allocation79_spill] sm:$0xff] }
 0x2b3   : > { %v8767_v16 = vpop.permute.xlu0 %2449  ;;  %10810 = vst [vmem:[#allocation67_spill] sm:$0xff] %v8770_v23  ;;  %v6361_v7 = vcombine.high %v8770_v23, %v8770_v23 }
 0x2b4   : > { %v8765_v27 = vpop.permute.xlu1 %1315  ;;  %10809 = vst [vmem:[#allocation64_spill] sm:$0xff] %v8767_v16  ;;  %v6366_v16 = vcombine.high %v8511_v32, %v8511_v32  ;;  %v6332_v32 = vcombine.high %v8580_v51, %v8580_v51 }
 0x2b5   : > { %2745 = vrot.lane.b32.xlu0 %v6343_v29, %s6676_s26  ;;  %v8797_v29 = vrot.slane %v3632_v13, %v7049_v44  ;;  %v10815_v13 = vld [vmem:[#allocation81_spill] sm:$0xff] }
 0x2b6   : > { %3235 = vrot.lane.b32.xlu1 %v6354_v43, %s6673_s9  ;;  %v8794_v43 = vrot.slane %v3692_v28, %v7371_v0  ;;  %v6140_v28 = vcombine.low %v8780_v39, %v8780_v39 }
 0x2b7   : > { %v8787_v47 = vpop.permute.xlu0 %1275  ;;  %v3726_v30 = vcombine.low %v8797_v29, %v8783_v50 }
 0x2b8   : > { %v8785_v62 = vpop.permute.xlu1 %1586  ;;  %v6158_v11 = vcombine.low %v8794_v43, %v8794_v43 }
 0x2b9   : > { %3001 = vrot.lane.b32.xlu0 %v6349_v18, %s6672_s8  ;;  %v8824_v49 = vrot.slane %v3726_v30, %v7371_v0 }
 0x2ba   : > { %3510 = vrot.lane.b32.xlu1 %v6361_v7, %s6672_s8  ;;  %v10816_v7 = vld [vmem:[#allocation86_spill] sm:$0xff] }
 0x2bb   : > { %v8805_v52 = vpop.permute.xlu0 %1546  ;;  %v2806_v18 = vpack.i.b16 %v10816_v7, %v10815_v13  ;;  %10819 = vst [vmem:[#allocation76_spill] sm:$0xff] %v8824_v49  ;;  %v6373_v30 = vcombine.high %v8824_v49, %v8824_v49  ;;  %v10825_v7 = vld [vmem:[#allocation41_spill] sm:$0xff]  ;;  %v10830_v49 = vld [vmem:[#allocation52_spill] sm:$0xff] }
 0x2bc   : > { %v8803_v35 = vpop.permute.xlu1 %1842 }
 0x2bd   : > { %10814 = vst [vmem:[#allocation75_spill] sm:$0xff] %v8803_v35  ;;  %3275 = vrot.lane.b32.xlu0 %v6140_v28, %s6674_s27  ;;  %v6315_v35 = vcombine.high %v8552_v45, %v8552_v45  ;;  %v8831_v28 = vrot.slane %v2806_v18, %v7049_v44  ;;  %v10826_v18 = vld [vmem:[#allocation10_spill] sm:$0xff] }
 0x2be   : > { %3781 = vrot.lane.b32.xlu1 %v6158_v11, %s6671_s7  ;;  %v10821_v11 = vld [vmem:[#allocation82_spill] sm:$0xff] }
 0x2bf   : > { %v8817_v17 = vpop.permute.xlu0 %1802  ;;  %v2800_v60 = vpack.i.b16 %v10821_v11, %v10820_v46  ;;  %v10827_v11 = vld [vmem:[#allocation11_spill] sm:$0xff] }
 0x2c0   : > { %v8815_v23 = vpop.permute.xlu1 %2128  ;;  %10818 = vst [vmem:[#allocation73_spill] sm:$0xff] %v8817_v17  ;;  %v10828_v17 = vcombine.high %v10826_v18, %v10827_v11  ;;  %v10832_v18 = vld [vmem:[#allocation33_spill] sm:$0xff] }
 0x2c1   : > { %10817 = vst [vmem:[#allocation80_spill] sm:$0xff] %v8815_v23  ;;  %3550 = vrot.lane.b32.xlu0 %v6366_v16, %s6673_s9  ;;  %v8842_v46 = vrot.slane %v2800_v60, %v7049_v44  ;;  %v10829_v60 = vld [vmem:[#allocation43_spill] sm:$0xff] }
 0x2c2   : > { %1827 = vrot.lane.b32.xlu1 %v6315_v35, %s6676_s26  ;;  %v10824_v35 = vld [vmem:[#allocation48_spill] sm:$0xff] }
 0x2c3   : > { %v8835_v45 = vpop.permute.xlu0 %2088  ;;  %v1058_v16 = vsel %vm703_vm13, %v10825_v7, %v10824_v35  ;;  %v2838_v51 = vcombine.low %v8842_v46, %v8831_v28  ;;  %v6344_v35 = vcombine.high %v8594_v56, %v8594_v56  ;;  %v10831_v7 = vld [vmem:[#allocation116_spill] sm:$0xff] }
 0x2c4   : > { %v8833_v13 = vpop.permute.xlu1 %2454  ;;  %10823 = vst [vmem:[#allocation86_spill] sm:$0xff] %v8835_v45  ;;  %v727_v45 = vsel %vm703_vm13, %v10830_v49, %v10829_v60  ;;  %v6320_v49 = vcombine.high %v8535_v15, %v8535_v15  ;;  %v10835_v60 = vld [vmem:[#allocation47_spill] sm:$0xff]  ;;  %v3103_v15 = vcombine.high %v8555_v58, %v8558_v33 }
 0x2c5   : > { %10822 = vst [vmem:[#allocation81_spill] sm:$0xff] %v8833_v13  ;;  %v8851_v13 = vrot.slane %v10828_v17, %v7371_v0  ;;  %3821 = vrot.lane.b32.xlu0 %v6373_v30, %s6672_s8  ;;  %v1060_v17 = vsel %vm707_vm14, %v1058_v16, %v10831_v7  ;;  %v729_v11 = vsel %vm707_vm14, %v727_v45, %v10832_v18 }
 0x2c6   : > { %2439 = vrot.lane.b32.xlu1 %v6332_v32, %s6677_s16  ;;  %v10833_v32 = vld [vmem:[#allocation93_spill] sm:$0xff]  ;;  %v1062_v56 = vsel %vm710_vm15, %v1060_v17, %v10835_v60  ;;  %v3451_v7 = vcombine.high %v8642_v12, %v8627_v61  ;;  %v10836_v17 = vld [vmem:[#allocation36_spill] sm:$0xff]  ;;  %v6339_v18 = vcombine.high %v8604_v36, %v8604_v36  ;;  %v10840_v60 = vld [vmem:[#allocation51_spill] sm:$0xff]  ;;  %v6350_v12 = vcombine.high %v8639_v63, %v8639_v63 }
 0x2c7   : > { %v1334_v30 = vsel %vm703_vm13, %v10833_v32, %v8504_v34  ;;  %v8871_v53 = vpop.permute.xlu0 %2414  ;;  %v6141_v45 = vcombine.low %v8851_v13, %v8851_v13  ;;  %v8894_v32 = vrot.slane %v2838_v51, %v7371_v0  ;;  %v10843_v36 = vld [vmem:[#allocation85_spill] sm:$0xff] }
 0x2c8   : > { %v8869_v23 = vpop.permute.xlu1 %2725  ;;  %10834 = vst [vmem:[#allocation79_spill] sm:$0xff] %v8871_v53  ;;  %v1336_v16 = vsel %vm707_vm14, %v1334_v30, %v8545_v57  ;;  %v731_v57 = vsel %vm710_vm15, %v729_v11, %v10836_v17  ;;  %v10839_v30 = vld [vmem:[#allocation92_spill] sm:$0xff]  ;;  %v10845_v17 = vld [vmem:[#allocation118_spill] sm:$0xff] }
 0x2c9   : > { %v1338_v34 = vsel %vm710_vm15, %v1336_v16, %v8564_v2  ;;  %1867 = vrot.lane.b32.xlu0 %v6320_v49, %s6677_s16  ;;  %10837 = vst [vmem:[#allocation82_spill] sm:$0xff] %v8894_v32  ;;  %v10838_v2 = vld [vmem:[#allocation87_spill] sm:$0xff]  ;;  %v1064_v49 = vsel %vm713_vm0, %v1062_v56, %v10840_v60  ;;  %v10841_v16 = vld [vmem:[#allocation40_spill] sm:$0xff]  ;;  %v8924_v60 = vrot.slane %v3103_v15, %v7371_v0  ;;  %v10849_v15 = vld [vmem:[#allocation37_spill] sm:$0xff] }
 0x2ca   : > { %2750 = vrot.lane.b32.xlu1 %v6344_v35, %s6677_s16  ;;  %v3626_v35 = vpack.i.b16 %v10839_v30, %v10838_v2  ;;  %v733_v58 = vsel %vm713_vm0, %v731_v57, %v10841_v16  ;;  %v10844_v11 = vld [vmem:[#allocation88_spill] sm:$0xff]  ;;  %v1066_v53 = vsel %vm716_vm2, %v1064_v49, %v10845_v17  ;;  %v1340_v57 = vsel %vm713_vm0, %v1338_v34, %v8562_v1  ;;  %v10847_v49 = vld [vmem:[#allocation31_spill] sm:$0xff]  ;;  %v10848_v16 = vld [vmem:[#allocation49_spill] sm:$0xff] }
 0x2cb   : > { %v8904_v61 = vpop.permute.xlu0 %2685  ;;  %v3620_v51 = vpack.i.b16 %v10844_v11, %v10843_v36  ;;  %v10846_v2 = vld [vmem:[#allocation100_spill] sm:$0xff]  ;;  %v1342_v63 = vsel %vm716_vm2, %v1340_v57, %v8612_v19  ;;  %v6345_v34 = vcombine.high %v8894_v32, %v8894_v32  ;;  %v10850_v11 = vld [vmem:[#allocation27_spill] sm:$0xff] }
 0x2cc   : > { %v8902_v33 = vpop.permute.xlu1 %1551  ;;  %10842 = vst [vmem:[#allocation48_spill] sm:$0xff] %v8904_v61  ;;  %v1610_v56 = vsel %vm703_vm13, %v10846_v2, %v8523_v4  ;;  %v735_v4 = vsel %vm716_vm2, %v733_v58, %v10847_v49  ;;  %v1344_v1 = vsel %vm719_vm3, %v1342_v63, %v8661_v24  ;;  %v8936_v19 = vrot.slane %v3626_v35, %v7049_v44  ;;  %v10851_v2 = vld [vmem:[#allocation30_spill] sm:$0xff] }
 0x2cd   : > { %v1612_v30 = vsel %vm707_vm14, %v1610_v56, %v8584_v40  ;;  %2710 = vrot.lane.b32.xlu0 %v6339_v18, %s6676_s26  ;;  %v8933_v40 = vrot.slane %v3451_v7, %v7371_v0  ;;  %v1068_v18 = vsel %vm719_vm3, %v1066_v53, %v10848_v16  ;;  %v1346_v58 = vsel %vm722_vm4, %v1344_v1, %v8765_v27 }
 0x2ce   : > { %3006 = vrot.lane.b32.xlu1 %v6350_v12, %s6673_s9  ;;  %v737_v12 = vsel %vm719_vm3, %v735_v4, %v10849_v15  ;;  %v1070_v7 = vsel %vm722_vm4, %v1068_v18, %v10850_v11  ;;  %v1614_v35 = vsel %vm710_vm15, %v1612_v30, %v8582_v20  ;;  %v8953_v17 = vrot.slane %v3620_v51, %v7049_v44  ;;  %v10853_v18 = vld [vmem:[#allocation54_spill] sm:$0xff] }
 0x2cf   : > { %v8946_v24 = vpop.permute.xlu0 %1280  ;;  %v1616_v53 = vsel %vm713_vm0, %v1614_v35, %v8631_v21  ;;  %v6133_v27 = vcombine.low %v8924_v60, %v8924_v60  ;;  %v739_v56 = vsel %vm722_vm4, %v737_v12, %v10851_v2  ;;  %v5241_v20 = vrot.slane %v1346_v58, 4 }
 0x2d0   : > { %v8944_v36 = vpop.permute.xlu1 %1807  ;;  %v1618_v57 = vsel %vm716_vm2, %v1616_v53, %v8680_v3  ;;  %v6154_v51 = vcombine.low %v8933_v40, %v8933_v40  ;;  %v3658_v21 = vcombine.low %v8953_v17, %v8936_v19  ;;  %v5237_v30 = vrot.slane %v1070_v7, 6  ;;  %v10855_v53 = vld [vmem:[#allocation99_spill] sm:$0xff] }
 0x2d1   : > { %2966 = vrot.lane.b32.xlu0 %v6345_v34, %s6672_s8  ;;  %v6362_v16 = vcombine.high %v8636_v26, %v8636_v26  ;;  %v6374_v7 = vcombine.high %v8657_v25, %v8657_v25  ;;  %v10857_v26 = vld [vmem:[#allocation110_spill] sm:$0xff] }
 0x2d2   : > { %3280 = vrot.lane.b32.xlu1 %v6141_v45, %s6675_s18  ;;  %v1620_v45 = vsel %vm719_vm3, %v1618_v57, %v8785_v62  ;;  %v5286_v3 = vsel %vm331_vm1, %v739_v56, %v5237_v30  ;;  %v10852_v62 = vld [vmem:[#allocation39_spill] sm:$0xff]  ;;  %v8990_v35 = vrot.slane %v3658_v21, %v7371_v0  ;;  %v10858_v56 = vld [vmem:[#allocation32_spill] sm:$0xff]  ;;  %v9002_v25 = vld [vmem:[#allocation2 + $0x10] sm:$0xf] }
 0x2d3   : > { %v1592_v49 = vpop.permute.xlu0 %1591  ;;  %v5291_v34 = vsel %vm5287_vm5, %v5286_v3, %v5241_v20  ;;  %v4296_v15 = vcombine.low %v10853_v18, %v10852_v62  ;;  %v1319_v57 = vsel %vm703_vm13, %v10858_v56, %v10857_v26  ;;  %v3137_v20 = vcombine.high %v8422_v10, %v8425_v54  ;;  %v9005_v21 = vld [vmem:[#allocation2 + $0x38] sm:$0xf]  ;;  %v9029_v26 = vld [vmem:[#allocation2 + $0x4c] sm:$0xf] }
 0x2d4   : > { %v8971_v63 = vpop.permute.xlu1 %2093  ;;  %v1622_v4 = vsel %vm722_vm4, %v1620_v45, %v1592_v49  ;;  %10854 = vst [vmem:[#allocation41_spill] sm:$0xff] %v8990_v35  ;;  %v4439_v30 = vshrl.u32 %v9005_v21, 16  ;;  %v9008_v45 = vld [vmem:[#allocation2 + $0x24] sm:$0xf]  ;;  %v10863_v56 = vld [vmem:[#allocation103_spill] sm:$0xff] }
 0x2d5   : > { %v5245_v1 = vrot.slane %v1622_v4, 2  ;;  %3240 = vrot.lane.b32.xlu0 %v6133_v27, %s6674_s27  ;;  %v10856_v27 = vld [vmem:[#allocation29_spill] sm:$0xff]  ;;  %v4434_v49 = vshrl.u32 %v9008_v45, 16  ;;  %v10859_v4 = vld [vmem:[#allocation119_spill] sm:$0xff] }
 0x2d6   : > { %3555 = vrot.lane.b32.xlu1 %v6154_v51, %s6674_s27  ;;  %v1043_v2 = vsel %vm703_vm13, %v10856_v27, %v10855_v53  ;;  %v4433_v51 = vshrl.u32 %v9002_v25, 16  ;;  %v9025_v53 = vrot.slane %v4296_v15, %v7371_v0  ;;  %v2907_v27 = vcombine.high %v8734_v14, %v8719_v41 }
 0x2d7   : > { %v8984_v58 = vpop.permute.xlu0 %1847  ;;  %v5297_v11 = vsel %vm5292_vm6, %v5291_v34, %v5245_v1  ;;  %v10860_v1 = vld [vmem:[#allocation38_spill] sm:$0xff]  ;;  %v9043_v41 = vrot.slane %v3137_v20, %v7371_v0  ;;  %v3383_v14 = vcombine.high %v8737_v48, %v8722_v6  ;;  %v10871_v48 = vld [vmem:[#allocation109_spill] sm:$0xff] }
 0x2d8   : > { %v8982_v12 = vpop.permute.xlu1 %2419  ;;  %5566 = vmatprep.subr.bf16.mxu0 %v5297_v11  ;;  %v706_v3 = vsel %vm703_vm13, %v10860_v1, %v10859_v4  ;;  %v10861_v34 = vld [vmem:[#allocation98_spill] sm:$0xff]  ;;  %v6316_v11 = vcombine.high %v8678_v37, %v8678_v37  ;;  %v10865_v37 = vld [vmem:[#allocation112_spill] sm:$0xff]  ;;  %v6193_v20 = vcombine.low %v9025_v53, %v9025_v53 }
 0x2d9   : > { %3515 = vrot.lane.b32.xlu0 %v6362_v16, %s6673_s9  ;;  %v1045_v16 = vsel %vm707_vm14, %v1043_v2, %v10861_v34  ;;  %v4440_v2 = vshrl.u32 %v9029_v26, 16  ;;  %v10864_v1 = vld [vmem:[#allocation106_spill] sm:$0xff] }
 0x2da   : > { %3826 = vrot.lane.b32.xlu1 %v6374_v7, %s6673_s9  ;;  %v6369_v7 = vcombine.high %v8990_v35, %v8990_v35  ;;  %v1047_v4 = vsel %vm710_vm15, %v1045_v16, %v10863_v56  ;;  %v1321_v34 = vsel %vm707_vm14, %v1319_v57, %v10864_v1  ;;  %v10866_v35 = vld [vmem:[#allocation111_spill] sm:$0xff]  ;;  %v10867_v16 = vld [vmem:[#allocation34_spill] sm:$0xff]  ;;  %v4435_v57 = vpack.i.b16 %v4434_v49, %v4433_v51 }
 0x2db   : > { %v9018_v54 = vpop.permute.xlu0 %2133  ;;  %v1323_v32 = vsel %vm710_vm15, %v1321_v34, %v10865_v37  ;;  %v709_v15 = vsel %vm707_vm14, %v706_v3, %v10866_v35  ;;  %v10868_v1 = vld [vmem:[#allocation102_spill] sm:$0xff]  ;;  %v6346_v3 = vcombine.high %v8731_v42, %v8731_v42  ;;  %v9064_v49 = vrot.slane %v2907_v27, %v7371_v0 }
 0x2dc   : > { %v9016_v10 = vpop.permute.xlu1 %2690  ;;  %v712_v56 = vsel %vm710_vm15, %v709_v15, %v10867_v16  ;;  %v1049_v34 = vsel %vm713_vm0, %v1047_v4, %v10868_v1  ;;  %v1325_v51 = vsel %vm713_vm0, %v1323_v32, %v10871_v48  ;;  %v10872_v4 = vld [vmem:[#allocation114_spill] sm:$0xff]  ;;  %v10873_v16 = vld [vmem:[#allocation113_spill] sm:$0xff]  ;;  %v6134_v42 = vcombine.low %v9043_v41, %v9043_v41 }
 0x2dd   : > { %10862 = vst [vmem:[#allocation10_spill] sm:$0xff] %v9016_v10  ;;  %3786 = vrot.lane.b32.xlu0 %v6369_v7, %s6672_s8  ;;  %v10870_v7 = vld [vmem:[#allocation105_spill] sm:$0xff]  ;;  %v1327_v15 = vsel %vm716_vm2, %v1325_v51, %v10872_v4  ;;  %v715_v1 = vsel %vm713_vm0, %v712_v56, %v10873_v16  ;;  %v10876_v56 = vld [vmem:[#allocation104_spill] sm:$0xff] }
 0x2de   : > { %1832 = vrot.lane.b32.xlu1 %v6316_v11, %s6677_s16  ;;  %v4441_v11 = vpack.i.b16 %v4440_v2, %v4439_v30  ;;  %v1051_v6 = vsel %vm716_vm2, %v1049_v34, %v10870_v7  ;;  %v10874_v30 = vld [vmem:[#allocation42_spill] sm:$0xff]  ;;  %v10875_v32 = vld [vmem:[#allocation101_spill] sm:$0xff]  ;;  %v1329_v34 = vsel %vm719_vm3, %v1327_v15, %v8787_v47  ;;  %v9082_v7 = vrot.slane %v3383_v14, %v7371_v0 }
 0x2df   : > { %v9053_v35 = vpop.permute.xlu0 %2459  ;;  %v718_v2 = vsel %vm716_vm2, %v715_v1, %v10874_v30  ;;  %v1595_v27 = vsel %vm703_vm13, %v10875_v32, %v8543_v38  ;;  %v1331_v48 = vsel %vm722_vm4, %v1329_v34, %v8946_v24  ;;  %v6340_v38 = vcombine.high %v8708_v59, %v8708_v59  ;;  %v10878_v24 = vld [vmem:[#allocation46_spill] sm:$0xff] }
 0x2e0   : > { %v9051_v37 = vpop.permute.xlu1 %3260  ;;  %v9097_v47 = vrot.slane %v4435_v57, %v7049_v44  ;;  %v9100_v14 = vrot.slane %v4441_v11, %v7049_v44  ;;  %v721_v16 = vsel %vm719_vm3, %v718_v2, %v10878_v24  ;;  %v6126_v59 = vcombine.low %v9064_v49, %v9064_v49  ;;  %v10879_v57 = vld [vmem:[#allocation45_spill] sm:$0xff] }
 0x2e1   : > { %10869 = vst [vmem:[#allocation11_spill] sm:$0xff] %v9051_v37  ;;  %4352 = vrot.lane.b32.xlu0 %v6193_v20, %s6671_s7  ;;  %v1597_v20 = vsel %vm707_vm14, %v1595_v27, %v8614_v5  ;;  %v724_v11 = vsel %vm722_vm4, %v721_v16, %v10879_v57  ;;  %v6147_v2 = vcombine.low %v9082_v7, %v9082_v7  ;;  %v10880_v27 = vld [vmem:[#allocation94_spill] sm:$0xff] }
 0x2e2   : > { %2971 = vrot.lane.b32.xlu1 %v6346_v3, %s6673_s9  ;;  %v1053_v3 = vsel %vm719_vm3, %v1051_v6, %v10876_v56  ;;  %v10877_v6 = vld [vmem:[#allocation107_spill] sm:$0xff]  ;;  %v1599_v5 = vsel %vm710_vm15, %v1597_v20, %v8650_v9  ;;  %v5240_v9 = vrot.slane %v1331_v48, 4  ;;  %v10883_v56 = vld [vmem:[#allocation125_spill] sm:$0xff] }
 0x2e3   : > { %v9092_v4 = vpop.permute.xlu0 %2730  ;;  %v1055_v15 = vsel %vm722_vm4, %v1053_v3, %v10877_v6  ;;  %v1601_v1 = vsel %vm713_vm0, %v1599_v5, %v8702_v55  ;;  %v10881_v55 = vld [vmem:[#allocation53_spill] sm:$0xff]  ;;  %v10885_v48 = vld [vmem:[#allocation95_spill] sm:$0xff] }
 0x2e4   : > { %v9090_v51 = vpop.permute.xlu1 %1812  ;;  %v1603_v30 = vsel %vm716_vm2, %v1601_v1, %v8805_v52  ;;  %v5236_v32 = vrot.slane %v1055_v15, 6  ;;  %v4174_v34 = vpack.i.b16 %v10881_v55, %v10880_v27  ;;  %v10884_v52 = vld [vmem:[#allocation91_spill] sm:$0xff]  ;;  %v4560_v1 = vcombine.low %v9097_v47, %v9100_v14 }
 0x2e5   : > { %2715 = vrot.lane.b32.xlu0 %v6340_v38, %s6677_s16  ;;  %v1605_v20 = vsel %vm719_vm3, %v1603_v30, %v8902_v33  ;;  %v4168_v24 = vpack.i.b16 %v10885_v48, %v10884_v52  ;;  %v3727_v33 = vcombine.high %v8797_v29, %v8783_v50  ;;  %v6359_v30 = vcombine.high %v8780_v39, %v8780_v39 }
 0x2e6   : > { %3245 = vrot.lane.b32.xlu1 %v6134_v42, %s6675_s18  ;;  %v10882_v42 = vld [vmem:[#allocation126_spill] sm:$0xff]  ;;  %v5284_v16 = vsel %vm331_vm1, %v724_v11, %v5236_v32  ;;  %v10886_v11 = vcombine.high %v10766_v31, %v10765_v8  ;;  %v6370_v29 = vcombine.high %v8794_v43, %v8794_v43  ;;  %v9166_v8 = vrot.slane %v4560_v1, %v7371_v0 }
 0x2e7   : > { %v4228_v3 = vcombine.low %v10883_v56, %v10882_v42  ;;  %v1557_v6 = vpop.permute.xlu0 %1556  ;;  %v5289_v57 = vsel %vm5287_vm5, %v5284_v16, %v5240_v9  ;;  %v9161_v31 = vrot.slane %v4168_v24, %v7049_v44  ;;  %v10890_v16 = vld [vmem:[#allocation72_spill] sm:$0xff] }
 0x2e8   : > { %v9126_v38 = vpop.permute.xlu1 %2098  ;;  %v1607_v5 = vsel %vm722_vm4, %v1605_v20, %v1557_v6  ;;  %v9145_v32 = vrot.slane %v10886_v11, %v7371_v0  ;;  %v9179_v20 = vrot.slane %v3727_v33, %v7371_v0  ;;  %v6207_v6 = vcombine.low %v9166_v8, %v9166_v8  ;;  %v10947_v56 = vld [vmem:[#allocation124_spill] sm:$0xff] }
 0x2e9   : > { %v5244_v15 = vrot.slane %v1607_v5, 2  ;;  %3011 = vrot.lane.b32.xlu0 %v6126_v59, %s6674_s27  ;;  %v9158_v39 = vrot.slane %v4228_v3, %v7371_v0  ;;  %v2839_v5 = vcombine.high %v8842_v46, %v8831_v28  ;;  %v10893_v28 = vld [vmem:[#allocation59_spill] sm:$0xff]  ;;  %v10894_v46 = vld [vmem:[#allocation121_spill] sm:$0xff] }
 0x2ea   : > { %3520 = vrot.lane.b32.xlu1 %v6147_v2, %s6674_s27  ;;  %v9148_v2 = vrot.slane %v4174_v34, %v7049_v44  ;;  %v6155_v3 = vcombine.low %v9145_v32, %v9145_v32  ;;  %v6168_v24 = vcombine.low %v9179_v20, %v9179_v20 }
 0x2eb   : > { %v9152_v27 = vpop.permute.xlu0 %1852  ;;  %v5294_v50 = vsel %vm5292_vm6, %v5289_v57, %v5244_v15  ;;  %v6186_v34 = vcombine.low %v9158_v39, %v9158_v39  ;;  %v10891_v15 = vcombine.high %v10780_v22, %v10890_v16  ;;  %v4162_v57 = vpack.i.b16 %v10894_v46, %v10893_v28 }
 0x2ec   : > { %v9150_v59 = vpop.permute.xlu1 %2424  ;;  %5567 = vmatpush1.bf16.msra.mxu0 %v5294_v50  ;;  %v4262_v9 = vcombine.low %v9161_v31, %v9148_v2  ;;  %v6355_v46 = vcombine.high %v8924_v60, %v8924_v60  ;;  %v10903_v60 = vld [vmem:[#allocation77_spill] sm:$0xff] }
 0x2ed   : > { %10887 = vst [vmem:[#allocation43_spill] sm:$0xff] %v9150_v59  ;;  %3285 = vrot.lane.b32.xlu0 %v6359_v30, %s6676_s26  ;;  %v9197_v1 = vrot.slane %v10891_v15, %v7371_v0  ;;  %v6360_v15 = vcombine.high %v8851_v13, %v8851_v13 }
 0x2ee   : > { %3791 = vrot.lane.b32.xlu1 %v6370_v29, %s6673_s9  ;;  %v9200_v33 = vrot.slane %v4262_v9, %v7371_v0  ;;  %v9215_v29 = vrot.slane %v2839_v5, %v7371_v0  ;;  %v10896_v9 = vld [vmem:[#allocation28_spill] sm:$0xff] }
 0x2ef   : > { %v9172_v43 = vpop.permute.xlu0 %2138  ;;  %v6127_v50 = vcombine.low %v9197_v1, %v9197_v1 }
 0x2f0   : > { %v9170_v55 = vpop.permute.xlu1 %2695  ;;  %10892 = vst [vmem:[#allocation33_spill] sm:$0xff] %v9200_v33  ;;  %v6389_v22 = vcombine.high %v9200_v33, %v9200_v33  ;;  %v6119_v5 = vcombine.low %v9215_v29, %v9215_v29 }
 0x2f1   : > { %10888 = vst [vmem:[#allocation52_spill] sm:$0xff] %v9170_v55  ;;  %3560 = vrot.lane.b32.xlu0 %v6155_v3, %s6675_s18 }
 0x2f2   : > { %4317 = vrot.lane.b32.xlu1 %v6186_v34, %s6671_s7  ;;  %v10897_v34 = vld [vmem:[#allocation50_spill] sm:$0xff] }
 0x2f3   : > { %v9189_v48 = vpop.permute.xlu0 %2464  ;;  %v4156_v3 = vpack.i.b16 %v10897_v34, %v10896_v9  ;;  %v10900_v34 = vld [vmem:[#allocation83_spill] sm:$0xff] }
 0x2f4   : > { %v9187_v52 = vpop.permute.xlu1 %3225 }
 0x2f5   : > { %10889 = vst [vmem:[#allocation116_spill] sm:$0xff] %v9187_v52  ;;  %3831 = vrot.lane.b32.xlu0 %v6168_v24, %s6674_s27  ;;  %v9233_v28 = vrot.slane %v4156_v3, %v7049_v44  ;;  %v10901_v3 = vld [vmem:[#allocation84_spill] sm:$0xff]  ;;  %v10904_v52 = vld [vmem:[#allocation78_spill] sm:$0xff] }
 0x2f6   : > { %4616 = vrot.lane.b32.xlu1 %v6207_v6, %s6671_s7  ;;  %v9222_v6 = vrot.slane %v4162_v57, %v7049_v44  ;;  %v6367_v57 = vcombine.high %v8933_v40, %v8933_v40  ;;  %v10905_v40 = vcombine.high %v10903_v60, %v10904_v52 }
 0x2f7   : > { %v9208_v11 = vpop.permute.xlu0 %2735 }
 0x2f8   : > { %v9206_v30 = vpop.permute.xlu1 %3540  ;;  %v4194_v13 = vcombine.low %v9233_v28, %v9222_v6  ;;  %v9259_v33 = vrot.slane %v10905_v40, %v7371_v0  ;;  %v10912_v40 = vld [vmem:[#allocation132_spill] sm:$0xff] }
 0x2f9   : > { %10895 = vst [vmem:[#allocation93_spill] sm:$0xff] %v9206_v30  ;;  %4357 = vrot.lane.b32.xlu0 %v6389_v22, %s6672_s8  ;;  %v10909_v30 = vld [vmem:[#allocation21_spill] sm:$0xff] }
 0x2fa   : > { %3016 = vrot.lane.b32.xlu1 %v6127_v50, %s6675_s18  ;;  %v3659_v50 = vcombine.high %v8953_v17, %v8936_v19  ;;  %v4432_v19 = vpack.i.b16 %v9008_v45, %v9002_v25  ;;  %v4438_v17 = vpack.i.b16 %v9029_v26, %v9005_v21  ;;  %v6148_v21 = vcombine.low %v9259_v33, %v9259_v33 }
 0x2fb   : > { %v9226_v16 = vpop.permute.xlu0 %3265  ;;  %v9280_v45 = vrot.slane %v4194_v13, %v7371_v0 }
 0x2fc   : > { %v9224_v24 = vpop.permute.xlu1 %1857  ;;  %10898 = vst [vmem:[#allocation47_spill] sm:$0xff] %v9226_v16  ;;  %v10906_v16 = vld [vmem:[#allocation22_spill] sm:$0xff]  ;;  %v9283_v26 = vrot.slane %v3659_v50, %v7371_v0 }
 0x2fd   : > { %2976 = vrot.lane.b32.xlu0 %v6119_v5, %s6674_s27  ;;  %10911 = vst [vmem:[#allocation92_spill] sm:$0xff] %v9280_v45 }
 0x2fe   : > { %3290 = vrot.lane.b32.xlu1 %v6360_v15, %s6677_s16  ;;  %v10902_v15 = vcombine.high %v10900_v34, %v10901_v3  ;;  %v10907_v34 = vld [vmem:[#allocation23_spill] sm:$0xff] }
 0x2ff   : > { %v9247_v9 = vpop.permute.xlu0 %1817  ;;  %v4492_v3 = vcombine.low %v10907_v34, %v10906_v16  ;;  %v10913_v16 = vld [vmem:[#allocation131_spill] sm:$0xff] }
 0x300   : > { %v9245_v22 = vpop.permute.xlu1 %2143  ;;  %10899 = vst [vmem:[#allocation36_spill] sm:$0xff] %v9247_v9  ;;  %v9253_v5 = vrot.slane %v10902_v15, %v7371_v0  ;;  %v10908_v15 = vld [vmem:[#allocation20_spill] sm:$0xff]  ;;  %v4840_v13 = vcombine.low %v10913_v16, %v10912_v40  ;;  %v10933_v9 = vld [vmem:[#allocation15_spill] sm:$0xff] }
 0x301   : > { %3250 = vrot.lane.b32.xlu0 %v6355_v46, %s6676_s26  ;;  %v4020_v37 = vcombine.low %v10909_v30, %v10908_v15  ;;  %v9286_v46 = vrot.slane %v4432_v19, %v7049_v44  ;;  %v9294_v60 = vrot.slane %v4492_v3, %v7371_v0  ;;  %v6385_v19 = vcombine.high %v9280_v45, %v9280_v45 }
 0x302   : > { %3565 = vrot.lane.b32.xlu1 %v6367_v57, %s6676_s26  ;;  %v6169_v25 = vcombine.low %v9253_v5, %v9253_v5  ;;  %v9289_v57 = vrot.slane %v4438_v17, %v7049_v44  ;;  %v6161_v17 = vcombine.low %v9283_v26, %v9283_v26  ;;  %v6390_v30 = vcombine.high %v9025_v53, %v9025_v53  ;;  %v6528_v53 = vld [vmem:[#allocation2 + $0x48] sm:$0xf] }
 0x303   : > { %v9273_v52 = vpop.permute.xlu0 %2103  ;;  %v6200_v45 = vcombine.low %v9294_v60, %v9294_v60 }
 0x304   : > { %v9271_v55 = vpop.permute.xlu1 %2469  ;;  %10910 = vst [vmem:[#allocation87_spill] sm:$0xff] %v9273_v52  ;;  %v4526_v3 = vcombine.low %v9286_v46, %v9289_v57 }
 0x305   : > { %3525 = vrot.lane.b32.xlu0 %v6148_v21, %s6675_s18 }
 0x306   : > { %3836 = vrot.lane.b32.xlu1 %v6169_v25, %s6675_s18  ;;  %v9307_v25 = vrot.slane %v4020_v37, %v7371_v0  ;;  %v9322_v37 = vrot.slane %v4840_v13, %v7371_v0 }
 0x307   : > { %v9300_v50 = vpop.permute.xlu0 %2429 }
 0x308   : > { %v9298_v34 = vpop.permute.xlu1 %2740  ;;  %10914 = vst [vmem:[#allocation51_spill] sm:$0xff] %v9300_v50  ;;  %v6179_v16 = vcombine.low %v9307_v25, %v9307_v25  ;;  %v6221_v15 = vcombine.low %v9322_v37, %v9322_v37 }
 0x309   : > { %3796 = vrot.lane.b32.xlu0 %v6161_v17, %s6674_s27 }
 0x30a   : > { %4322 = vrot.lane.b32.xlu1 %v6385_v19, %s6672_s8  ;;  %v9327_v19 = vrot.slane %v4526_v3, %v7371_v0  ;;  %v6351_v3 = vcombine.high %v9064_v49, %v9064_v49  ;;  %v6363_v49 = vcombine.high %v9082_v7, %v9082_v7  ;;  %v6356_v7 = vcombine.high %v9043_v41, %v9043_v41 }
 0x30b   : > { %v9315_v40 = vpop.permute.xlu0 %2700 }
 0x30c   : > { %v9313_v21 = vpop.permute.xlu1 %3230  ;;  %10916 = vst [vmem:[#allocation85_spill] sm:$0xff] %v9315_v40  ;;  %10917 = vst [vmem:[#allocation88_spill] sm:$0xff] %v9327_v19 }
 0x30d   : > { %10915 = vst [vmem:[#allocation40_spill] sm:$0xff] %v9313_v21  ;;  %4076 = vrot.lane.b32.xlu0 %v6179_v16, %s6671_s7  ;;  %v6397_v16 = vcombine.high %v9327_v19, %v9327_v19  ;;  %v10925_v19 = vld [vmem:[#allocation14_spill] sm:$0xff] }
 0x30e   : > { %4581 = vrot.lane.b32.xlu1 %v6200_v45, %s6671_s7 }
 0x30f   : > { %v9331_v21 = vpop.permute.xlu0 %2996 }
 0x310   : > { %v9329_v17 = vpop.permute.xlu1 %3505  ;;  %10919 = vst [vmem:[#allocation100_spill] sm:$0xff] %v9331_v21  ;;  %v10923_v21 = vld [vmem:[#allocation90_spill] sm:$0xff] }
 0x311   : > { %10918 = vst [vmem:[#allocation118_spill] sm:$0xff] %v9329_v17  ;;  %4362 = vrot.lane.b32.xlu0 %v6390_v30, %s6673_s9  ;;  %v10922_v17 = vld [vmem:[#allocation89_spill] sm:$0xff]  ;;  %v6529_v30 = vld [vmem:[#allocation2 + $0x34] sm:$0xf] }
 0x312   : > { %4896 = vrot.lane.b32.xlu1 %v6221_v15, %s6671_s7  ;;  %v10924_v40 = vcombine.high %v10922_v17, %v10923_v21  ;;  %v4426_v15 = vpack.i.b16 %v6528_v53, %v6529_v30  ;;  %v10928_v21 = vld [vmem:[#allocation96_spill] sm:$0xff]  ;;  %v10929_v17 = vld [vmem:[#allocation97_spill] sm:$0xff] }
 0x313   : > { %v9343_v13 = vpop.permute.xlu0 %3270  ;;  %v10931_v53 = vld [vmem:[#allocation24_spill] sm:$0xff]  ;;  %v10932_v30 = vld [vmem:[#allocation25_spill] sm:$0xff] }
 0x314   : > { %v9341_v45 = vpop.permute.xlu1 %3816  ;;  %10921 = vst [vmem:[#allocation49_spill] sm:$0xff] %v9343_v13  ;;  %v9351_v50 = vrot.slane %v10924_v40, %v7371_v0  ;;  %v3952_v61 = vcombine.low %v10932_v30, %v10931_v53  ;;  %v10941_v30 = vld [vmem:[#allocation120_spill] sm:$0xff] }
 0x315   : > { %10920 = vst [vmem:[#allocation31_spill] sm:$0xff] %v9341_v45  ;;  %4621 = vrot.lane.b32.xlu0 %v6397_v16, %s6672_s8  ;;  %v10926_v45 = vld [vmem:[#allocation12_spill] sm:$0xff]  ;;  %v10930_v16 = vcombine.high %v10928_v21, %v10929_v17  ;;  %v9380_v21 = vrot.slane %v4426_v15, %v7049_v44 }
 0x316   : > { %3021 = vrot.lane.b32.xlu1 %v6351_v3, %s6676_s26  ;;  %v3898_v10 = vpack.i.b16 %v10926_v45, %v10925_v19  ;;  %v6120_v40 = vcombine.low %v9351_v50, %v9351_v50  ;;  %v6530_v19 = vld [vmem:[#allocation2 + $0x20] sm:$0xf]  ;;  %v6531_v45 = vld [vmem:[#allocation2 + $0xc] sm:$0xf] }
 0x317   : > { %v9359_v59 = vpop.permute.xlu0 %3545  ;;  %v9369_v3 = vrot.slane %v10930_v16, %v7371_v0  ;;  %v4420_v52 = vpack.i.b16 %v6530_v19, %v6531_v45  ;;  %v6375_v19 = vcombine.high %v9179_v20, %v9179_v20  ;;  %v6386_v20 = vcombine.high %v9158_v39, %v9158_v39 }
 0x318   : > { %v9357_v13 = vpop.permute.xlu1 %1862  ;;  %10927 = vst [vmem:[#allocation37_spill] sm:$0xff] %v9359_v59  ;;  %v10934_v59 = vld [vmem:[#allocation13_spill] sm:$0xff]  ;;  %v9383_v17 = vrot.slane %v3898_v10, %v7049_v44 }
 0x319   : > { %v3892_v42 = vpack.i.b16 %v10934_v59, %v10933_v9  ;;  %2981 = vrot.lane.b32.xlu0 %v6120_v40, %s6675_s18  ;;  %v6162_v59 = vcombine.low %v9369_v3, %v9369_v3  ;;  %v9392_v9 = vrot.slane %v3952_v61, %v7371_v0 }
 0x31a   : > { %3530 = vrot.lane.b32.xlu1 %v6363_v49, %s6676_s26  ;;  %v9395_v49 = vrot.slane %v4420_v52, %v7049_v44 }
 0x31b   : > { %v9387_v53 = vpop.permute.xlu0 %1822  ;;  %v9398_v41 = vrot.slane %v3892_v42, %v7049_v44  ;;  %v6172_v52 = vcombine.low %v9392_v9, %v9392_v9  ;;  %v6368_v42 = vcombine.high %v9145_v32, %v9145_v32  ;;  %v10943_v32 = vld [vmem:[#allocation138_spill] sm:$0xff] }
 0x31c   : > { %v9385_v16 = vpop.permute.xlu1 %2434  ;;  %10936 = vst [vmem:[#allocation30_spill] sm:$0xff] %v9387_v53  ;;  %v4458_v10 = vcombine.low %v9395_v49, %v9380_v21 }
 0x31d   : > { %10935 = vst [vmem:[#allocation27_spill] sm:$0xff] %v9385_v16  ;;  %3255 = vrot.lane.b32.xlu0 %v6356_v7, %s6677_s16  ;;  %v3986_v15 = vcombine.low %v9398_v41, %v9383_v17 }
 0x31e   : > { %3801 = vrot.lane.b32.xlu1 %v6162_v59, %s6675_s18  ;;  %v9419_v45 = vrot.slane %v4458_v10, %v7371_v0  ;;  %v4263_v59 = vcombine.high %v9161_v31, %v9148_v2  ;;  %v10946_v10 = vld [vmem:[#allocation56_spill] sm:$0xff]  ;;  %v10948_v31 = vld [vmem:[#allocation18_spill] sm:$0xff] }
 0x31f   : > { %v9408_v61 = vpop.permute.xlu0 %2108  ;;  %v9422_v7 = vrot.slane %v3986_v15, %v7371_v0  ;;  %v4712_v15 = vpack.i.b16 %v10947_v56, %v10946_v10  ;;  %v10953_v10 = vld [vmem:[#allocation17_spill] sm:$0xff] }
 0x320   : > { %v9406_v40 = vpop.permute.xlu1 %2705  ;;  %10938 = vst [vmem:[#allocation54_spill] sm:$0xff] %v9408_v61  ;;  %10939 = vst [vmem:[#allocation99_spill] sm:$0xff] %v9419_v45  ;;  %v10944_v61 = vld [vmem:[#allocation137_spill] sm:$0xff]  ;;  %v6393_v2 = vcombine.high %v9419_v45, %v9419_v45 }
 0x321   : > { %10937 = vst [vmem:[#allocation39_spill] sm:$0xff] %v9406_v40  ;;  %3570 = vrot.lane.b32.xlu0 %v6368_v42, %s6677_s16  ;;  %10940 = vst [vmem:[#allocation29_spill] sm:$0xff] %v9422_v7  ;;  %v10942_v40 = vld [vmem:[#allocation128_spill] sm:$0xff]  ;;  %v6381_v56 = vcombine.high %v9422_v7, %v9422_v7  ;;  %v6352_v7 = vcombine.high %v9197_v1, %v9197_v1  ;;  %v6364_v1 = vcombine.high %v9259_v33, %v9259_v33 }
 0x322   : > { %4041 = vrot.lane.b32.xlu1 %v6172_v52, %s6671_s7  ;;  %v4718_v16 = vpack.i.b16 %v10942_v40, %v10941_v30  ;;  %v4772_v52 = vcombine.low %v10944_v61, %v10943_v32  ;;  %v10949_v30 = vld [vmem:[#allocation16_spill] sm:$0xff] }
 0x323   : > { %v9432_v42 = vpop.permute.xlu0 %2474  ;;  %v3886_v40 = vpack.i.b16 %v10949_v30, %v10948_v31  ;;  %v9462_v31 = vrot.slane %v4712_v15, %v7049_v44  ;;  %v10973_v33 = vld [vmem:[#allocation80_spill] sm:$0xff] }
 0x324   : > { %v9430_v53 = vpop.permute.xlu1 %2961  ;;  %v9454_v39 = vrot.slane %v4772_v52, %v7371_v0 }
 0x325   : > { %10945 = vst [vmem:[#allocation110_spill] sm:$0xff] %v9430_v53  ;;  %3841 = vrot.lane.b32.xlu0 %v6375_v19, %s6676_s26  ;;  %v9445_v53 = vrot.slane %v4718_v16, %v7049_v44  ;;  %v9457_v19 = vrot.slane %v4263_v59, %v7371_v0  ;;  %10954 = vst [vmem:[#allocation38_spill] sm:$0xff] %v9462_v31  ;;  %v9467_v16 = vrot.slane %v3886_v40, %v7049_v44 }
 0x326   : > { %4327 = vrot.lane.b32.xlu1 %v6386_v20, %s6673_s9  ;;  %10951 = vst [vmem:[#allocation119_spill] sm:$0xff] %v9454_v39  ;;  %v10952_v20 = vld [vmem:[#allocation19_spill] sm:$0xff]  ;;  %v6398_v40 = vcombine.high %v9166_v8, %v9166_v8 }
 0x327   : > { %v9449_v61 = vpop.permute.xlu0 %2745  ;;  %v3880_v45 = vpack.i.b16 %v10953_v10, %v10952_v20  ;;  %10955 = vst [vmem:[#allocation98_spill] sm:$0xff] %v9467_v16  ;;  %v4806_v52 = vcombine.low %v9462_v31, %v9445_v53  ;;  %v6214_v20 = vcombine.low %v9454_v39, %v9454_v39  ;;  %v6196_v15 = vcombine.low %v9457_v19, %v9457_v19 }
 0x328   : > { %v9447_v32 = vpop.permute.xlu1 %3235 }
 0x329   : > { %10950 = vst [vmem:[#allocation32_spill] sm:$0xff] %v9447_v32  ;;  %4081 = vrot.lane.b32.xlu0 %v6381_v56, %s6672_s8  ;;  %v6347_v32 = vcombine.high %v9215_v29, %v9215_v29  ;;  %v10964_v29 = vld [vmem:[#allocation62_spill] sm:$0xff] }
 0x32a   : > { %4586 = vrot.lane.b32.xlu1 %v6393_v2, %s6672_s8  ;;  %v9480_v2 = vrot.slane %v3880_v45, %v7049_v44  ;;  %v9495_v45 = vrot.slane %v4806_v52, %v7371_v0 }
 0x32b   : > { %v9473_v59 = vpop.permute.xlu0 %3001 }
 0x32c   : > { %v9471_v30 = vpop.permute.xlu1 %3510  ;;  %10957 = vst [vmem:[#allocation106_spill] sm:$0xff] %v9473_v59  ;;  %10958 = vst [vmem:[#allocation112_spill] sm:$0xff] %v9480_v2  ;;  %v3918_v56 = vcombine.low %v9480_v2, %v9467_v16 }
 0x32d   : > { %10956 = vst [vmem:[#allocation103_spill] sm:$0xff] %v9471_v30  ;;  %4367 = vrot.lane.b32.xlu0 %v6196_v15, %s6674_s27  ;;  %10961 = vst [vmem:[#allocation102_spill] sm:$0xff] %v9495_v45  ;;  %v10963_v15 = vld [vmem:[#allocation108_spill] sm:$0xff] }
 0x32e   : > { %4861 = vrot.lane.b32.xlu1 %v6214_v20, %s6671_s7  ;;  %v10962_v20 = vld [vmem:[#allocation57_spill] sm:$0xff]  ;;  %v9507_v59 = vrot.slane %v3918_v56, %v7371_v0 }
 0x32f   : > { %v9490_v30 = vpop.permute.xlu0 %3275  ;;  %v2162_v8 = vsel %vm703_vm13, %v10963_v15, %v10962_v20  ;;  %v10969_v20 = vld [vmem:[#allocation61_spill] sm:$0xff]  ;;  %v10970_v15 = vld [vmem:[#allocation64_spill] sm:$0xff] }
 0x330   : > { %v9488_v10 = vpop.permute.xlu1 %3781  ;;  %10960 = vst [vmem:[#allocation34_spill] sm:$0xff] %v9490_v30  ;;  %v2164_v52 = vsel %vm707_vm14, %v2162_v8, %v10964_v29  ;;  %v10965_v30 = vld [vmem:[#allocation58_spill] sm:$0xff]  ;;  %v6376_v29 = vcombine.high %v9253_v5, %v9253_v5 }
 0x331   : > { %10959 = vst [vmem:[#allocation111_spill] sm:$0xff] %v9488_v10  ;;  %4626 = vrot.lane.b32.xlu0 %v6398_v40, %s6673_s9  ;;  %v6382_v10 = vcombine.high %v9307_v25, %v9307_v25  ;;  %v6405_v25 = vcombine.high %v9495_v45, %v9495_v45  ;;  %v2166_v56 = vsel %vm710_vm15, %v2164_v52, %v10969_v20  ;;  %v10974_v45 = vld [vmem:[#allocation81_spill] sm:$0xff]  ;;  %v10975_v52 = vld [vmem:[#allocation74_spill] sm:$0xff]  ;;  %v10977_v20 = vld [vmem:[#allocation75_spill] sm:$0xff] }
 0x332   : > { %2986 = vrot.lane.b32.xlu1 %v6347_v32, %s6676_s26  ;;  %v10966_v32 = vld [vmem:[#allocation117_spill] sm:$0xff] }
 0x333   : > { %v2493_v40 = vsel %vm703_vm13, %v10966_v32, %v10965_v30  ;;  %v9516_v2 = vpop.permute.xlu0 %3550  ;;  %v6371_v30 = vcombine.high %v9283_v26, %v9283_v26  ;;  %v10971_v32 = vld [vmem:[#allocation69_spill] sm:$0xff] }
 0x334   : > { %v9514_v39 = vpop.permute.xlu1 %1827  ;;  %10968 = vst [vmem:[#allocation109_spill] sm:$0xff] %v9516_v2  ;;  %v2495_v8 = vsel %vm707_vm14, %v2493_v40, %v10970_v15  ;;  %v10972_v2 = vld [vmem:[#allocation35_spill] sm:$0xff]  ;;  %v10976_v40 = vld [vmem:[#allocation44_spill] sm:$0xff] }
 0x335   : > { %10967 = vst [vmem:[#allocation105_spill] sm:$0xff] %v9514_v39  ;;  %v1886_v16 = vsel %vm703_vm13, %v10972_v2, %v10971_v32  ;;  %v2168_v39 = vsel %vm713_vm0, %v2166_v56, %v10973_v33  ;;  %v2497_v31 = vsel %vm710_vm15, %v2495_v8, %v10974_v45  ;;  %4901 = vrot.lane.b32.xlu0 %v6405_v25, %s6672_s8 }
 0x336   : > { %3535 = vrot.lane.b32.xlu1 %v6364_v1, %s6677_s16  ;;  %v2769_v5 = vsel %vm703_vm13, %v10976_v40, %v10975_v52  ;;  %v1888_v26 = vsel %vm707_vm14, %v1886_v16, %v10977_v20  ;;  %v2170_v2 = vsel %vm716_vm2, %v2168_v39, %v9018_v54  ;;  %v2499_v56 = vsel %vm713_vm0, %v2497_v31, %v9053_v35 }
 0x337   : > { %v2771_v45 = vsel %vm707_vm14, %v2769_v5, %v8869_v23  ;;  %v2172_v1 = vsel %vm719_vm3, %v2170_v2, %v9172_v43  ;;  %v2501_v25 = vsel %vm716_vm2, %v2499_v56, %v9189_v48  ;;  %v9556_v8 = vpop.permute.xlu0 %3821  ;;  %v4527_v16 = vcombine.high %v9286_v46, %v9289_v57  ;;  %v10980_v57 = vld [vmem:[#allocation134_spill] sm:$0xff] }
 0x338   : > { %v9554_v15 = vpop.permute.xlu1 %2439  ;;  %v1890_v54 = vsel %vm710_vm15, %v1888_v26, %v8984_v58  ;;  %v2773_v35 = vsel %vm710_vm15, %v2771_v45, %v9092_v4  ;;  %v2174_v23 = vsel %vm722_vm4, %v2172_v1, %v9245_v22  ;;  %v2503_v43 = vsel %vm719_vm3, %v2501_v25, %v9271_v55  ;;  %v10979_v22 = vld [vmem:[#allocation127_spill] sm:$0xff] }
 0x339   : > { %v1892_v48 = vsel %vm713_vm0, %v1890_v54, %v9152_v27  ;;  %v2775_v39 = vsel %vm713_vm0, %v2773_v35, %v9208_v11  ;;  %v2505_v46 = vsel %vm722_vm4, %v2503_v43, %v9432_v42  ;;  %3026 = vrot.lane.b32.xlu0 %v6352_v7, %s6677_s16  ;;  %v4195_v58 = vcombine.high %v9233_v28, %v9222_v6 }
 0x33a   : > { %3846 = vrot.lane.b32.xlu1 %v6376_v29, %s6677_s16  ;;  %v1894_v4 = vsel %vm716_vm2, %v1892_v48, %v9224_v24  ;;  %v2777_v55 = vsel %vm716_vm2, %v2775_v39, %v9298_v34  ;;  %v10978_v27 = vcombine.high %v10853_v18, %v10852_v62  ;;  %v4706_v42 = vpack.i.b16 %v10980_v57, %v10979_v22  ;;  %v10981_v62 = vld [vmem:[#allocation123_spill] sm:$0xff]  ;;  %v10982_v18 = vld [vmem:[#allocation130_spill] sm:$0xff] }
 0x33b   : > { %v5249_v31 = vrot.slane %v2174_v23, 6  ;;  %v1896_v7 = vsel %vm719_vm3, %v1894_v4, %v9357_v13  ;;  %v2779_v6 = vsel %vm719_vm3, %v2777_v55, %v9449_v61  ;;  %v1868_v28 = vpop.permute.xlu0 %1867  ;;  %v5253_v29 = vrot.slane %v2505_v46, 4  ;;  %v10984_v55 = vld [vmem:[#allocation71_spill] sm:$0xff] }
 0x33c   : > { %v9586_v11 = vrot.slane %v10978_v27, %v7371_v0  ;;  %v2751_v24 = vpop.permute.xlu1 %2750  ;;  %v1898_v32 = vsel %vm722_vm4, %v1896_v7, %v1868_v28  ;;  %v4700_v33 = vpack.i.b16 %v10982_v18, %v10981_v62  ;;  %v9602_v13 = vrot.slane %v4527_v16, %v7371_v0  ;;  %v10985_v27 = vld [vmem:[#allocation115_spill] sm:$0xff]  ;;  %v10988_v28 = vld [vmem:[#allocation26_spill] sm:$0xff] }
 0x33d   : > { %v2781_v34 = vsel %vm722_vm4, %v2779_v6, %v2751_v24  ;;  %v5302_v40 = vsel %vm331_vm1, %v1898_v32, %v5249_v31  ;;  %3806 = vrot.lane.b32.xlu0 %v6371_v30, %s6676_s26  ;;  %v6377_v5 = vcombine.high %v9507_v59, %v9507_v59  ;;  %v9608_v20 = vrot.slane %v4706_v42, %v7049_v44  ;;  %v10986_v31 = vld [vmem:[#allocation63_spill] sm:$0xff]  ;;  %v10987_v24 = vld [vmem:[#allocation68_spill] sm:$0xff] }
 0x33e   : > { %v5257_v52 = vrot.slane %v2781_v34, 2  ;;  %4086 = vrot.lane.b32.xlu1 %v6382_v10, %s6673_s9  ;;  %v5306_v61 = vsel %vm5287_vm5, %v5302_v40, %v5253_v29  ;;  %v6197_v10 = vcombine.low %v9586_v11, %v9586_v11  ;;  %v9618_v30 = vrot.slane %v4195_v58, %v7371_v0  ;;  %v10989_v29 = vld [vmem:[#allocation73_spill] sm:$0xff]  ;;  %v10990_v34 = vld [vmem:[#allocation60_spill] sm:$0xff]  ;;  %v10992_v18 = vld [vmem:[#allocation79_spill] sm:$0xff] }
 0x33f   : > { %v9612_v2 = vpop.permute.xlu0 %2710  ;;  %v9621_v45 = vrot.slane %v4700_v33, %v7049_v44  ;;  %v6210_v1 = vcombine.low %v9602_v13, %v9602_v13  ;;  %v3987_v23 = vcombine.high %v9398_v41, %v9383_v17  ;;  %v6406_v39 = vcombine.high %v9322_v37, %v9322_v37 }
 0x340   : > { %v9610_v26 = vpop.permute.xlu1 %3006  ;;  %v5311_v56 = vsel %vm5292_vm6, %v5306_v61, %v5257_v52  ;;  %v6189_v35 = vcombine.low %v9618_v30, %v9618_v30  ;;  %v6394_v46 = vcombine.high %v9294_v60, %v9294_v60  ;;  %v6372_v37 = vcombine.high %v9369_v3, %v9369_v3 }
 0x341   : > { %5568 = vmatprep.subr.bf16.mxu0 %v5311_v56  ;;  %4046 = vrot.lane.b32.xlu0 %v6377_v5, %s6672_s8  ;;  %v4738_v25 = vcombine.low %v9621_v45, %v9608_v20  ;;  %v9653_v4 = vrot.slane %v3987_v23, %v7371_v0  ;;  %v2147_v22 = vsel %vm703_vm13, %v10985_v27, %v10984_v55  ;;  %v10997_v23 = vld [vmem:[#allocation87_spill] sm:$0xff]  ;;  %v11002_v27 = vld [vmem:[#allocation54_spill] sm:$0xff] }
 0x342   : > { %4372 = vrot.lane.b32.xlu1 %v6197_v10, %s6675_s18  ;;  %v6378_v57 = vcombine.high %v9392_v9, %v9392_v9  ;;  %v4459_v42 = vcombine.high %v9395_v49, %v9380_v21  ;;  %v2149_v7 = vsel %vm707_vm14, %v2147_v22, %v10986_v31  ;;  %v4561_v6 = vcombine.high %v9097_v47, %v9100_v14  ;;  %v10991_v49 = vld [vmem:[#allocation86_spill] sm:$0xff] }
 0x343   : > { %v9631_v54 = vpop.permute.xlu0 %2966  ;;  %v9648_v58 = vrot.slane %v4738_v25, %v7371_v0  ;;  %v6182_v3 = vcombine.low %v9653_v4, %v9653_v4  ;;  %v2478_v9 = vsel %vm703_vm13, %v10988_v28, %v10987_v24  ;;  %v1871_v21 = vsel %vm703_vm13, %v10990_v34, %v10989_v29  ;;  %v10994_v10 = vld [vmem:[#allocation126_spill] sm:$0xff]  ;;  %v10996_v25 = vld [vmem:[#allocation36_spill] sm:$0xff]  ;;  %v11005_v24 = vld [vmem:[#allocation51_spill] sm:$0xff] }
 0x344   : > { %v9629_v16 = vpop.permute.xlu1 %3280  ;;  %v2151_v32 = vsel %vm710_vm15, %v2149_v7, %v10991_v49  ;;  %v6348_v62 = vcombine.high %v9351_v50, %v9351_v50  ;;  %v2480_v33 = vsel %vm707_vm14, %v2478_v9, %v10992_v18  ;;  %v1873_v47 = vsel %vm707_vm14, %v1871_v21, %v8944_v36  ;;  %v10993_v36 = vld [vmem:[#allocation125_spill] sm:$0xff]  ;;  %v11003_v31 = vld [vmem:[#allocation38_spill] sm:$0xff]  ;;  %v11007_v49 = vld [vmem:[#allocation52_spill] sm:$0xff] }
 0x345   : > { %4332 = vrot.lane.b32.xlu0 %v6189_v35, %s6674_s27  ;;  %10983 = vst [vmem:[#allocation114_spill] sm:$0xff] %v9648_v58  ;;  %v6401_v60 = vcombine.high %v9648_v58, %v9648_v58  ;;  %v2153_v14 = vsel %vm713_vm0, %v2151_v32, %v8971_v63  ;;  %v6391_v61 = vcombine.high %v9457_v19, %v9457_v19  ;;  %v11006_v9 = vld [vmem:[#allocation105_spill] sm:$0xff] }
 0x346   : > { %4631 = vrot.lane.b32.xlu1 %v6210_v1, %s6674_s27  ;;  %v2482_v5 = vsel %vm710_vm15, %v2480_v33, %v8982_v12  ;;  %v1875_v50 = vsel %vm710_vm15, %v1873_v47, %v9090_v51  ;;  %v2155_v56 = vsel %vm716_vm2, %v2153_v14, %v9126_v38  ;;  %v10995_v1 = vcombine.high %v10993_v36, %v10994_v10  ;;  %v10998_v51 = vld [vmem:[#allocation48_spill] sm:$0xff]  ;;  %v10999_v38 = vld [vmem:[#allocation122_spill] sm:$0xff]  ;;  %v11009_v33 = vld [vmem:[#allocation85_spill] sm:$0xff] }
 0x347   : > { %v9641_v48 = vpop.permute.xlu0 %3240  ;;  %v1877_v35 = vsel %vm713_vm0, %v1875_v50, %v10996_v25  ;;  %v2157_v19 = vsel %vm719_vm3, %v2155_v56, %v10997_v23  ;;  %v9717_v12 = vrot.slane %v4561_v6, %v7371_v0  ;;  %v4807_v7 = vcombine.high %v11003_v31, %v9445_v53  ;;  %v11010_v56 = vld [vmem:[#allocation39_spill] sm:$0xff]  ;;  %v11015_v31 = vld [vmem:[#allocation112_spill] sm:$0xff] }
 0x348   : > { %v9639_v43 = vpop.permute.xlu1 %3555  ;;  %v9708_v63 = vrot.slane %v10995_v1, %v7371_v0  ;;  %v2159_v22 = vsel %vm722_vm4, %v2157_v19, %v11002_v27  ;;  %v9756_v10 = vrot.slane %v4459_v42, %v7371_v0 }
 0x349   : > { %4591 = vrot.lane.b32.xlu0 %v6394_v46, %s6673_s9  ;;  %v11000_v46 = vld [vmem:[#allocation43_spill] sm:$0xff]  ;;  %v5248_v14 = vrot.slane %v2159_v22, 6  ;;  %v6211_v50 = vcombine.low %v9717_v12, %v9717_v12  ;;  %v11014_v22 = vld [vmem:[#allocation98_spill] sm:$0xff] }
 0x34a   : > { %4906 = vrot.lane.b32.xlu1 %v6406_v39, %s6673_s9  ;;  %v2754_v39 = vsel %vm703_vm13, %v10999_v38, %v10998_v51  ;;  %v6203_v42 = vcombine.low %v9756_v10, %v9756_v10 }
 0x34b   : > { %v9657_v41 = vpop.permute.xlu0 %3515 }
 0x34c   : > { %v9655_v17 = vpop.permute.xlu1 %3826 }
 0x34d   : > { %4866 = vrot.lane.b32.xlu0 %v6401_v60, %s6672_s8  ;;  %v11001_v60 = vld [vmem:[#allocation30_spill] sm:$0xff] }
 0x34e   : > { %3811 = vrot.lane.b32.xlu1 %v6372_v37, %s6677_s16  ;;  %v2484_v37 = vsel %vm713_vm0, %v2482_v5, %v11000_v46  ;;  %v1879_v55 = vsel %vm716_vm2, %v1877_v35, %v11001_v60  ;;  %v11012_v60 = vld [vmem:[#allocation20_spill] sm:$0xff] }
 0x34f   : > { %v9694_v40 = vpop.permute.xlu0 %3786  ;;  %v2486_v28 = vsel %vm716_vm2, %v2484_v37, %v11005_v24  ;;  %v1881_v29 = vsel %vm719_vm3, %v1879_v55, %v11006_v9  ;;  %v11011_v37 = vld [vmem:[#allocation21_spill] sm:$0xff] }
 0x350   : > { %v1833_v52 = vpop.permute.xlu1 %1832  ;;  %v11013_v55 = vcombine.high %v11011_v37, %v11012_v60 }
 0x351   : > { %2991 = vrot.lane.b32.xlu0 %v6348_v62, %s6677_s16  ;;  %v11008_v62 = vld [vmem:[#allocation27_spill] sm:$0xff]  ;;  %v1883_v53 = vsel %vm722_vm4, %v1881_v29, %v1833_v52 }
 0x352   : > { %4091 = vrot.lane.b32.xlu1 %v6182_v3, %s6674_s27  ;;  %v11004_v3 = vld [vmem:[#allocation10_spill] sm:$0xff]  ;;  %v2488_v18 = vsel %vm719_vm3, %v2486_v28, %v11008_v62  ;;  %v5300_v1 = vsel %vm331_vm1, %v1883_v53, %v5248_v14  ;;  %v9785_v27 = vrot.slane %v11013_v55, %v7371_v0  ;;  %v11016_v28 = vld [vmem:[#allocation119_spill] sm:$0xff]  ;;  %v6392_v62 = vcombine.high %v9586_v11, %v9586_v11 }
 0x353   : > { %v2756_v6 = vsel %vm707_vm14, %v2754_v39, %v11004_v3  ;;  %v9738_v21 = vpop.permute.xlu0 %4352  ;;  %v2490_v5 = vsel %vm722_vm4, %v2488_v18, %v9554_v15  ;;  %v6402_v9 = vcombine.high %v11016_v28, %v11016_v28  ;;  %v6399_v53 = vcombine.high %v9602_v13, %v9602_v13  ;;  %v11017_v11 = vld [vmem:[#allocation131_spill] sm:$0xff] }
 0x354   : > { %v9736_v34 = vpop.permute.xlu1 %2971  ;;  %v2758_v32 = vsel %vm710_vm15, %v2756_v6, %v11007_v49  ;;  %v5252_v35 = vrot.slane %v2490_v5, 4  ;;  %v6183_v24 = vcombine.low %v9785_v27, %v9785_v27  ;;  %v6387_v5 = vcombine.high %v9618_v30, %v9618_v30 }
 0x355   : > { %v2760_v47 = vsel %vm713_vm0, %v2758_v32, %v11009_v33  ;;  %4051 = vrot.lane.b32.xlu0 %v6378_v57, %s6673_s9  ;;  %v6190_v57 = vcombine.low %v9708_v63, %v9708_v63  ;;  %v4739_v33 = vcombine.high %v9621_v45, %v9608_v20 }
 0x356   : > { %4377 = vrot.lane.b32.xlu1 %v6391_v61, %s6676_s26  ;;  %v2762_v36 = vsel %vm716_vm2, %v2760_v47, %v11010_v56  ;;  %v9766_v61 = vrot.slane %v4807_v7, %v7371_v0  ;;  %v3919_v7 = vcombine.high %v11015_v31, %v11014_v22 }
 0x357   : > { %v2764_v52 = vsel %vm719_vm3, %v2762_v36, %v9612_v2  ;;  %v2716_v15 = vpop.permute.xlu0 %2715  ;;  %v5304_v2 = vsel %vm5287_vm5, %v5300_v1, %v5252_v35  ;;  %v11021_v1 = vld [vmem:[#allocation22_spill] sm:$0xff]  ;;  %v9839_v35 = vrot.slane %v4739_v33, %v7371_v0 }
 0x358   : > { %v9761_v25 = vpop.permute.xlu1 %3245  ;;  %v2766_v23 = vsel %vm722_vm4, %v2764_v52, %v2716_v15  ;;  %v6224_v46 = vcombine.low %v9766_v61, %v9766_v61  ;;  %v3933_v29 = vrot.slane %v3919_v7, %v7371_v0  ;;  %v11020_v52 = vld [vmem:[#allocation23_spill] sm:$0xff]  ;;  %v11026_v7 = vld [vmem:[#allocation137_spill] sm:$0xff] }
 0x359   : > { %v5256_v19 = vrot.slane %v2766_v23, 2  ;;  %4337 = vrot.lane.b32.xlu0 %v6190_v57, %s6675_s18  ;;  %v11022_v13 = vcombine.high %v11020_v52, %v11021_v1  ;;  %v6400_v1 = vcombine.high %v9717_v12, %v9717_v12  ;;  %v11036_v12 = vld [vmem:[#allocation129_spill] sm:$0xff] }
 0x35a   : > { %4636 = vrot.lane.b32.xlu1 %v6211_v50, %s6675_s18  ;;  %v6175_v18 = vcombine.low %v3933_v29, %v3933_v29  ;;  %v11018_v50 = vld [vmem:[#allocation132_spill] sm:$0xff] }
 0x35b   : > { %v9776_v38 = vpop.permute.xlu0 %3011  ;;  %v5308_v39 = vsel %vm5292_vm6, %v5304_v2, %v5256_v19  ;;  %v11019_v56 = vcombine.high %v11017_v11, %v11018_v50  ;;  %v4507_v15 = vrot.slane %v11022_v13, %v7371_v0  ;;  %v6383_v2 = vcombine.high %v9653_v4, %v9653_v4  ;;  %v11030_v11 = vld [vmem:[#allocation65_spill] sm:$0xff]  ;;  %v11032_v13 = vld [vmem:[#allocation66_spill] sm:$0xff] }
 0x35c   : > { %v9774_v51 = vpop.permute.xlu1 %3520  ;;  %5569 = vmatpush1.bf16.msra.mxu0 %v5308_v39  ;;  %v11023_v39 = vld [vmem:[#allocation25_spill] sm:$0xff]  ;;  %v6395_v4 = vcombine.high %v9756_v10, %v9756_v10  ;;  %v6388_v10 = vcombine.high %v9708_v63, %v9708_v63  ;;  %v4990_v50 = vshrl.u32 %v11030_v11, 16  ;;  %v6379_v63 = vcombine.high %v3933_v29, %v3933_v29 }
 0x35d   : > { %4596 = vrot.lane.b32.xlu0 %v6203_v42, %s6674_s27  ;;  %v9824_v36 = vrot.slane %v11019_v56, %v7371_v0  ;;  %v6204_v57 = vcombine.low %v4507_v15, %v4507_v15  ;;  %v6217_v42 = vcombine.low %v9839_v35, %v9839_v35  ;;  %v11031_v56 = vld [vmem:[#allocation139_spill] sm:$0xff]  ;;  %v6396_v58 = vcombine.high %v4507_v15, %v4507_v15 }
 0x35e   : > { %4911 = vrot.lane.b32.xlu1 %v6224_v46, %s6674_s27  ;;  %v11024_v46 = vld [vmem:[#allocation24_spill] sm:$0xff]  ;;  %v4995_v52 = vshrl.u32 %v11031_v56, 16 }
 0x35f   : > { %v9793_v6 = vpop.permute.xlu0 %3285  ;;  %v6225_v30 = vcombine.low %v9824_v36, %v9824_v36  ;;  %v11025_v37 = vcombine.high %v11023_v39, %v11024_v46 }
 0x360   : > { %v9791_v3 = vpop.permute.xlu1 %3791 }
 0x361   : > { %4871 = vrot.lane.b32.xlu0 %v6402_v9, %s6673_s9  ;;  %v9855_v60 = vrot.slane %v11025_v37, %v7371_v0  ;;  %v11034_v37 = vld [vmem:[#allocation133_spill] sm:$0xff] }
 0x362   : > { %4096 = vrot.lane.b32.xlu1 %v6183_v24, %s6675_s18  ;;  %v11027_v24 = vld [vmem:[#allocation138_spill] sm:$0xff] }
 0x363   : > { %v9804_v32 = vpop.permute.xlu0 %3560  ;;  %v6176_v31 = vcombine.low %v9855_v60, %v9855_v60  ;;  %v11028_v28 = vcombine.high %v11026_v7, %v11027_v24 }
 0x364   : > { %v9802_v49 = vpop.permute.xlu1 %4317 }
 0x365   : > { %4056 = vrot.lane.b32.xlu0 %v6175_v18, %s6674_s27  ;;  %v4787_v9 = vrot.slane %v11028_v28, %v7371_v0  ;;  %v4977_v28 = vshrl.u32 %v11036_v12, 16 }
 0x366   : > { %4382 = vrot.lane.b32.xlu1 %v6392_v62, %s6677_s16  ;;  %v11029_v62 = vld [vmem:[#allocation141_spill] sm:$0xff] }
 0x367   : > { %v9816_v14 = vpop.permute.xlu0 %3831  ;;  %v4996_v18 = vshrl.u32 %v11029_v62, 16 }
 0x368   : > { %v9814_v47 = vpop.permute.xlu1 %4616 }
 0x369   : > { %4342 = vrot.lane.b32.xlu0 %v6387_v5, %s6676_s26  ;;  %v6218_v5 = vcombine.low %v4787_v9, %v4787_v9 }
 0x36a   : > { %4641 = vrot.lane.b32.xlu1 %v6399_v53, %s6676_s26 }
 0x36b   : > { %v9834_v45 = vpop.permute.xlu0 %4357 }
 0x36c   : > { %v9832_v20 = vpop.permute.xlu1 %3016 }
 0x36d   : > { %4601 = vrot.lane.b32.xlu0 %v6204_v57, %s6675_s18  ;;  %v11033_v57 = vld [vmem:[#allocation136_spill] sm:$0xff] }
 0x36e   : > { %4916 = vrot.lane.b32.xlu1 %v6225_v30, %s6675_s18  ;;  %v4984_v30 = vshrl.u32 %v11032_v13, 16 }
 0x36f   : > { %v9845_v19 = vpop.permute.xlu0 %2976 }
 0x370   : > { %v9843_v23 = vpop.permute.xlu1 %3290 }
 0x371   : > { %4876 = vrot.lane.b32.xlu0 %v6217_v42, %s6674_s27  ;;  %v4997_v42 = vpack.i.b16 %v4996_v18, %v4995_v52  ;;  %v4994_v18 = vpack.i.b16 %v11029_v62, %v11031_v56 }
 0x372   : > { %4101 = vrot.lane.b32.xlu1 %v6383_v2, %s6676_s26  ;;  %v4989_v2 = vshrl.u32 %v11033_v57, 16 }
 0x373   : > { %v9861_v22 = vpop.permute.xlu0 %3250  ;;  %v5081_v15 = vrot.slane %v4994_v18, %v7049_v44  ;;  %v6380_v18 = vcombine.high %v9855_v60, %v9855_v60 }
 0x374   : > { %v9859_v55 = vpop.permute.xlu1 %3565  ;;  %v4991_v24 = vpack.i.b16 %v4990_v50, %v4989_v2  ;;  %v6407_v50 = vcombine.high %v9766_v61, %v9766_v61 }
 0x375   : > { %4061 = vrot.lane.b32.xlu0 %v6176_v31, %s6675_s18  ;;  %v11035_v31 = vld [vmem:[#allocation135_spill] sm:$0xff] }
 0x376   : > { %4606 = vrot.lane.b32.xlu1 %v6395_v4, %s6676_s26  ;;  %v4978_v4 = vshrl.u32 %v11034_v37, 16  ;;  %v4983_v7 = vshrl.u32 %v11035_v31, 16  ;;  %v4982_v62 = vpack.i.b16 %v11032_v13, %v11035_v31  ;;  %v4976_v13 = vpack.i.b16 %v11034_v37, %v11036_v12 }
 0x377   : > { %v9876_v33 = vpop.permute.xlu0 %3525 }
 0x378   : > { %v9874_v53 = vpop.permute.xlu1 %3836  ;;  %v4979_v2 = vpack.i.b16 %v4978_v4, %v4977_v28  ;;  %v5013_v31 = vrot.slane %v4982_v62, %v7049_v44  ;;  %v5005_v12 = vrot.slane %v4976_v13, %v7049_v44 }
 0x379   : > { %4347 = vrot.lane.b32.xlu0 %v6388_v10, %s6677_s16  ;;  %v9900_v10 = vrot.slane %v4997_v42, %v7049_v44 }
 0x37a   : > { %4881 = vrot.lane.b32.xlu1 %v6218_v5, %s6675_s18  ;;  %v4985_v5 = vpack.i.b16 %v4984_v30, %v4983_v7  ;;  %v5107_v30 = vrot.slane %v4991_v24, %v7049_v44 }
 0x37b   : > { %v9890_v46 = vpop.permute.xlu0 %3796 }
 0x37c   : > { %v9888_v39 = vpop.permute.xlu1 %4322  ;;  %v9916_v56 = vrot.slane %v4985_v5, %v7049_v44  ;;  %v5116_v61 = vcombine.low %v5107_v30, %v9900_v10  ;;  %v6403_v5 = vcombine.high %v9839_v35, %v9839_v35 }
 0x37d   : > { %4646 = vrot.lane.b32.xlu0 %v6400_v1, %s6677_s16  ;;  %v4988_v1 = vpack.i.b16 %v11030_v11, %v11033_v57  ;;  %v6408_v11 = vcombine.high %v9824_v36, %v9824_v36  ;;  %v5039_v57 = vrot.slane %v4979_v2, %v7049_v44 }
 0x37e   : > { %4066 = vrot.lane.b32.xlu1 %v6379_v63, %s6676_s26  ;;  %v5124_v37 = vrot.slane %v5116_v61, %v7371_v0 }
 0x37f   : > { %v9904_v29 = vpop.permute.xlu0 %4076  ;;  %v5073_v4 = vrot.slane %v4988_v1, %v7049_v44  ;;  %v5048_v7 = vcombine.low %v5039_v57, %v9916_v56 }
 0x380   : > { %v9902_v52 = vpop.permute.xlu1 %4581 }
 0x381   : > { %11037 = vst [vmem:[#allocation113_spill] sm:$0xff] %v9902_v52  ;;  %4921 = vrot.lane.b32.xlu0 %v6407_v50, %s6676_s26  ;;  %v5082_v24 = vcombine.low %v5073_v4, %v5081_v15  ;;  %v5014_v50 = vcombine.low %v5005_v12, %v5013_v31  ;;  %v5056_v35 = vrot.slane %v5048_v7, %v7371_v0  ;;  %v11050_v52 = vld [vmem:[#allocation37_spill] sm:$0xff] }
 0x382   : > { %4611 = vrot.lane.b32.xlu1 %v6396_v58, %s6677_s16  ;;  %v6384_v58 = vcombine.high %v9785_v27, %v9785_v27  ;;  %v6404_v27 = vcombine.high %v4787_v9, %v4787_v9  ;;  %v6235_v9 = vcombine.low %v5124_v37, %v5124_v37  ;;  %v5083_v44 = vcombine.high %v5073_v4, %v5081_v15 }
 0x383   : > { %v9922_v63 = vpop.permute.xlu0 %4362  ;;  %v9953_v62 = vrot.slane %v5082_v24, %v7371_v0  ;;  %v9965_v13 = vrot.slane %v5014_v50, %v7371_v0  ;;  %v5015_v7 = vcombine.high %v5005_v12, %v5013_v31  ;;  %v5117_v24 = vcombine.high %v5107_v30, %v9900_v10 }
 0x384   : > { %v9920_v42 = vpop.permute.xlu1 %4896  ;;  %v6414_v4 = vcombine.high %v5124_v37, %v5124_v37  ;;  %v5049_v50 = vcombine.high %v5039_v57, %v9916_v56  ;;  %v6410_v10 = vcombine.high %v5056_v35, %v5056_v35 }
 0x385   : > { %11038 = vst [vmem:[#allocation42_spill] sm:$0xff] %v9920_v42  ;;  %4106 = vrot.lane.b32.xlu0 %v6384_v58, %s6677_s16  ;;  %11040 = vst [vmem:[#allocation104_spill] sm:$0xff] %v9953_v62  ;;  %v6413_v60 = vcombine.high %v9953_v62, %v9953_v62  ;;  %v6228_v58 = vcombine.low %v5056_v35, %v5056_v35  ;;  %v5131_v30 = vrot.slane %v5117_v24, %v7371_v0  ;;  %v11047_v62 = vld [vmem:[#allocation55_spill] sm:$0xff] }
 0x386   : > { %4926 = vrot.lane.b32.xlu1 %v6408_v11, %s6677_s16  ;;  %11041 = vst [vmem:[#allocation107_spill] sm:$0xff] %v9965_v13  ;;  %v5029_v37 = vrot.slane %v5015_v7, %v7371_v0  ;;  %v5063_v56 = vrot.slane %v5049_v50, %v7371_v0  ;;  %v11048_v50 = vld [vmem:[#allocation47_spill] sm:$0xff] }
 0x387   : > { %v9938_v28 = vpop.permute.xlu0 %4621 }
 0x388   : > { %v9936_v36 = vpop.permute.xlu1 %3021  ;;  %11039 = vst [vmem:[#allocation101_spill] sm:$0xff] %v9938_v28  ;;  %v6232_v7 = vcombine.low %v5063_v56, %v5063_v56  ;;  %v11052_v28 = vld [vmem:[#allocation109_spill] sm:$0xff] }
 0x389   : > { %4886 = vrot.lane.b32.xlu0 %v6403_v5, %s6676_s26  ;;  %v6409_v5 = vcombine.high %v9965_v13, %v9965_v13  ;;  %v11046_v13 = vld [vmem:[#allocation93_spill] sm:$0xff] }
 0x38a   : > { %4891 = vrot.lane.b32.xlu1 %v6404_v27, %s6677_s16 }
 0x38b   : > { %v9950_v1 = vpop.permute.xlu0 %2981 }
 0x38c   : > { %v9948_v2 = vpop.permute.xlu1 %3530 }
 0x38d   : > { %4071 = vrot.lane.b32.xlu0 %v6380_v18, %s6677_s16  ;;  %v5097_v18 = vrot.slane %v5083_v44, %v7371_v0  ;;  %v3589_v0 = vsel %vm703_vm13, %v11047_v62, %v11046_v13  ;;  %v6412_v13 = vcombine.high %v5063_v56, %v5063_v56 }
 0x38e   : > { %5172 = vrot.lane.b32.xlu1 %v6235_v9, %s6671_s7  ;;  %v3591_v42 = vsel %vm707_vm14, %v3589_v0, %v11050_v52 }
 0x38f   : > { %v9960_v11 = vpop.permute.xlu0 %3255  ;;  %v6238_v12 = vcombine.low %v5097_v18, %v5097_v18  ;;  %v6415_v24 = vcombine.high %v5097_v18, %v5097_v18  ;;  %v6416_v18 = vcombine.high %v5131_v30, %v5131_v30  ;;  %v3593_v62 = vsel %vm710_vm15, %v3591_v42, %v11052_v28  ;;  %v11057_v42 = vld [vmem:[#allocation106_spill] sm:$0xff] }
 0x390   : > { %v9958_v61 = vpop.permute.xlu1 %3801  ;;  %v3595_v0 = vsel %vm713_vm0, %v3593_v62, %v9639_v43 }
 0x391   : > { %5137 = vrot.lane.b32.xlu0 %v6228_v58, %s6671_s7  ;;  %v6239_v58 = vcombine.low %v5131_v30, %v5131_v30  ;;  %v11054_v30 = vld [vmem:[#allocation70_spill] sm:$0xff] }
 0x392   : > { %5177 = vrot.lane.b32.xlu1 %v6413_v60, %s6672_s8 }
 0x393   : > { %v3571_v15 = vpop.permute.xlu0 %3570 }
 0x394   : > { %v9970_v27 = vpop.permute.xlu1 %4041 }
 0x395   : > { %5142 = vrot.lane.b32.xlu0 %v6409_v5, %s6672_s8  ;;  %v11044_v5 = vld [vmem:[#allocation11_spill] sm:$0xff]  ;;  %s10352_s8 = scalar_lea.vmem %s10380_s5, %s6272_s14 }
 0x396   : > { %5182 = vrot.lane.b32.xlu1 %v6414_v4, %s6673_s9  ;;  %v6231_v4 = vcombine.low %v5029_v37, %v5029_v37 }
 0x397   : > { %v3842_v31 = vpop.permute.xlu0 %3841 }
 0x398   : > { %v9978_v9 = vpop.permute.xlu1 %4327 }
 0x399   : > { %5147 = vrot.lane.b32.xlu0 %v6410_v10, %s6673_s9 }
 0x39a   : > { %5187 = vrot.lane.b32.xlu1 %v6238_v12, %s6674_s27  ;;  %v11045_v12 = vld [vmem:[#allocation140_spill] sm:$0xff] }
 0x39b   : > { %v4082_v60 = vpop.permute.xlu0 %4081  ;;  %v3309_v10 = vsel %vm703_vm13, %v11045_v12, %v11044_v5  ;;  %v11051_v5 = vld [vmem:[#allocation34_spill] sm:$0xff] }
 0x39c   : > { %v9984_v44 = vpop.permute.xlu1 %4586 }
 0x39d   : > { %11042 = vst [vmem:[#allocation46_spill] sm:$0xff] %v9984_v44  ;;  %5152 = vrot.lane.b32.xlu0 %v6231_v4, %s6674_s27  ;;  %v6411_v44 = vcombine.high %v5029_v37, %v5029_v37 }
 0x39e   : > { %5192 = vrot.lane.b32.xlu1 %v6239_v58, %s6675_s18  ;;  %v3311_v58 = vsel %vm707_vm14, %v3309_v10, %v11048_v50  ;;  %v11053_v10 = vld [vmem:[#allocation100_spill] sm:$0xff]  ;;  %v11055_v50 = vld [vmem:[#allocation31_spill] sm:$0xff] }
 0x39f   : > { %v4368_v35 = vpop.permute.xlu0 %4367  ;;  %v3045_v37 = vsel %vm703_vm13, %v11054_v30, %v11053_v10 }
 0x3a0   : > { %v9989_v57 = vpop.permute.xlu1 %4861  ;;  %v3047_v28 = vsel %vm707_vm14, %v3045_v37, %v11057_v42 }
 0x3a1   : > { %11043 = vst [vmem:[#allocation45_spill] sm:$0xff] %v9989_v57  ;;  %5157 = vrot.lane.b32.xlu0 %v6232_v7, %s6675_s18 }
 0x3a2   : > { %5197 = vrot.lane.b32.xlu1 %v6415_v24, %s6676_s26  ;;  %v11049_v24 = vld [vmem:[#allocation49_spill] sm:$0xff] }
 0x3a3   : > { %v10003_v57 = vpop.permute.xlu0 %4626  ;;  %v3313_v7 = vsel %vm710_vm15, %v3311_v58, %v11049_v24  ;;  %v11056_v58 = vld [vmem:[#allocation76_spill] sm:$0xff] }
 0x3a4   : > { %v10001_v4 = vpop.permute.xlu1 %2986  ;;  %v3315_v12 = vsel %vm713_vm0, %v3313_v7, %v11051_v5  ;;  %v3865_v24 = vsel %vm703_vm13, %v11056_v58, %v11055_v50 }
 0x3a5   : > { %5162 = vrot.lane.b32.xlu0 %v6411_v44, %s6676_s26  ;;  %v3317_v52 = vsel %vm716_vm2, %v3315_v12, %v9629_v16  ;;  %v3867_v44 = vsel %vm707_vm14, %v3865_v24, %v9556_v8  ;;  %v3049_v16 = vsel %vm710_vm15, %v3047_v28, %v9610_v26 }
 0x3a6   : > { %5202 = vrot.lane.b32.xlu1 %v6416_v18, %s6677_s16  ;;  %v3319_v56 = vsel %vm719_vm3, %v3317_v52, %v9793_v6  ;;  %v3597_v18 = vsel %vm716_vm2, %v3595_v0, %v9804_v32  ;;  %v3869_v43 = vsel %vm710_vm15, %v3867_v44, %v9655_v17  ;;  %v3051_v6 = vsel %vm713_vm0, %v3049_v16, %v9776_v38  ;;  %v11059_v0 = vld [vmem:[#allocation33_spill] sm:$0xff] }
 0x3a7   : > { %v10035_v5 = vpop.permute.xlu0 %4901  ;;  %v3321_v12 = vsel %vm722_vm4, %v3319_v56, %v9843_v23  ;;  %v3599_v8 = vsel %vm719_vm3, %v3597_v18, %v9859_v55  ;;  %v3871_v32 = vsel %vm713_vm0, %v3869_v43, %v9816_v14  ;;  %v3053_v26 = vsel %vm716_vm2, %v3051_v6, %v9832_v20  ;;  %v11058_v20 = vld [vmem:[#allocation29_spill] sm:$0xff]  ;;  %v11061_v6 = vld [vmem:[#allocation116_spill] sm:$0xff] }
 0x3a8   : > { %v10033_v7 = vpop.permute.xlu1 %3535  ;;  %v3601_v62 = vsel %vm722_vm4, %v3599_v8, %v3571_v15  ;;  %v3873_v17 = vsel %vm716_vm2, %v3871_v32, %v9874_v53  ;;  %v5261_v23 = vrot.slane %v3321_v12, 6  ;;  %v3055_v55 = vsel %vm719_vm3, %v3053_v26, %v9936_v36  ;;  %v11060_v12 = vld [vmem:[#allocation92_spill] sm:$0xff]  ;;  %v11062_v32 = vld [vmem:[#allocation142_spill] sm:$0xff] }
 0x3a9   : > { %5167 = vrot.lane.b32.xlu0 %v6412_v13, %s6677_s16  ;;  %v3875_v10 = vsel %vm719_vm3, %v3873_v17, %v3842_v31  ;;  %v5265_v37 = vrot.slane %v3601_v62, 4  ;;  %v4125_v53 = vsel %vm703_vm13, %v11058_v20, %v9904_v29  ;;  %v4401_v42 = vsel %vm703_vm13, %v11059_v0, %v9738_v21  ;;  %v11063_v26 = vld [vmem:[#allocation40_spill] sm:$0xff] }
 0x3aa   : > { %v4127_v36 = vsel %vm707_vm14, %v4125_v53, %v4082_v60  ;;  %v4403_v44 = vsel %vm707_vm14, %v4401_v42, %v9834_v45  ;;  %v4110_v60 = vsel %vm703_vm13, %v9507_v59, %v9970_v27  ;;  %v4386_v45 = vsel %vm703_vm13, %v11060_v12, %v9802_v49  ;;  %v11064_v49 = vld [vmem:[#allocation118_spill] sm:$0xff] }
 0x3ab   : > { %v3027_v30 = vpop.permute.xlu0 %3026  ;;  %v4405_v29 = vsel %vm710_vm15, %v4403_v44, %v9922_v63  ;;  %v4388_v63 = vsel %vm707_vm14, %v4386_v45, %v9888_v39  ;;  %v3294_v62 = vsel %vm703_vm13, %v11062_v32, %v11061_v6 }
 0x3ac   : > { %v3847_v38 = vpop.permute.xlu1 %3846  ;;  %v3057_v15 = vsel %vm722_vm4, %v3055_v55, %v3027_v30  ;;  %v4407_v56 = vsel %vm713_vm0, %v4405_v29, %v4368_v35  ;;  %v4390_v59 = vsel %vm710_vm15, %v4388_v63, %v9978_v9  ;;  %v3296_v17 = vsel %vm707_vm14, %v3294_v62, %v11063_v26  ;;  %v11067_v30 = vld [vmem:[#allocation103_spill] sm:$0xff] }
 0x3ad   : > { %v3877_v14 = vsel %vm722_vm4, %v3875_v10, %v3847_v38  ;;  %v5316_v50 = vsel %vm331_vm1, %v3057_v15, %v5261_v23  ;;  %v11065_v23 = vld [vmem:[#allocation67_spill] sm:$0xff]  ;;  %v11066_v10 = vld [vmem:[#allocation32_spill] sm:$0xff]  ;;  %v11069_v15 = vld [vmem:[#allocation41_spill] sm:$0xff] }
 0x3ae   : > { %v5269_v13 = vrot.slane %v3877_v14, 2  ;;  %v5320_v58 = vsel %vm5287_vm5, %v5316_v50, %v5265_v37  ;;  %v3574_v39 = vsel %vm703_vm13, %v11065_v23, %v11064_v49  ;;  %v3298_v38 = vsel %vm710_vm15, %v3296_v17, %v11066_v10  ;;  %v11068_v14 = vld [vmem:[#allocation111_spill] sm:$0xff] }
 0x3af   : > { %v3807_v31 = vpop.permute.xlu0 %3806  ;;  %v3576_v37 = vsel %vm707_vm14, %v3574_v39, %v11067_v30  ;;  %v3300_v50 = vsel %vm713_vm0, %v3298_v38, %v9641_v48 }
 0x3b0   : > { %v4087_v24 = vpop.permute.xlu1 %4086  ;;  %v5325_v52 = vsel %vm5292_vm6, %v5320_v58, %v5269_v13  ;;  %v3850_v13 = vsel %vm703_vm13, %v11069_v15, %v11068_v14  ;;  %v3578_v20 = vsel %vm710_vm15, %v3576_v37, %v9657_v41  ;;  %v11070_v58 = vld [vmem:[#allocation110_spill] sm:$0xff]  ;;  %v5362_v15 = vld [vmem:[#allocation5 + $0x8] sm:$0xff] }
 0x3b1   : > { %v10071_v28 = vsel %vm710_vm15, %v4127_v36, %v4087_v24  ;;  %5570 = vmatprep.subr.bf16.mxu0 %v5325_v52  ;;  %v3852_v53 = vsel %vm707_vm14, %v3850_v13, %v9694_v40  ;;  %v11071_v36 = vld [vmem:[#allocation82_spill] sm:$0xff]  ;;  %v3302_v52 = vsel %vm716_vm2, %v3300_v50, %v9761_v25  ;;  %v3580_v0 = vsel %vm713_vm0, %v3578_v20, %v9774_v51 }
 0x3b2   : > { %v3030_v24 = vsel %vm703_vm13, %v11071_v36, %v11070_v58  ;;  %v3854_v42 = vsel %vm710_vm15, %v3852_v53, %v9791_v3  ;;  %v3304_v41 = vsel %vm719_vm3, %v3302_v52, %v9861_v22  ;;  %v3582_v40 = vsel %vm716_vm2, %v3580_v0, %v9876_v33  ;;  %v5361_v13 = vld [vmem:[#allocation5] sm:$0xff]  ;;  %5388 = vperm.xlu1 %6495, %v5362_v15   ;;  %v5363_v53 = vld [vmem:[#allocation5 + $0x10] sm:$0xff]  ;;  %v5364_v58 = vld [vmem:[#allocation5 + $0x18] sm:$0xff] }
 0x3b3   : > { %v4047_v16 = vpop.permute.xlu0 %4046  ;;  %v3032_v48 = vsel %vm707_vm14, %v3030_v24, %v9631_v54  ;;  %v3856_v44 = vsel %vm713_vm0, %v3854_v42, %v9890_v46  ;;  %v3584_v3 = vsel %vm719_vm3, %v3582_v40, %v9948_v2  ;;  %v3306_v22 = vsel %vm722_vm4, %v3304_v41, %v9960_v11  ;;  %5383 = vperm.xlu0 %6494, %v5361_v13   ;;  %v11072_v36 = vld [vmem:[#allocation88_spill] sm:$0xff]  ;;  %v5365_v42 = vld [vmem:[#allocation5 + $0x20] sm:$0xff]  ;;  %v11073_v41 = vld [vmem:[#allocation101_spill] sm:$0xff] }
 0x3b4   : > { %v4373_v18 = vpop.permute.xlu1 %4372  ;;  %v10085_v43 = vsel %vm707_vm14, %v4110_v60, %v4047_v16  ;;  %v3034_v51 = vsel %vm710_vm15, %v3032_v48, %v9736_v34  ;;  %v3858_v54 = vsel %vm716_vm2, %v3856_v44, %v9958_v61  ;;  %v3586_v46 = vsel %vm722_vm4, %v3584_v3, %v10033_v7  ;;  %v5366_v48 = vld [vmem:[#allocation5 + $0x28] sm:$0xff]  ;;  %v5369_v13 = vld [vmem:[#allocation5 + $0x40] sm:$0xff] }
 0x3b5   : > { %v10082_v21 = vsel %vm716_vm2, %v4407_v56, %v4373_v18  ;;  %v3036_v33 = vsel %vm713_vm0, %v3034_v51, %v9845_v19  ;;  %v3860_v60 = vsel %vm719_vm3, %v3858_v54, %v3807_v31  ;;  %v5260_v2 = vrot.slane %v3306_v22, 6  ;;  %v11075_v51 = vld [vmem:[#allocation102_spill] sm:$0xff] }
 0x3b6   : > { %v3038_v34 = vsel %vm716_vm2, %v3036_v33, %v9950_v1  ;;  %v5264_v11 = vrot.slane %v3586_v46, 4  ;;  %5393 = vperm.xlu1 %6495, %v5363_v53   ;;  %v4665_v24 = vsel %vm703_vm13, %v11072_v36, %v9814_v47  ;;  %v5370_v53 = vld [vmem:[#allocation5 + $0x48] sm:$0xff] }
 0x3b7   : > { %v4333_v35 = vpop.permute.xlu0 %4332  ;;  %v3040_v61 = vsel %vm719_vm3, %v3038_v34, %v10001_v4  ;;  %5398 = vperm.xlu0 %6494, %v5364_v58   ;;  %v4667_v40 = vsel %vm707_vm14, %v4665_v24, %v11073_v41  ;;  %v5368_v34 = vld [vmem:[#allocation5 + $0x38] sm:$0xff] }
 0x3b8   : > { %v10094_v27 = vpop.permute.xlu1 %4631  ;;  %v10097_v8 = vsel %vm713_vm0, %v4390_v59, %v4333_v35  ;;  %v4669_v44 = vsel %vm710_vm15, %v4667_v40, %v10003_v57  ;;  %v5367_v57 = vld [vmem:[#allocation5 + $0x30] sm:$0xff] }
 0x3b9   : > { %v4671_v54 = vsel %vm713_vm0, %v4669_v44, %v10094_v27 }
 0x3ba   : > { %5403 = vperm.xlu1 %6495, %v5365_v42  }
 0x3bb   : > { %v10109_v9 = vpop.permute.xlu0 %4591  ;;  %5408 = vperm.xlu0 %6494, %v5366_v48  }
 0x3bc   : > { %v10107_v55 = vpop.permute.xlu1 %4906 }
 0x3be   : > { %5413 = vperm.xlu1 %6495, %v5367_v57  }
 0x3bf   : > { %v10141_v25 = vpop.permute.xlu0 %4866  ;;  %5418 = vperm.xlu0 %6494, %v5368_v34  }
 0x3c0   : > { %v3812_v29 = vpop.permute.xlu1 %3811 }
 0x3c1   : > { %v3862_v56 = vsel %vm722_vm4, %v3860_v60, %v3812_v29  ;;  %v11074_v29 = vld [vmem:[#allocation42_spill] sm:$0xff] }
 0x3c2   : > { %v5268_v19 = vrot.slane %v3862_v56, 2  ;;  %v4945_v3 = vsel %vm703_vm13, %v11075_v51, %v11074_v29  ;;  %v11076_v56 = vld [vmem:[#allocation113_spill] sm:$0xff]  ;;  %5423 = vperm.xlu1 %6495, %v5369_v13   ;;  %v5371_v29 = vld [vmem:[#allocation5 + $0x50] sm:$0xff] }
 0x3c3   : > { %v2992_v16 = vpop.permute.xlu0 %2991  ;;  %v4947_v47 = vsel %vm707_vm14, %v4945_v3, %v10035_v5  ;;  %5428 = vperm.xlu0 %6494, %v5370_v53  }
 0x3c4   : > { %v4092_v18 = vpop.permute.xlu1 %4091  ;;  %v3042_v12 = vsel %vm722_vm4, %v3040_v61, %v2992_v16  ;;  %v4949_v27 = vsel %vm710_vm15, %v4947_v47, %v10107_v55 }
 0x3c5   : > { %v5314_v45 = vsel %vm331_vm1, %v3042_v12, %v5260_v2  ;;  %v11077_v2 = vld [vmem:[#allocation99_spill] sm:$0xff]  ;;  %v4131_v12 = vsel %vm713_vm0, %v10071_v28, %v4092_v18 }
 0x3c6   : > { %v5318_v7 = vsel %vm5287_vm5, %v5314_v45, %v5264_v11  ;;  %v4650_v61 = vsel %vm703_vm13, %v11077_v2, %v11076_v56  ;;  %v11078_v11 = vld [vmem:[#allocation46_spill] sm:$0xff]  ;;  %5433 = vperm.xlu1 %6495, %v5371_v29   ;;  %v6497_v29 = vld [vmem:[%s10376_s1 + $0x8] sm:$0xff]  }
 0x3c7   : > { %v10164_v63 = vpop.permute.xlu0 %4051  ;;  %v5322_v1 = vsel %vm5292_vm6, %v5318_v7, %v5268_v19  ;;  %v11079_v7 = vld [vmem:[#allocation45_spill] sm:$0xff] }
 0x3c8   : > { %v4378_v31 = vpop.permute.xlu1 %4377  ;;  %5571 = vmatpush1.bf16.msra.mxu0 %v5322_v1 }
 0x3c9   : > { %v4411_v22 = vsel %vm719_vm3, %v10082_v21, %v4378_v31  ;;  %v4652_v21 = vsel %vm707_vm14, %v4650_v61, %v11078_v11  ;;  %v11080_v31 = vld [vmem:[#allocation114_spill] sm:$0xff]  ;;  %v5375_v61 = vld [vmem:[#allocation5 + $0x70] sm:$0xff]  ;;  %v5378_v11 = vld [vmem:[#allocation5 + $0x88] sm:$0xff] }
 0x3ca   : > { %v4930_v1 = vsel %vm703_vm13, %v11080_v31, %v11079_v7 }
 0x3cb   : > { %v10167_v35 = vpop.permute.xlu0 %4337  ;;  %v4932_v58 = vsel %vm707_vm14, %v4930_v1, %v10141_v25  ;;  %v5763_v1 = vld [vmem:[#allocation7] sm:$0xff] }
 0x3cc   : > { %v4637_v59 = vpop.permute.xlu1 %4636 }
 0x3cd   : > { %v4673_v33 = vsel %vm716_vm2, %v4671_v54, %v4637_v59 }
 0x3cf   : > { %v10169_v6 = vpop.permute.xlu0 %4596 }
 0x3d0   : > { %v4912_v4 = vpop.permute.xlu1 %4911 }
 0x3d1   : > { %v4951_v19 = vsel %vm713_vm0, %v4949_v27, %v4912_v4 }
 0x3d3   : > { %v10171_v62 = vpop.permute.xlu0 %4871 }
 0x3d4   : > { %v4097_v32 = vpop.permute.xlu1 %4096 }
 0x3d5   : > { %v4133_v55 = vsel %vm716_vm2, %v4131_v12, %v4097_v32 }
 0x3d7   : > { %v10173_v17 = vpop.permute.xlu0 %4056 }
 0x3d8   : > { %v4383_v26 = vpop.permute.xlu1 %4382 }
 0x3d9   : > { %v4413_v16 = vsel %vm722_vm4, %v4411_v22, %v4383_v26  ;;  %v4654_v26 = vsel %vm710_vm15, %v4652_v21, %v10109_v9  ;;  %v4394_v9 = vsel %vm716_vm2, %v10097_v8, %v10167_v35  ;;  %v5373_v22 = vld [vmem:[#allocation5 + $0x60] sm:$0xff] }
 0x3da   : > { %v4656_v42 = vsel %vm713_vm0, %v4654_v26, %v10169_v6  ;;  %v5372_v6 = vld [vmem:[#allocation5 + $0x58] sm:$0xff]  ;;  %5443 = vperm.xlu1 %6495, %v5373_v22  }
 0x3db   : > { %v10175_v23 = vpop.permute.xlu0 %4342  ;;  %5438 = vperm.xlu0 %6494, %v5372_v6   ;;  %v6498_v6 = vld [vmem:[%s10376_s1 + $0x10] sm:$0xff]  }
 0x3dc   : > { %v4642_v49 = vpop.permute.xlu1 %4641  ;;  %v4396_v41 = vsel %vm719_vm3, %v4394_v9, %v10175_v23 }
 0x3dd   : > { %v4675_v5 = vsel %vm719_vm3, %v4673_v33, %v4642_v49  ;;  %v5273_v49 = vrot.slane %v4413_v16, 6  ;;  %v5374_v33 = vld [vmem:[#allocation5 + $0x68] sm:$0xff] }
 0x3de   : > { %5453 = vperm.xlu1 %6495, %v5375_v61  }
 0x3df   : > { %v10177_v10 = vpop.permute.xlu0 %4601  ;;  %5448 = vperm.xlu0 %6494, %v5374_v33  }
 0x3e0   : > { %v4917_v39 = vpop.permute.xlu1 %4916  ;;  %v4658_v8 = vsel %vm716_vm2, %v4656_v42, %v10177_v10 }
 0x3e1   : > { %v4953_v59 = vsel %vm716_vm2, %v4951_v19, %v4917_v39  ;;  %v5379_v19 = vld [vmem:[#allocation5 + $0x90] sm:$0xff] }
 0x3e3   : > { %v4877_v30 = vpop.permute.xlu0 %4876 }
 0x3e4   : > { %v4102_v38 = vpop.permute.xlu1 %4101 }
 0x3e5   : > { %v4135_v28 = vsel %vm719_vm3, %v4133_v55, %v4102_v38  ;;  %v4934_v38 = vsel %vm710_vm15, %v4932_v58, %v10171_v62  ;;  %v5764_v55 = vld [vmem:[#allocation7 + $0x8] sm:$0xff] }
 0x3e6   : > { %v4936_v25 = vsel %vm713_vm0, %v4934_v38, %v4877_v30  ;;  %v4114_v30 = vsel %vm710_vm15, %v10085_v43, %v10164_v63  ;;  %v11082_v58 = vld [vmem:[#allocation107_spill] sm:$0xff] }
 0x3e7   : > { %v10181_v14 = vpop.permute.xlu0 %4061 }
 0x3e8   : > { %v10179_v37 = vpop.permute.xlu1 %4606 }
 0x3e9   : > { %v4660_v51 = vsel %vm719_vm3, %v4658_v8, %v10179_v37 }
 0x3eb   : > { %v10183_v20 = vpop.permute.xlu0 %4347 }
 0x3ec   : > { %v4882_v50 = vpop.permute.xlu1 %4881  ;;  %v4398_v23 = vsel %vm722_vm4, %v4396_v41, %v10183_v20 }
 0x3ed   : > { %v4938_v35 = vsel %vm716_vm2, %v4936_v25, %v4882_v50  ;;  %v4116_v50 = vsel %vm713_vm0, %v4114_v30, %v10173_v17  ;;  %v5272_v43 = vrot.slane %v4398_v23, 6  ;;  %v6499_v30 = vld [vmem:[%s10376_s1 + $0x18] sm:$0xff]   ;;  %v6501_v23 = vld [vmem:[%s10376_s1 + $0x28] sm:$0xff]  }
 0x3ee   : > { %v4118_v54 = vsel %vm716_vm2, %v4116_v50, %v10181_v14  ;;  %v6503_v50 = vld [vmem:[%s10376_s1 + $0x38] sm:$0xff]  }
 0x3ef   : > { %v4647_v0 = vpop.permute.xlu0 %4646 }
 0x3f0   : > { %v10188_v52 = vpop.permute.xlu1 %4066  ;;  %v4677_v45 = vsel %vm722_vm4, %v4675_v5, %v4647_v0  ;;  %v5377_v5 = vld [vmem:[#allocation5 + $0x80] sm:$0xff] }
 0x3f1   : > { %v5277_v32 = vrot.slane %v4677_v45, 4  ;;  %v4120_v63 = vsel %vm719_vm3, %v4118_v54, %v10188_v52  ;;  %v5376_v52 = vld [vmem:[#allocation5 + $0x78] sm:$0xff]  ;;  %5463 = vperm.xlu1 %6495, %v5377_v5  }
 0x3f2   : > { %5458 = vperm.xlu0 %6494, %v5376_v52   ;;  %v5380_v45 = vld [vmem:[#allocation5 + $0x98] sm:$0xff] }
 0x3f3   : > { %v4922_v60 = vpop.permute.xlu0 %4921  ;;  %v6505_v54 = vld [vmem:[%s10376_s1 + $0x48] sm:$0xff]  }
 0x3f4   : > { %v4612_v46 = vpop.permute.xlu1 %4611  ;;  %v4955_v18 = vsel %vm719_vm3, %v4953_v59, %v4922_v60  ;;  %v11081_v59 = vld [vmem:[#allocation104_spill] sm:$0xff] }
 0x3f5   : > { %v4662_v3 = vsel %vm722_vm4, %v4660_v51, %v4612_v46  ;;  %5473 = vperm.xlu1 %6495, %v5379_v19   ;;  %v6500_v51 = vld [vmem:[%s10376_s1 + $0x20] sm:$0xff]  }
 0x3f6   : > { %v5276_v60 = vrot.slane %v4662_v3, 4  ;;  %5468 = vperm.xlu0 %6494, %v5378_v11   ;;  %v6504_v3 = vld [vmem:[%s10376_s1 + $0x40] sm:$0xff]  }
 0x3f7   : > { %v4107_v15 = vpop.permute.xlu0 %4106 }
 0x3f8   : > { %v4927_v4 = vpop.permute.xlu1 %4926  ;;  %v4137_v36 = vsel %vm722_vm4, %v4135_v28, %v4107_v15  ;;  %v5766_v15 = vld [vmem:[#allocation7 + $0x18] sm:$0xff] }
 0x3f9   : > { %v4957_v39 = vsel %vm722_vm4, %v4955_v18, %v4927_v4  ;;  %v5330_v0 = vsel %vm331_vm1, %v4137_v36, %v5273_v49  ;;  %5769 = vperm.xlu1 %6495, %v5763_v1   ;;  %v5765_v4 = vld [vmem:[#allocation7 + $0x10] sm:$0xff] }
 0x3fa   : > { %v5281_v24 = vrot.slane %v4957_v39, 2  ;;  %v5334_v48 = vsel %vm5287_vm5, %v5330_v0, %v5277_v32  ;;  %5478 = vperm.xlu0 %6494, %v5380_v45  }
 0x3fb   : > { %v4887_v40 = vpop.permute.xlu0 %4886 }
 0x3fc   : > { %v4892_v62 = vpop.permute.xlu1 %4891  ;;  %v5339_v44 = vsel %vm5292_vm6, %v5334_v48, %v5281_v24  ;;  %v4940_v10 = vsel %vm719_vm3, %v4938_v35, %v4887_v40  ;;  %v6496_v40 = vld [vmem:[%s10376_s1] sm:$0xff]  }
 0x3fd   : > { %5572 = vmatprep.subr.bf16.mxu0 %v5339_v44  ;;  %v4942_v47 = vsel %vm722_vm4, %v4940_v10, %v4892_v62  ;;  %5779 = vperm.xlu1 %6495, %v5765_v4   ;;  %v11083_v44 = vmov 0   ;;  %v6502_v10 = vld [vmem:[%s10376_s1 + $0x30] sm:$0xff]  }
 0x3fe   : > { %v5280_v57 = vrot.slane %v4942_v47, 2  ;;  %5774 = vperm.xlu0 %6494, %v5764_v55   ;;  %v6508_v47 = vld [vmem:[%s10378_s3 + $0x4] ss:$8 sps:$4 sm:$0xff]  }
 0x3ff   : > { %v4072_v20 = vpop.permute.xlu0 %4071  ;;  %6267 = vmatprep.mubr.msk.bf16.mxu1 %vm707_vm14, %v6508_v47 }
 0x400   : > { %v5173_v37 = vpop.permute.xlu1 %5172  ;;  %v4122_v17 = vsel %vm722_vm4, %v4120_v63, %v4072_v20 }
 0x401   : > { %v5328_v46 = vsel %vm331_vm1, %v4122_v17, %v5272_v43  ;;  %v5221_v26 = vsel %vm703_vm13, %v11081_v59, %v5173_v37 }
 0x402   : > { %v5332_v14 = vsel %vm5287_vm5, %v5328_v46, %v5276_v60  ;;  %5784 = vperm.xlu0 %6494, %v5766_v15  }
 0x403   : > { %v5138_v56 = vpop.permute.xlu0 %5137  ;;  %v5336_v2 = vsel %vm5292_vm6, %v5332_v14, %v5280_v57 }
 0x404   : > { %v5178_v34 = vpop.permute.xlu1 %5177  ;;  %5573 = vmatpush1.bf16.msra.mxu0 %v5336_v2  ;;  %v5206_v32 = vsel %vm703_vm13, %v11082_v58, %v5138_v56 }
 0x405   : > { %v5223_v49 = vsel %vm707_vm14, %v5221_v26, %v5178_v34 }
 0x407   : > { %v5143_v16 = vpop.permute.xlu0 %5142 }
 0x408   : > { %v5183_v27 = vpop.permute.xlu1 %5182  ;;  %v5208_v36 = vsel %vm707_vm14, %v5206_v32, %v5143_v16 }
 0x409   : > { %v5225_v13 = vsel %vm710_vm15, %v5223_v49, %v5183_v27 }
 0x40b   : > { %v5148_v12 = vpop.permute.xlu0 %5147 }
 0x40c   : > { %v5188_v21 = vpop.permute.xlu1 %5187  ;;  %v5210_v0 = vsel %vm710_vm15, %v5208_v36, %v5148_v12 }
 0x40d   : > { %v5227_v53 = vsel %vm713_vm0, %v5225_v13, %v5188_v21 }
 0x40f   : > { %v5153_v31 = vpop.permute.xlu0 %5152 }
 0x410   : > { %v5193_v7 = vpop.permute.xlu1 %5192  ;;  %v5212_v25 = vsel %vm713_vm0, %v5210_v0, %v5153_v31 }
 0x411   : > { %v5229_v39 = vsel %vm716_vm2, %v5227_v53, %v5193_v7 }
 0x413   : > { %v5158_v18 = vpop.permute.xlu0 %5157 }
 0x414   : > { %v5198_v28 = vpop.permute.xlu1 %5197  ;;  %v5214_v48 = vsel %vm716_vm2, %v5212_v25, %v5158_v18 }
 0x415   : > { %v5231_v9 = vsel %vm719_vm3, %v5229_v39, %v5198_v28 }
 0x417   : > { %v5163_v24 = vpop.permute.xlu0 %5162 }
 0x418   : > { %v5203_v38 = vpop.permute.xlu1 %5202  ;;  %v5216_v41 = vsel %vm719_vm3, %v5214_v48, %v5163_v24 }
 0x419   : > { %v5233_v42 = vsel %vm722_vm4, %v5231_v9, %v5203_v38 }
 0x41a   : > { %6252 = vmatprep.subr.msk.bf16.mxu0 %vm331_vm1, %v5233_v42 }
 0x41b   : > { %v5168_v8 = vpop.permute.xlu0 %5167 }
 0x41c   : > { %v5218_v35 = vsel %vm722_vm4, %v5216_v41, %v5168_v8 }
 0x41d   : > { %v5562_v62 = vsel %vm331_vm1, %v5218_v35, 0 }
 0x41e   : > { %5575 = vmatpush1.bf16.msra.mxu0 %v5562_v62 }
 0x421   : > { %6253 = vmatmul.mubr.msk.bf16.vlgmr.msra.gmra.mrb[0].mxu0 %vm5531_vm7, %v6496_v40 }
 0x422   : > { %5608 = vmatprep.mubr.bf16.mxu0 %v11083_v44 }
 0x429   : > { %6254 = vmatmul.mubr.msk.bf16.gmra.mrb[4].mxu0 %vm5531_vm7, %v6497_v29 }
 0x42a   : > { %5618 = vmatprep.mubr.bf16.mxu0 %v11083_v44 }
 0x431   : > { %6255 = vmatmul.mubr.msk.bf16.gmra.mrb[8].mxu0 %vm5531_vm7, %v6498_v6  ;;  %v5389_v22 = vpop.permute.xlu1 %5388 }
 0x432   : > { %5628 = vmatprep.mubr.bf16.mxu0 %v11083_v44  ;;  %v5384_v43 = vpop.permute.xlu0 %5383 }
 0x435   : > { %v5394_v52 = vpop.permute.xlu1 %5393 }
 0x436   : > { %v5399_v21 = vpop.permute.xlu0 %5398 }
 0x439   : > { %6256 = vmatmul.mubr.msk.bf16.gmra.mrb[12].mxu0 %vm5531_vm7, %v6499_v30  ;;  %v5404_v28 = vpop.permute.xlu1 %5403 }
 0x43a   : > { %5638 = vmatprep.mubr.bf16.mxu0 %v11083_v44  ;;  %v5409_v53 = vpop.permute.xlu0 %5408 }
 0x43d   : > { %v5414_v48 = vpop.permute.xlu1 %5413 }
 0x43e   : > { %v5419_v40 = vpop.permute.xlu0 %5418 }
 0x441   : > { %6257 = vmatmul.mubr.msk.bf16.gmra.mrb[16].mxu0 %vm5531_vm7, %v6500_v51  ;;  %v5424_v47 = vpop.permute.xlu1 %5423 }
 0x442   : > { %5648 = vmatprep.mubr.bf16.mxu0 %v11083_v44 }
 0x449   : > { %6258 = vmatmul.mubr.msk.bf16.gmra.mrb[20].mxu0 %vm5531_vm7, %v6501_v23 }
 0x44a   : > { %5658 = vmatprep.mubr.bf16.mxu0 %v11083_v44 }
 0x451   : > { %6259 = vmatmul.mubr.msk.bf16.gmra.mrb[24].mxu0 %vm5531_vm7, %v6502_v10 }
 0x452   : > { %5668 = vmatprep.mubr.bf16.mxu0 %v11083_v44 }
 0x459   : > { %6260 = vmatmul.mubr.msk.bf16.gmra.mrb[28].mxu0 %vm5531_vm7, %v6503_v50 }
 0x45a   : > { %5678 = vmatprep.mubr.bf16.mxu0 %v11083_v44 }
 0x461   : > { %6261 = vmatmul.mubr.msk.bf16.gmra.mrb[32].mxu0 %vm5531_vm7, %v6504_v3 }
 0x462   : > { %5688 = vmatprep.mubr.bf16.mxu0 %v11083_v44 }
 0x469   : > { %6262 = vmatmul.mubr.msk.bf16.gmra.mrb[36].mxu0 %vm5531_vm7, %v6505_v54 }
 0x4f4   : > { %v5600_v63 = vpop.f32.mrb[0].mxu0 }
 0x4f5   : > { %v5601_v37 = vadd.f32 %v5600_v63, %v5384_v43  ;;  %v5602_v20 = vpop.f32.mrb[1].mxu0 }
 0x4f6   : > { %v5603_v33 = vadd.f32 %v5602_v20, %v5384_v43  ;;  %v5604_v60 = vpop.f32.mrb[2].mxu0 }
 0x4f7   : > { %v5605_v17 = vadd.f32 %v5604_v60, %v5389_v22  ;;  %v5606_v57 = vpop.f32.mrb[3].mxu0  ;;  %v5699_v14 = vmax.f32 %v5601_v37, 0.0 }
 0x4f8   : > { %v5607_v46 = vadd.f32 %v5606_v57, %v5389_v22  ;;  %v5700_v56 = vmax.f32 %v5603_v33, 0.0  ;;  %v5429_v22 = vpop.permute.xlu0 %5428 }
 0x4f9   : > { %v5701_v34 = vmax.f32 %v5605_v17, 0.0 }
 0x4fa   : > { %v5702_v2 = vmax.f32 %v5607_v46, 0.0 }
 0x4fb   : > { %v5743_v61 = vpack.c.bf16 %v5701_v34, %v5699_v14 }
 0x4fc   : > { %v5610_v27 = vpop.f32.mrb[4].mxu0  ;;  %v5744_v16 = vpack.c.bf16 %v5702_v2, %v5700_v56 }
 0x4fd   : > { %v5611_v5 = vadd.f32 %v5610_v27, %v5394_v52  ;;  %v5612_v11 = vpop.f32.mrb[5].mxu0 }
 0x4fe   : > { %v5613_v12 = vadd.f32 %v5612_v11, %v5394_v52  ;;  %v5614_v19 = vpop.f32.mrb[6].mxu0  ;;  %5811 = vmatprep.subr.bf16.mxu1 %v5744_v16  ;;  %v5434_v52 = vpop.permute.xlu1 %5433 }
 0x4ff   : > { %v5615_v45 = vadd.f32 %v5614_v19, %v5399_v21  ;;  %v5616_v7 = vpop.f32.mrb[7].mxu0  ;;  %5812 = vmatpush1.bf16.msra.mxu1 %v5743_v61  ;;  %v5703_v1 = vmax.f32 %v5611_v5, 0.0 }
 0x500   : > { %v5617_v31 = vadd.f32 %v5616_v7, %v5399_v21  ;;  %v5704_v59 = vmax.f32 %v5613_v12, 0.0  ;;  %v5439_v21 = vpop.permute.xlu0 %5438 }
 0x501   : > { %v5705_v55 = vmax.f32 %v5615_v45, 0.0 }
 0x502   : > { %v5706_v26 = vmax.f32 %v5617_v31, 0.0 }
 0x503   : > { %v5745_v49 = vpack.c.bf16 %v5705_v55, %v5703_v1 }
 0x504   : > { %v5746_v18 = vpack.c.bf16 %v5706_v26, %v5704_v59  ;;  %v5620_v4 = vpop.f32.mrb[8].mxu0 }
 0x505   : > { %v5621_v15 = vadd.f32 %v5620_v4, %v5404_v28  ;;  %v5622_v13 = vpop.f32.mrb[9].mxu0 }
 0x506   : > { %v5623_v58 = vadd.f32 %v5622_v13, %v5404_v28  ;;  %v5624_v32 = vpop.f32.mrb[10].mxu0  ;;  %5813 = vmatprep.subr.bf16.mxu1 %v5746_v18  ;;  %v5444_v28 = vpop.permute.xlu1 %5443 }
 0x507   : > { %v5625_v39 = vadd.f32 %v5624_v32, %v5409_v53  ;;  %v5626_v36 = vpop.f32.mrb[11].mxu0  ;;  %5814 = vmatpush1.bf16.msra.mxu1 %v5745_v49  ;;  %v5707_v38 = vmax.f32 %v5621_v15, 0.0 }
 0x508   : > { %v5627_v9 = vadd.f32 %v5626_v36, %v5409_v53  ;;  %v5708_v0 = vmax.f32 %v5623_v58, 0.0  ;;  %v5449_v53 = vpop.permute.xlu0 %5448 }
 0x509   : > { %v5709_v24 = vmax.f32 %v5625_v39, 0.0 }
 0x50a   : > { %v5710_v42 = vmax.f32 %v5627_v9, 0.0 }
 0x50b   : > { %v5747_v25 = vpack.c.bf16 %v5709_v24, %v5707_v38 }
 0x50c   : > { %v5748_v41 = vpack.c.bf16 %v5710_v42, %v5708_v0  ;;  %v5630_v8 = vpop.f32.mrb[12].mxu0 }
 0x50d   : > { %v5631_v35 = vadd.f32 %v5630_v8, %v5414_v48  ;;  %v5632_v62 = vpop.f32.mrb[13].mxu0 }
 0x50e   : > { %v5633_v44 = vadd.f32 %v5632_v62, %v5414_v48  ;;  %v5634_v29 = vpop.f32.mrb[14].mxu0  ;;  %5815 = vmatprep.subr.bf16.mxu1 %v5748_v41  ;;  %v5454_v48 = vpop.permute.xlu1 %5453 }
 0x50f   : > { %v5635_v6 = vadd.f32 %v5634_v29, %v5419_v40  ;;  %v5636_v30 = vpop.f32.mrb[15].mxu0  ;;  %5816 = vmatpush1.bf16.msra.mxu1 %v5747_v25  ;;  %v5711_v23 = vmax.f32 %v5631_v35, 0.0 }
 0x510   : > { %v5637_v51 = vadd.f32 %v5636_v30, %v5419_v40  ;;  %v5712_v50 = vmax.f32 %v5633_v44, 0.0  ;;  %v5459_v40 = vpop.permute.xlu0 %5458 }
 0x511   : > { %v5713_v10 = vmax.f32 %v5635_v6, 0.0 }
 0x512   : > { %v5714_v3 = vmax.f32 %v5637_v51, 0.0 }
 0x513   : > { %v5749_v54 = vpack.c.bf16 %v5713_v10, %v5711_v23 }
 0x514   : > { %v5750_v43 = vpack.c.bf16 %v5714_v3, %v5712_v50  ;;  %v5640_v63 = vpop.f32.mrb[16].mxu0 }
 0x515   : > { %v5641_v37 = vadd.f32 %v5640_v63, %v5424_v47  ;;  %v5642_v20 = vpop.f32.mrb[17].mxu0 }
 0x516   : > { %v5643_v33 = vadd.f32 %v5642_v20, %v5424_v47  ;;  %v5644_v60 = vpop.f32.mrb[18].mxu0  ;;  %5817 = vmatprep.subr.bf16.mxu1 %v5750_v43  ;;  %v5464_v47 = vpop.permute.xlu1 %5463 }
 0x517   : > { %v5645_v17 = vadd.f32 %v5644_v60, %v5429_v22  ;;  %v5646_v57 = vpop.f32.mrb[19].mxu0  ;;  %5818 = vmatpush1.bf16.msra.mxu1 %v5749_v54  ;;  %v5715_v14 = vmax.f32 %v5641_v37, 0.0 }
 0x518   : > { %v5647_v46 = vadd.f32 %v5646_v57, %v5429_v22  ;;  %v5716_v56 = vmax.f32 %v5643_v33, 0.0  ;;  %v5469_v22 = vpop.permute.xlu0 %5468 }
 0x519   : > { %v5717_v34 = vmax.f32 %v5645_v17, 0.0 }
 0x51a   : > { %v5718_v2 = vmax.f32 %v5647_v46, 0.0 }
 0x51b   : > { %v5751_v61 = vpack.c.bf16 %v5717_v34, %v5715_v14 }
 0x51c   : > { %v5752_v27 = vpack.c.bf16 %v5718_v2, %v5716_v56  ;;  %v5650_v16 = vpop.f32.mrb[20].mxu0 }
 0x51d   : > { %v5651_v5 = vadd.f32 %v5650_v16, %v5434_v52  ;;  %v5652_v11 = vpop.f32.mrb[21].mxu0 }
 0x51e   : > { %v5653_v12 = vadd.f32 %v5652_v11, %v5434_v52  ;;  %v5654_v19 = vpop.f32.mrb[22].mxu0  ;;  %5819 = vmatprep.subr.bf16.mxu1 %v5752_v27  ;;  %v5474_v52 = vpop.permute.xlu1 %5473 }
 0x51f   : > { %v5655_v45 = vadd.f32 %v5654_v19, %v5439_v21  ;;  %v5656_v7 = vpop.f32.mrb[23].mxu0  ;;  %5820 = vmatpush1.bf16.msra.mxu1 %v5751_v61  ;;  %v5719_v1 = vmax.f32 %v5651_v5, 0.0 }
 0x520   : > { %v5657_v31 = vadd.f32 %v5656_v7, %v5439_v21  ;;  %v5720_v59 = vmax.f32 %v5653_v12, 0.0  ;;  %v5479_v21 = vpop.permute.xlu0 %5478 }
 0x521   : > { %v5721_v55 = vmax.f32 %v5655_v45, 0.0 }
 0x522   : > { %v5722_v26 = vmax.f32 %v5657_v31, 0.0 }
 0x523   : > { %v5753_v49 = vpack.c.bf16 %v5721_v55, %v5719_v1 }
 0x524   : > { %v5754_v18 = vpack.c.bf16 %v5722_v26, %v5720_v59  ;;  %v5660_v4 = vpop.f32.mrb[24].mxu0 }
 0x525   : > { %v5661_v15 = vadd.f32 %v5660_v4, %v5444_v28  ;;  %v5662_v13 = vpop.f32.mrb[25].mxu0  ;;  %v6509_v4 = vld [vmem:[%s10378_s3 + $0x14] ss:$8 sps:$4 sm:$0xff]  }
 0x526   : > { %v5663_v58 = vadd.f32 %v5662_v13, %v5444_v28  ;;  %v5664_v32 = vpop.f32.mrb[26].mxu0  ;;  %5821 = vmatprep.subr.bf16.mxu1 %v5754_v18  ;;  %v6506_v18 = vld [vmem:[%s10378_s3] ss:$8 sps:$4 sm:$0xff]   ;;  %v5770_v13 = vpop.permute.xlu1 %5769 }
 0x527   : > { %v5665_v39 = vadd.f32 %v5664_v32, %v5449_v53  ;;  %v5666_v36 = vpop.f32.mrb[27].mxu0  ;;  %5822 = vmatpush1.bf16.msra.mxu1 %v5753_v49  ;;  %v5723_v38 = vmax.f32 %v5661_v15, 0.0  ;;  %v6511_v15 = vld [vmem:[%s10378_s3 + $0x10] ss:$8 sps:$4 sm:$0xff]  }
 0x528   : > { %v5667_v9 = vadd.f32 %v5666_v36, %v5449_v53  ;;  %v5724_v0 = vmax.f32 %v5663_v58, 0.0 }
 0x529   : > { %v5725_v24 = vmax.f32 %v5665_v39, 0.0  ;;  %v5775_v39 = vpop.permute.xlu0 %5774 }
 0x52a   : > { %v5726_v42 = vmax.f32 %v5667_v9, 0.0 }
 0x52b   : > { %v5755_v25 = vpack.c.bf16 %v5725_v24, %v5723_v38 }
 0x52c   : > { %v5756_v41 = vpack.c.bf16 %v5726_v42, %v5724_v0  ;;  %v5670_v8 = vpop.f32.mrb[28].mxu0 }
 0x52d   : > { %v5671_v35 = vadd.f32 %v5670_v8, %v5454_v48  ;;  %v5672_v62 = vpop.f32.mrb[29].mxu0  ;;  %v5780_v8 = vpop.permute.xlu1 %5779 }
 0x52e   : > { %v5673_v44 = vadd.f32 %v5672_v62, %v5454_v48  ;;  %v5674_v29 = vpop.f32.mrb[30].mxu0  ;;  %5823 = vmatprep.subr.bf16.mxu1 %v5756_v41 }
 0x52f   : > { %v5675_v6 = vadd.f32 %v5674_v29, %v5459_v40  ;;  %v5676_v30 = vpop.f32.mrb[31].mxu0  ;;  %5824 = vmatpush1.bf16.msra.mxu1 %v5755_v25  ;;  %v5727_v23 = vmax.f32 %v5671_v35, 0.0 }
 0x530   : > { %v5677_v51 = vadd.f32 %v5676_v30, %v5459_v40  ;;  %v5728_v50 = vmax.f32 %v5673_v44, 0.0  ;;  %v5785_v44 = vpop.permute.xlu0 %5784 }
 0x531   : > { %v5729_v10 = vmax.f32 %v5675_v6, 0.0 }
 0x532   : > { %v5730_v3 = vmax.f32 %v5677_v51, 0.0 }
 0x533   : > { %v5757_v54 = vpack.c.bf16 %v5729_v10, %v5727_v23 }
 0x534   : > { %v5758_v43 = vpack.c.bf16 %v5730_v3, %v5728_v50  ;;  %v5680_v63 = vpop.f32.mrb[32].mxu0 }
 0x535   : > { %v5681_v37 = vadd.f32 %v5680_v63, %v5464_v47  ;;  %v5682_v20 = vpop.f32.mrb[33].mxu0 }
 0x536   : > { %v5683_v33 = vadd.f32 %v5682_v20, %v5464_v47  ;;  %v5684_v60 = vpop.f32.mrb[34].mxu0  ;;  %5825 = vmatprep.subr.bf16.mxu1 %v5758_v43 }
 0x537   : > { %v5685_v17 = vadd.f32 %v5684_v60, %v5469_v22  ;;  %v5686_v57 = vpop.f32.mrb[35].mxu0  ;;  %5826 = vmatpush1.bf16.msra.mxu1 %v5757_v54  ;;  %v5731_v14 = vmax.f32 %v5681_v37, 0.0 }
 0x538   : > { %v5687_v46 = vadd.f32 %v5686_v57, %v5469_v22  ;;  %v5732_v56 = vmax.f32 %v5683_v33, 0.0 }
 0x539   : > { %v5733_v34 = vmax.f32 %v5685_v17, 0.0 }
 0x53a   : > { %v5734_v2 = vmax.f32 %v5687_v46, 0.0 }
 0x53b   : > { %v5759_v61 = vpack.c.bf16 %v5733_v34, %v5731_v14 }
 0x53c   : > { %v5760_v27 = vpack.c.bf16 %v5734_v2, %v5732_v56  ;;  %v5690_v16 = vpop.f32.mrb[36].mxu0 }
 0x53d   : > { %v5691_v5 = vadd.f32 %v5690_v16, %v5474_v52  ;;  %v5692_v11 = vpop.f32.mrb[37].mxu0 }
 0x53e   : > { %v5693_v12 = vadd.f32 %v5692_v11, %v5474_v52  ;;  %v5694_v19 = vpop.f32.mrb[38].mxu0  ;;  %5827 = vmatprep.subr.bf16.mxu1 %v5760_v27 }
 0x53f   : > { %v5695_v45 = vadd.f32 %v5694_v19, %v5479_v21  ;;  %v5696_v7 = vpop.f32.mrb[39].mxu0  ;;  %5828 = vmatpush1.bf16.msra.mxu1 %v5759_v61  ;;  %v5735_v1 = vmax.f32 %v5691_v5, 0.0 }
 0x540   : > { %v5697_v31 = vadd.f32 %v5696_v7, %v5479_v21  ;;  %v5736_v59 = vmax.f32 %v5693_v12, 0.0 }
 0x541   : > { %v5737_v55 = vmax.f32 %v5695_v45, 0.0 }
 0x542   : > { %v5738_v26 = vmax.f32 %v5697_v31, 0.0 }
 0x543   : > { %v5761_v49 = vpack.c.bf16 %v5737_v55, %v5735_v1 }
 0x544   : > { %v5762_v28 = vpack.c.bf16 %v5738_v26, %v5736_v59 }
 0x546   : > { %5829 = vmatprep.subr.bf16.mxu1 %v5762_v28 }
 0x547   : > { %5830 = vmatpush1.bf16.msra.mxu1 %v5761_v49 }
 0x54a   : > { %5844 = vmatmul.mubr.bf16.vlgmr.msra.gmra.mrb[0].mxu1 %v6506_v18 }
 0x54b   : > { %6268 = vmatprep.mubr.msk.bf16.mxu1 %vm707_vm14, %v6509_v4 }
 0x552   : > { %5854 = vmatmul.mubr.bf16.gmra.mrb[4].mxu1 %v6511_v15 }
 0x61d   : > { %v5845_v53 = vpop.f32.mrb[0].mxu1 }
 0x61e   : > { %v5846_v58 = vadd.f32 %v5845_v53, %v5770_v13  ;;  %v5847_v32 = vpop.f32.mrb[1].mxu1 }
 0x61f   : > { %v5848_v36 = vadd.f32 %v5847_v32, %v5770_v13  ;;  %v5849_v9 = vpop.f32.mrb[2].mxu1 }
 0x620   : > { %v5864_v38 = vmax.f32 %v5846_v58, 0.0  ;;  %v5850_v24 = vadd.f32 %v5849_v9, %v5775_v39  ;;  %v5851_v0 = vpop.f32.mrb[3].mxu1 }
 0x621   : > { %v5865_v42 = vmax.f32 %v5848_v36, 0.0  ;;  %v5852_v25 = vadd.f32 %v5851_v0, %v5775_v39 }
 0x622   : > { %5872 = vst [vmem:[%s10352_s8] sm:$0xff] %v5864_v38  ;;  %v5866_v48 = vmax.f32 %v5850_v24, 0.0 }
 0x623   : > { %5873 = vst [vmem:[%s10352_s8 + $0x8] sm:$0xff] %v5865_v42  ;;  %v5867_v41 = vmax.f32 %v5852_v25, 0.0 }
 0x624   : > { %5874 = vst [vmem:[%s10352_s8 + $0x10] sm:$0xff] %v5866_v48 }
 0x625   : > { %5875 = vst [vmem:[%s10352_s8 + $0x18] sm:$0xff] %v5867_v41  ;;  %v5855_v35 = vpop.f32.mrb[4].mxu1 }
 0x626   : > { %v5856_v62 = vadd.f32 %v5855_v35, %v5780_v8  ;;  %v5857_v40 = vpop.f32.mrb[5].mxu1 }
 0x627   : > { %v5858_v29 = vadd.f32 %v5857_v40, %v5780_v8  ;;  %v5859_v6 = vpop.f32.mrb[6].mxu1 }
 0x628   : > { %v5868_v30 = vmax.f32 %v5856_v62, 0.0  ;;  %v5860_v51 = vadd.f32 %v5859_v6, %v5785_v44  ;;  %v5861_v23 = vpop.f32.mrb[7].mxu1 }
 0x629   : > { %v5869_v10 = vmax.f32 %v5858_v29, 0.0  ;;  %v5862_v50 = vadd.f32 %v5861_v23, %v5785_v44 }
 0x62a   : > { %5876 = vst [vmem:[%s10352_s8 + $0x20] sm:$0xff] %v5868_v30  ;;  %v5870_v3 = vmax.f32 %v5860_v51, 0.0 }
 0x62b   : > { %5877 = vst [vmem:[%s10352_s8 + $0x28] sm:$0xff] %v5869_v10  ;;  %v5871_v54 = vmax.f32 %v5862_v50, 0.0 }
 0x62c   : > { %5878 = vst [vmem:[%s10352_s8 + $0x30] sm:$0xff] %v5870_v3 }
 0x62d   : > { %5879 = vst [vmem:[%s10352_s8 + $0x38] sm:$0xff] %v5871_v54 }
 0x62e PF: > { %p16_p6 = scmp.ge.s32.totalorder %s6810_s12, 4   ;;  %s11084_s18 = smov %s6648_s19 }
 0x62f   : > { %s11085_s19 = smov %s6652_s20  ;;  %s11086_s20 = smov %s6821_s17 }
 0x630   : > { %s11087_s21 = smov %s6810_s12  ;;  %18 = sbr.rel (!%p16_p6) target bundleno = 4 (0x4), region = 88 }
 0x637   :  { %5904 = vsyncpa [#allocation4], 1 }
 0x638   :  { %5906 = vsyncpa [#allocation4 + $0x1], 1 }
 0x639   :  { %5907 = vsyncpa [#allocation6], 1 }

</bundles_post_ra>
